<compile_context>
chip_gen: v7x
topology: tpu7x:2x2x1
jax: 0.10.0
libtpu: 0.0.40
codegen_flags: <defaults>
</compile_context>

<pallas_src>
import functools

import jax
import jax.numpy as jnp
from jax import lax
from jax.experimental import pallas as pl
from jax.experimental.pallas import tpu as pltpu


def _leaky_relu(x, slope=0.2):
    return jnp.where(x >= 0, x, slope * x)


def ffn_kernel(x_ref, w1_ref, b1_ref, w2f_ref, b2_ref, w3t_ref, b3t_ref,
               o_ref, pad_ref, patch_ref, *, H, W):
    # x_ref    : (N*H*W, Cin)    flattened NHWC input
    # w1_ref   : (Cin, Ch)       b1_ref : (1, Ch)
    # w2f_ref  : (9*Ch, Ch)      b2_ref : (1, Ch)   (3x3 HWIO weights, row = (ky*3+kx)*Ch+i)
    # w3t_ref  : (Cin, Ch)       b3t_ref: (Cin, 1)
    # o_ref    : (N, Cin, H*W)   lane-dense, NCHW-flattened output
    # pad_ref  : (H+2, W+2, Ch)  zero-padded hidden activations (scratch)
    # patch_ref: (H*W, 9*Ch)     im2col patches (scratch)
    N = o_ref.shape[0]
    Ch = w1_ref.shape[1]
    HW = H * W

    # ---- 1x1 conv + LeakyReLU over the whole batch (Dropout2d == identity in eval) ----
    h1 = jnp.dot(x_ref[...], w1_ref[...], preferred_element_type=jnp.float32)
    h1 = _leaky_relu(h1 + b1_ref[...])                      # (N*H*W, Ch)

    # Zero the padded scratch once per kernel call; the loop below only rewrites the
    # interior, so the 1-pixel halo stays zero for every image.
    pad_ref[...] = jnp.zeros_like(pad_ref)

    for n in range(N):  # N is tiny and static -> unrolled
        h1_img = h1[n * HW:(n + 1) * HW]                    # (H*W, Ch)
        pad_ref[1:H + 1, 1:W + 1, :] = h1_img.reshape(H, W, Ch)

        # ---- im2col: (H*W, 9*Ch) patches, single K = 9*Ch matmul + LeakyReLU ----
        for dy in range(3):
            for dx in range(3):
                k = dy * 3 + dx
                patch_ref[:, k * Ch:(k + 1) * Ch] = (
                    pad_ref[dy:dy + H, dx:dx + W, :].reshape(HW, Ch))
        h2 = jnp.dot(patch_ref[...], w2f_ref[...],
                     preferred_element_type=jnp.float32)
        h2 = _leaky_relu(h2 + b2_ref[...])                  # (H*W, Ch)

        # ---- final 1x1 conv, transposed: (Cin, Ch) . (H*W, Ch)^T -> (Cin, H*W) ----
        out_t = lax.dot_general(w3t_ref[...], h2,
                                (((1,), (1,)), ((), ())),
                                preferred_element_type=jnp.float32)
        o_ref[n] = (out_t + b3t_ref[...]).astype(o_ref.dtype)


def ffn_pallas(x_nchw, w1, b1, w2, b2, w3, b3):
    """x_nchw: (N, Cin, H, W) float32 -> (N, Cin, H, W) float32."""
    N, Cin, H, W = x_nchw.shape
    Ch = w1.shape[1]

    # Wrapper-side layout plumbing (cheap XLA ops; keeps relayouts off the kernel path).
    x_flat = jnp.transpose(x_nchw, (0, 2, 3, 1)).reshape(N * H * W, Cin)
    w2f = w2.reshape(9 * Ch, Ch)          # HWIO -> (9*Ch, Ch)
    w3t = jnp.transpose(w3)               # (Ch, Cin) -> (Cin, Ch)
    b3t = b3.reshape(Cin, 1)

    vmem = pl.BlockSpec(memory_space=pltpu.MemorySpace.VMEM)
    out_flat = pl.pallas_call(
        functools.partial(ffn_kernel, H=H, W=W),
        out_shape=jax.ShapeDtypeStruct((N, Cin, H * W), x_nchw.dtype),
        in_specs=[vmem] * 7,
        out_specs=vmem,
        scratch_shapes=[
            pltpu.VMEM((H + 2, W + 2, Ch), jnp.float32),   # padded hidden image
            pltpu.VMEM((H * W, 9 * Ch), jnp.float32),      # im2col patches
        ],
    )(x_flat, w1, b1, w2f, b2, w3t, b3t)

    # Output is already NCHW-ordered (lane-dense (Cin, H*W) rows per image): just reshape.
    return out_flat.reshape(N, Cin, H, W)


def ffn_reference(x_nchw, w1, b1, w2, b2, w3, b3):
    """Pure-JAX reference (NHWC internally), mirrors the PyTorch eval() forward."""
    x = jnp.transpose(x_nchw, (0, 2, 3, 1))
    h1 = _leaky_relu(jnp.einsum('nhwc,co->nhwo', x, w1) + b1[0])
    h2 = lax.conv_general_dilated(
        h1, w2, window_strides=(1, 1), padding='SAME',
        dimension_numbers=('NHWC', 'HWIO', 'NHWC'))
    h2 = _leaky_relu(h2 + b2[0])
    out = jnp.einsum('nhwc,co->nhwo', h2, w3) + b3[0]
    return jnp.transpose(out, (0, 3, 1, 2))


if __name__ == "__main__":
    # Small shapes consistent with the module: batch=2, in_features=4,
    # hidden_features=32, spatial 16x16.
    N, Cin, Ch, H, W = 2, 4, 32, 16, 16

    key = jax.random.PRNGKey(0)
    kx, k1, k2, k3, k4, k5, k6 = jax.random.split(key, 7)

    x = jax.random.normal(kx, (N, Cin, H, W), dtype=jnp.float32)

    # Deterministic synthetic parameters (PyTorch conv weight shapes noted):
    w1 = 0.1 * jax.random.normal(k1, (Cin, Ch), dtype=jnp.float32)        # Conv2d(Cin,Ch,1)
    b1 = 0.1 * jax.random.normal(k2, (1, Ch), dtype=jnp.float32)
    w2 = 0.1 * jax.random.normal(k3, (3, 3, Ch, Ch), dtype=jnp.float32)   # Conv2d(Ch,Ch,3,p=1), HWIO
    b2 = 0.1 * jax.random.normal(k4, (1, Ch), dtype=jnp.float32)
    w3 = 0.1 * jax.random.normal(k5, (Ch, Cin), dtype=jnp.float32)        # Conv2d(Ch,Cin,1)
    b3 = 0.1 * jax.random.normal(k6, (1, Cin), dtype=jnp.float32)

    out = ffn_pallas(x, w1, b1, w2, b2, w3, b3)
    out = jax.block_until_ready(out)

    ref = ffn_reference(x, w1, b1, w2, b2, w3, b3)
    assert out.shape == (N, Cin, H, W)
    assert jnp.allclose(out, ref, atol=1e-4, rtol=1e-4), "mismatch vs JAX reference"

    print("KERNEL_OK")
</pallas_src>

<mosaic_0001>
module attributes {stable_mosaic.version = 11 : i64} {
  func.func @ffn_kernel(%arg0: memref<512x4xf32, #tpu.memory_space<vmem>>, %arg1: memref<4x32xf32, #tpu.memory_space<vmem>>, %arg2: memref<1x32xf32, #tpu.memory_space<vmem>>, %arg3: memref<288x32xf32, #tpu.memory_space<vmem>>, %arg4: memref<1x32xf32, #tpu.memory_space<vmem>>, %arg5: memref<4x32xf32, #tpu.memory_space<vmem>>, %arg6: memref<4x1xf32, #tpu.memory_space<vmem>>, %arg7: memref<2x4x256xf32, #tpu.memory_space<vmem>>, %arg8: memref<18x18x32xf32, #tpu.memory_space<vmem>>, %arg9: memref<256x288xf32, #tpu.memory_space<vmem>>) attributes {dimension_semantics = [], scalar_prefetch = 0 : i64, scratch_operands = 2 : i64, tpu.core_type = #tpu.core_type<tc>} {
    %c0 = arith.constant 0 : index
    %c0_0 = arith.constant 0 : index
    %0 = vector.load %arg0[%c0, %c0_0] : memref<512x4xf32, #tpu.memory_space<vmem>>, vector<512x4xf32>
    %c0_1 = arith.constant 0 : index
    %c0_2 = arith.constant 0 : index
    %1 = vector.load %arg1[%c0_1, %c0_2] : memref<4x32xf32, #tpu.memory_space<vmem>>, vector<4x32xf32>
    %cst = arith.constant dense<0.000000e+00> : vector<512x32xf32>
    %2 = tpu.matmul %0, %1, %cst {dimension_numbers = #tpu.dot_dimension_numbers<[1], [0], [0], [1], [0, 0, 1, 1], [], []>} : vector<512x4xf32>, vector<4x32xf32>, vector<512x32xf32> -> vector<512x32xf32>
    %c0_3 = arith.constant 0 : index
    %c0_4 = arith.constant 0 : index
    %3 = vector.load %arg2[%c0_3, %c0_4] : memref<1x32xf32, #tpu.memory_space<vmem>>, vector<1x32xf32>
    %4 = vector.broadcast %3 : vector<1x32xf32> to vector<512x32xf32>
    %5 = arith.addf %2, %4 : vector<512x32xf32>
    %cst_5 = arith.constant 0.000000e+00 : f32
    %6 = vector.broadcast %cst_5 : f32 to vector<512x32xf32>
    %7 = arith.cmpf oge, %5, %6 : vector<512x32xf32>
    %cst_6 = arith.constant 2.000000e-01 : f32
    %8 = vector.broadcast %cst_6 : f32 to vector<512x32xf32>
    %9 = arith.mulf %8, %5 : vector<512x32xf32>
    %10 = arith.select %7, %5, %9 : vector<512x32xi1>, vector<512x32xf32>
    %cst_7 = arith.constant 0.000000e+00 : f32
    %11 = vector.broadcast %cst_7 : f32 to vector<18x18x32xf32>
    %c0_8 = arith.constant 0 : index
    %c0_9 = arith.constant 0 : index
    %c0_10 = arith.constant 0 : index
    %12 = vector.load %arg8[%c0_8, %c0_9, %c0_10] : memref<18x18x32xf32, #tpu.memory_space<vmem>>, vector<18x18x32xf32>
    tpu.vector_store %arg8[%c0_8, %c0_9, %c0_10], %11 {strides = array<i32>} : memref<18x18x32xf32, #tpu.memory_space<vmem>>, vector<18x18x32xf32>,
    %13 = vector.extract_strided_slice %10 {offsets = [0, 0], sizes = [256, 32], strides = [1, 1]} : vector<512x32xf32> to vector<256x32xf32>
    %14 = vector.shape_cast %13 : vector<256x32xf32> to vector<16x16x32xf32>
    %c1 = arith.constant 1 : index
    %c1_11 = arith.constant 1 : index
    %c0_12 = arith.constant 0 : index
    %15 = vector.load %arg8[%c1, %c1_11, %c0_12] : memref<18x18x32xf32, #tpu.memory_space<vmem>>, vector<16x16x32xf32>
    tpu.vector_store %arg8[%c1, %c1_11, %c0_12], %14 {strides = array<i32>} : memref<18x18x32xf32, #tpu.memory_space<vmem>>, vector<16x16x32xf32>,
    %c0_13 = arith.constant 0 : index
    %c0_14 = arith.constant 0 : index
    %c0_15 = arith.constant 0 : index
    %16 = vector.load %arg8[%c0_13, %c0_14, %c0_15] : memref<18x18x32xf32, #tpu.memory_space<vmem>>, vector<16x16x32xf32>
    %17 = vector.shape_cast %16 : vector<16x16x32xf32> to vector<256x32xf32>
    %c0_16 = arith.constant 0 : index
    %c0_17 = arith.constant 0 : index
    %18 = vector.load %arg9[%c0_16, %c0_17] : memref<256x288xf32, #tpu.memory_space<vmem>>, vector<256x32xf32>
    tpu.vector_store %arg9[%c0_16, %c0_17], %17 {strides = array<i32>} : memref<256x288xf32, #tpu.memory_space<vmem>>, vector<256x32xf32>,
    %c0_18 = arith.constant 0 : index
    %c1_19 = arith.constant 1 : index
    %c0_20 = arith.constant 0 : index
    %19 = vector.load %arg8[%c0_18, %c1_19, %c0_20] : memref<18x18x32xf32, #tpu.memory_space<vmem>>, vector<16x16x32xf32>
    %20 = vector.shape_cast %19 : vector<16x16x32xf32> to vector<256x32xf32>
    %c0_21 = arith.constant 0 : index
    %c32 = arith.constant 32 : index
    %21 = vector.load %arg9[%c0_21, %c32] : memref<256x288xf32, #tpu.memory_space<vmem>>, vector<256x32xf32>
    tpu.vector_store %arg9[%c0_21, %c32], %20 {strides = array<i32>} : memref<256x288xf32, #tpu.memory_space<vmem>>, vector<256x32xf32>,
    %c0_22 = arith.constant 0 : index
    %c2 = arith.constant 2 : index
    %c0_23 = arith.constant 0 : index
    %22 = vector.load %arg8[%c0_22, %c2, %c0_23] : memref<18x18x32xf32, #tpu.memory_space<vmem>>, vector<16x16x32xf32>
    %23 = vector.shape_cast %22 : vector<16x16x32xf32> to vector<256x32xf32>
    %c0_24 = arith.constant 0 : index
    %c64 = arith.constant 64 : index
    %24 = vector.load %arg9[%c0_24, %c64] : memref<256x288xf32, #tpu.memory_space<vmem>>, vector<256x32xf32>
    tpu.vector_store %arg9[%c0_24, %c64], %23 {strides = array<i32>} : memref<256x288xf32, #tpu.memory_space<vmem>>, vector<256x32xf32>,
    %c1_25 = arith.constant 1 : index
    %c0_26 = arith.constant 0 : index
    %c0_27 = arith.constant 0 : index
    %25 = vector.load %arg8[%c1_25, %c0_26, %c0_27] : memref<18x18x32xf32, #tpu.memory_space<vmem>>, vector<16x16x32xf32>
    %26 = vector.shape_cast %25 : vector<16x16x32xf32> to vector<256x32xf32>
    %c0_28 = arith.constant 0 : index
    %c96 = arith.constant 96 : index
    %27 = vector.load %arg9[%c0_28, %c96] : memref<256x288xf32, #tpu.memory_space<vmem>>, vector<256x32xf32>
    tpu.vector_store %arg9[%c0_28, %c96], %26 {strides = array<i32>} : memref<256x288xf32, #tpu.memory_space<vmem>>, vector<256x32xf32>,
    %c1_29 = arith.constant 1 : index
    %c1_30 = arith.constant 1 : index
    %c0_31 = arith.constant 0 : index
    %28 = vector.load %arg8[%c1_29, %c1_30, %c0_31] : memref<18x18x32xf32, #tpu.memory_space<vmem>>, vector<16x16x32xf32>
    %29 = vector.shape_cast %28 : vector<16x16x32xf32> to vector<256x32xf32>
    %c0_32 = arith.constant 0 : index
    %c128 = arith.constant 128 : index
    %30 = vector.load %arg9[%c0_32, %c128] : memref<256x288xf32, #tpu.memory_space<vmem>>, vector<256x32xf32>
    tpu.vector_store %arg9[%c0_32, %c128], %29 {strides = array<i32>} : memref<256x288xf32, #tpu.memory_space<vmem>>, vector<256x32xf32>,
    %c1_33 = arith.constant 1 : index
    %c2_34 = arith.constant 2 : index
    %c0_35 = arith.constant 0 : index
    %31 = vector.load %arg8[%c1_33, %c2_34, %c0_35] : memref<18x18x32xf32, #tpu.memory_space<vmem>>, vector<16x16x32xf32>
    %32 = vector.shape_cast %31 : vector<16x16x32xf32> to vector<256x32xf32>
    %c0_36 = arith.constant 0 : index
    %c160 = arith.constant 160 : index
    %33 = vector.load %arg9[%c0_36, %c160] : memref<256x288xf32, #tpu.memory_space<vmem>>, vector<256x32xf32>
    tpu.vector_store %arg9[%c0_36, %c160], %32 {strides = array<i32>} : memref<256x288xf32, #tpu.memory_space<vmem>>, vector<256x32xf32>,
    %c2_37 = arith.constant 2 : index
    %c0_38 = arith.constant 0 : index
    %c0_39 = arith.constant 0 : index
    %34 = vector.load %arg8[%c2_37, %c0_38, %c0_39] : memref<18x18x32xf32, #tpu.memory_space<vmem>>, vector<16x16x32xf32>
    %35 = vector.shape_cast %34 : vector<16x16x32xf32> to vector<256x32xf32>
    %c0_40 = arith.constant 0 : index
    %c192 = arith.constant 192 : index
    %36 = vector.load %arg9[%c0_40, %c192] : memref<256x288xf32, #tpu.memory_space<vmem>>, vector<256x32xf32>
    tpu.vector_store %arg9[%c0_40, %c192], %35 {strides = array<i32>} : memref<256x288xf32, #tpu.memory_space<vmem>>, vector<256x32xf32>,
    %c2_41 = arith.constant 2 : index
    %c1_42 = arith.constant 1 : index
    %c0_43 = arith.constant 0 : index
    %37 = vector.load %arg8[%c2_41, %c1_42, %c0_43] : memref<18x18x32xf32, #tpu.memory_space<vmem>>, vector<16x16x32xf32>
    %38 = vector.shape_cast %37 : vector<16x16x32xf32> to vector<256x32xf32>
    %c0_44 = arith.constant 0 : index
    %c224 = arith.constant 224 : index
    %39 = vector.load %arg9[%c0_44, %c224] : memref<256x288xf32, #tpu.memory_space<vmem>>, vector<256x32xf32>
    tpu.vector_store %arg9[%c0_44, %c224], %38 {strides = array<i32>} : memref<256x288xf32, #tpu.memory_space<vmem>>, vector<256x32xf32>,
    %c2_45 = arith.constant 2 : index
    %c2_46 = arith.constant 2 : index
    %c0_47 = arith.constant 0 : index
    %40 = vector.load %arg8[%c2_45, %c2_46, %c0_47] : memref<18x18x32xf32, #tpu.memory_space<vmem>>, vector<16x16x32xf32>
    %41 = vector.shape_cast %40 : vector<16x16x32xf32> to vector<256x32xf32>
    %c0_48 = arith.constant 0 : index
    %c256 = arith.constant 256 : index
    %42 = vector.load %arg9[%c0_48, %c256] : memref<256x288xf32, #tpu.memory_space<vmem>>, vector<256x32xf32>
    tpu.vector_store %arg9[%c0_48, %c256], %41 {strides = array<i32>} : memref<256x288xf32, #tpu.memory_space<vmem>>, vector<256x32xf32>,
    %c0_49 = arith.constant 0 : index
    %c0_50 = arith.constant 0 : index
    %43 = vector.load %arg9[%c0_49, %c0_50] : memref<256x288xf32, #tpu.memory_space<vmem>>, vector<256x288xf32>
    %c0_51 = arith.constant 0 : index
    %c0_52 = arith.constant 0 : index
    %44 = vector.load %arg3[%c0_51, %c0_52] : memref<288x32xf32, #tpu.memory_space<vmem>>, vector<288x32xf32>
    %cst_53 = arith.constant dense<0.000000e+00> : vector<256x32xf32>
    %45 = tpu.matmul %43, %44, %cst_53 {dimension_numbers = #tpu.dot_dimension_numbers<[1], [0], [0], [1], [0, 0, 1, 1], [], []>} : vector<256x288xf32>, vector<288x32xf32>, vector<256x32xf32> -> vector<256x32xf32>
    %c0_54 = arith.constant 0 : index
    %c0_55 = arith.constant 0 : index
    %46 = vector.load %arg4[%c0_54, %c0_55] : memref<1x32xf32, #tpu.memory_space<vmem>>, vector<1x32xf32>
    %47 = vector.broadcast %46 : vector<1x32xf32> to vector<256x32xf32>
    %48 = arith.addf %45, %47 : vector<256x32xf32>
    %cst_56 = arith.constant 0.000000e+00 : f32
    %49 = vector.broadcast %cst_56 : f32 to vector<256x32xf32>
    %50 = arith.cmpf oge, %48, %49 : vector<256x32xf32>
    %cst_57 = arith.constant 2.000000e-01 : f32
    %51 = vector.broadcast %cst_57 : f32 to vector<256x32xf32>
    %52 = arith.mulf %51, %48 : vector<256x32xf32>
    %53 = arith.select %50, %48, %52 : vector<256x32xi1>, vector<256x32xf32>
    %c0_58 = arith.constant 0 : index
    %c0_59 = arith.constant 0 : index
    %54 = vector.load %arg5[%c0_58, %c0_59] : memref<4x32xf32, #tpu.memory_space<vmem>>, vector<4x32xf32>
    %cst_60 = arith.constant dense<0.000000e+00> : vector<4x256xf32>
    %55 = tpu.matmul %54, %53, %cst_60 {dimension_numbers = #tpu.dot_dimension_numbers<[1], [1], [0], [0], [0, 0, 1, 0], [], []>} : vector<4x32xf32>, vector<256x32xf32>, vector<4x256xf32> -> vector<4x256xf32>
    %c0_61 = arith.constant 0 : index
    %c0_62 = arith.constant 0 : index
    %56 = vector.load %arg6[%c0_61, %c0_62] : memref<4x1xf32, #tpu.memory_space<vmem>>, vector<4x1xf32>
    %57 = vector.broadcast %56 : vector<4x1xf32> to vector<4x256xf32>
    %58 = arith.addf %55, %57 : vector<4x256xf32>
    %c0_63 = arith.constant 0 : index
    %c0_64 = arith.constant 0 : index
    %c0_65 = arith.constant 0 : index
    %59 = vector.load %arg7[%c0_63, %c0_64, %c0_65] : memref<2x4x256xf32, #tpu.memory_space<vmem>>, vector<1x4x256xf32>
    %60 = vector.shape_cast %59 : vector<1x4x256xf32> to vector<4x256xf32>
    %61 = vector.shape_cast %58 : vector<4x256xf32> to vector<1x4x256xf32>
    tpu.vector_store %arg7[%c0_63, %c0_64, %c0_65], %61 {strides = array<i32>} : memref<2x4x256xf32, #tpu.memory_space<vmem>>, vector<1x4x256xf32>,
    %62 = vector.extract_strided_slice %10 {offsets = [256, 0], sizes = [256, 32], strides = [1, 1]} : vector<512x32xf32> to vector<256x32xf32>
    %63 = vector.shape_cast %62 : vector<256x32xf32> to vector<16x16x32xf32>
    %c1_66 = arith.constant 1 : index
    %c1_67 = arith.constant 1 : index
    %c0_68 = arith.constant 0 : index
    %64 = vector.load %arg8[%c1_66, %c1_67, %c0_68] : memref<18x18x32xf32, #tpu.memory_space<vmem>>, vector<16x16x32xf32>
    tpu.vector_store %arg8[%c1_66, %c1_67, %c0_68], %63 {strides = array<i32>} : memref<18x18x32xf32, #tpu.memory_space<vmem>>, vector<16x16x32xf32>,
    %c0_69 = arith.constant 0 : index
    %c0_70 = arith.constant 0 : index
    %c0_71 = arith.constant 0 : index
    %65 = vector.load %arg8[%c0_69, %c0_70, %c0_71] : memref<18x18x32xf32, #tpu.memory_space<vmem>>, vector<16x16x32xf32>
    %66 = vector.shape_cast %65 : vector<16x16x32xf32> to vector<256x32xf32>
    %c0_72 = arith.constant 0 : index
    %c0_73 = arith.constant 0 : index
    %67 = vector.load %arg9[%c0_72, %c0_73] : memref<256x288xf32, #tpu.memory_space<vmem>>, vector<256x32xf32>
    tpu.vector_store %arg9[%c0_72, %c0_73], %66 {strides = array<i32>} : memref<256x288xf32, #tpu.memory_space<vmem>>, vector<256x32xf32>,
    %c0_74 = arith.constant 0 : index
    %c1_75 = arith.constant 1 : index
    %c0_76 = arith.constant 0 : index
    %68 = vector.load %arg8[%c0_74, %c1_75, %c0_76] : memref<18x18x32xf32, #tpu.memory_space<vmem>>, vector<16x16x32xf32>
    %69 = vector.shape_cast %68 : vector<16x16x32xf32> to vector<256x32xf32>
    %c0_77 = arith.constant 0 : index
    %c32_78 = arith.constant 32 : index
    %70 = vector.load %arg9[%c0_77, %c32_78] : memref<256x288xf32, #tpu.memory_space<vmem>>, vector<256x32xf32>
    tpu.vector_store %arg9[%c0_77, %c32_78], %69 {strides = array<i32>} : memref<256x288xf32, #tpu.memory_space<vmem>>, vector<256x32xf32>,
    %c0_79 = arith.constant 0 : index
    %c2_80 = arith.constant 2 : index
    %c0_81 = arith.constant 0 : index
    %71 = vector.load %arg8[%c0_79, %c2_80, %c0_81] : memref<18x18x32xf32, #tpu.memory_space<vmem>>, vector<16x16x32xf32>
    %72 = vector.shape_cast %71 : vector<16x16x32xf32> to vector<256x32xf32>
    %c0_82 = arith.constant 0 : index
    %c64_83 = arith.constant 64 : index
    %73 = vector.load %arg9[%c0_82, %c64_83] : memref<256x288xf32, #tpu.memory_space<vmem>>, vector<256x32xf32>
    tpu.vector_store %arg9[%c0_82, %c64_83], %72 {strides = array<i32>} : memref<256x288xf32, #tpu.memory_space<vmem>>, vector<256x32xf32>,
    %c1_84 = arith.constant 1 : index
    %c0_85 = arith.constant 0 : index
    %c0_86 = arith.constant 0 : index
    %74 = vector.load %arg8[%c1_84, %c0_85, %c0_86] : memref<18x18x32xf32, #tpu.memory_space<vmem>>, vector<16x16x32xf32>
    %75 = vector.shape_cast %74 : vector<16x16x32xf32> to vector<256x32xf32>
    %c0_87 = arith.constant 0 : index
    %c96_88 = arith.constant 96 : index
    %76 = vector.load %arg9[%c0_87, %c96_88] : memref<256x288xf32, #tpu.memory_space<vmem>>, vector<256x32xf32>
    tpu.vector_store %arg9[%c0_87, %c96_88], %75 {strides = array<i32>} : memref<256x288xf32, #tpu.memory_space<vmem>>, vector<256x32xf32>,
    %c1_89 = arith.constant 1 : index
    %c1_90 = arith.constant 1 : index
    %c0_91 = arith.constant 0 : index
    %77 = vector.load %arg8[%c1_89, %c1_90, %c0_91] : memref<18x18x32xf32, #tpu.memory_space<vmem>>, vector<16x16x32xf32>
    %78 = vector.shape_cast %77 : vector<16x16x32xf32> to vector<256x32xf32>
    %c0_92 = arith.constant 0 : index
    %c128_93 = arith.constant 128 : index
    %79 = vector.load %arg9[%c0_92, %c128_93] : memref<256x288xf32, #tpu.memory_space<vmem>>, vector<256x32xf32>
    tpu.vector_store %arg9[%c0_92, %c128_93], %78 {strides = array<i32>} : memref<256x288xf32, #tpu.memory_space<vmem>>, vector<256x32xf32>,
    %c1_94 = arith.constant 1 : index
    %c2_95 = arith.constant 2 : index
    %c0_96 = arith.constant 0 : index
    %80 = vector.load %arg8[%c1_94, %c2_95, %c0_96] : memref<18x18x32xf32, #tpu.memory_space<vmem>>, vector<16x16x32xf32>
    %81 = vector.shape_cast %80 : vector<16x16x32xf32> to vector<256x32xf32>
    %c0_97 = arith.constant 0 : index
    %c160_98 = arith.constant 160 : index
    %82 = vector.load %arg9[%c0_97, %c160_98] : memref<256x288xf32, #tpu.memory_space<vmem>>, vector<256x32xf32>
    tpu.vector_store %arg9[%c0_97, %c160_98], %81 {strides = array<i32>} : memref<256x288xf32, #tpu.memory_space<vmem>>, vector<256x32xf32>,
    %c2_99 = arith.constant 2 : index
    %c0_100 = arith.constant 0 : index
    %c0_101 = arith.constant 0 : index
    %83 = vector.load %arg8[%c2_99, %c0_100, %c0_101] : memref<18x18x32xf32, #tpu.memory_space<vmem>>, vector<16x16x32xf32>
    %84 = vector.shape_cast %83 : vector<16x16x32xf32> to vector<256x32xf32>
    %c0_102 = arith.constant 0 : index
    %c192_103 = arith.constant 192 : index
    %85 = vector.load %arg9[%c0_102, %c192_103] : memref<256x288xf32, #tpu.memory_space<vmem>>, vector<256x32xf32>
    tpu.vector_store %arg9[%c0_102, %c192_103], %84 {strides = array<i32>} : memref<256x288xf32, #tpu.memory_space<vmem>>, vector<256x32xf32>,
    %c2_104 = arith.constant 2 : index
    %c1_105 = arith.constant 1 : index
    %c0_106 = arith.constant 0 : index
    %86 = vector.load %arg8[%c2_104, %c1_105, %c0_106] : memref<18x18x32xf32, #tpu.memory_space<vmem>>, vector<16x16x32xf32>
    %87 = vector.shape_cast %86 : vector<16x16x32xf32> to vector<256x32xf32>
    %c0_107 = arith.constant 0 : index
    %c224_108 = arith.constant 224 : index
    %88 = vector.load %arg9[%c0_107, %c224_108] : memref<256x288xf32, #tpu.memory_space<vmem>>, vector<256x32xf32>
    tpu.vector_store %arg9[%c0_107, %c224_108], %87 {strides = array<i32>} : memref<256x288xf32, #tpu.memory_space<vmem>>, vector<256x32xf32>,
    %c2_109 = arith.constant 2 : index
    %c2_110 = arith.constant 2 : index
    %c0_111 = arith.constant 0 : index
    %89 = vector.load %arg8[%c2_109, %c2_110, %c0_111] : memref<18x18x32xf32, #tpu.memory_space<vmem>>, vector<16x16x32xf32>
    %90 = vector.shape_cast %89 : vector<16x16x32xf32> to vector<256x32xf32>
    %c0_112 = arith.constant 0 : index
    %c256_113 = arith.constant 256 : index
    %91 = vector.load %arg9[%c0_112, %c256_113] : memref<256x288xf32, #tpu.memory_space<vmem>>, vector<256x32xf32>
    tpu.vector_store %arg9[%c0_112, %c256_113], %90 {strides = array<i32>} : memref<256x288xf32, #tpu.memory_space<vmem>>, vector<256x32xf32>,
    %c0_114 = arith.constant 0 : index
    %c0_115 = arith.constant 0 : index
    %92 = vector.load %arg9[%c0_114, %c0_115] : memref<256x288xf32, #tpu.memory_space<vmem>>, vector<256x288xf32>
    %c0_116 = arith.constant 0 : index
    %c0_117 = arith.constant 0 : index
    %93 = vector.load %arg3[%c0_116, %c0_117] : memref<288x32xf32, #tpu.memory_space<vmem>>, vector<288x32xf32>
    %cst_118 = arith.constant dense<0.000000e+00> : vector<256x32xf32>
    %94 = tpu.matmul %92, %93, %cst_118 {dimension_numbers = #tpu.dot_dimension_numbers<[1], [0], [0], [1], [0, 0, 1, 1], [], []>} : vector<256x288xf32>, vector<288x32xf32>, vector<256x32xf32> -> vector<256x32xf32>
    %c0_119 = arith.constant 0 : index
    %c0_120 = arith.constant 0 : index
    %95 = vector.load %arg4[%c0_119, %c0_120] : memref<1x32xf32, #tpu.memory_space<vmem>>, vector<1x32xf32>
    %96 = vector.broadcast %95 : vector<1x32xf32> to vector<256x32xf32>
    %97 = arith.addf %94, %96 : vector<256x32xf32>
    %cst_121 = arith.constant 0.000000e+00 : f32
    %98 = vector.broadcast %cst_121 : f32 to vector<256x32xf32>
    %99 = arith.cmpf oge, %97, %98 : vector<256x32xf32>
    %cst_122 = arith.constant 2.000000e-01 : f32
    %100 = vector.broadcast %cst_122 : f32 to vector<256x32xf32>
    %101 = arith.mulf %100, %97 : vector<256x32xf32>
    %102 = arith.select %99, %97, %101 : vector<256x32xi1>, vector<256x32xf32>
    %c0_123 = arith.constant 0 : index
    %c0_124 = arith.constant 0 : index
    %103 = vector.load %arg5[%c0_123, %c0_124] : memref<4x32xf32, #tpu.memory_space<vmem>>, vector<4x32xf32>
    %cst_125 = arith.constant dense<0.000000e+00> : vector<4x256xf32>
    %104 = tpu.matmul %103, %102, %cst_125 {dimension_numbers = #tpu.dot_dimension_numbers<[1], [1], [0], [0], [0, 0, 1, 0], [], []>} : vector<4x32xf32>, vector<256x32xf32>, vector<4x256xf32> -> vector<4x256xf32>
    %c0_126 = arith.constant 0 : index
    %c0_127 = arith.constant 0 : index
    %105 = vector.load %arg6[%c0_126, %c0_127] : memref<4x1xf32, #tpu.memory_space<vmem>>, vector<4x1xf32>
    %106 = vector.broadcast %105 : vector<4x1xf32> to vector<4x256xf32>
    %107 = arith.addf %104, %106 : vector<4x256xf32>
    %c1_128 = arith.constant 1 : index
    %c0_129 = arith.constant 0 : index
    %c0_130 = arith.constant 0 : index
    %108 = vector.load %arg7[%c1_128, %c0_129, %c0_130] : memref<2x4x256xf32, #tpu.memory_space<vmem>>, vector<1x4x256xf32>
    %109 = vector.shape_cast %108 : vector<1x4x256xf32> to vector<4x256xf32>
    %110 = vector.shape_cast %107 : vector<4x256xf32> to vector<1x4x256xf32>
    tpu.vector_store %arg7[%c1_128, %c0_129, %c0_130], %110 {strides = array<i32>} : memref<2x4x256xf32, #tpu.memory_space<vmem>>, vector<1x4x256xf32>,
    return
  }
}

</mosaic_0001>

<bundles_post_ra>
// kernel: tpu_custom_call.1
= control target key start
LH: loop header
LB: loop body
LE: loop exit
PB: predicated region body
PF: predicated region fallthrough
CT: control target
= control target key end

     0   :  { %vm292_vm0 = vcmask 1043456   ;;  %vm99_vm1 = vcmask 31744   ;;  %s9547_s0 = inlined_call_operand.vmem [shape: f32[512,4], index: 0, kind: input, shape index: {}]   ;;  %s9548_s1 = inlined_call_operand.vmem [shape: f32[4,32], index: 1, kind: input, shape index: {}]   ;;  %s9549_s2 = inlined_call_operand.vmem [shape: f32[1,32], index: 2, kind: input, shape index: {}]   ;;  %s9550_s3 = inlined_call_operand.vmem [shape: f32[288,32], index: 3, kind: input, shape index: {}]   ;;  %s9551_s4 = inlined_call_operand.vmem [shape: f32[1,32], index: 4, kind: input, shape index: {}]   ;;  %s9552_s5 = inlined_call_operand.vmem [shape: f32[4,32], index: 5, kind: input, shape index: {}]   ;;  %s9553_s6 = inlined_call_operand.vmem [shape: f32[4,1], index: 6, kind: input, shape index: {}]   ;;  %s9554_s7 = inlined_call_operand.hbm [shape: f32[2,4,256], index: 7, kind: output, shape index: {}]  }
   0x1   :  { %v91_v0 = vld [vmem:[%s9548_s1] sm:$0xf]  ;;  %v28_v2 = vld [vmem:[%s9547_s0 + $0x8] sm:$0xff]  ;;  %v29_v3 = vld [vmem:[%s9547_s0 + $0x10] sm:$0xff] }
   0x2   :  { %v27_v1 = vld [vmem:[%s9547_s0] sm:$0xff]  ;;  %6032 = vmatprep.subr.msk.mxu0 %vm292_vm0, %v91_v0  ;;  %v30_v4 = vld [vmem:[%s9547_s0 + $0x18] sm:$0xff]  ;;  %v32_v6 = vld [vmem:[%s9547_s0 + $0x28] sm:$0xff] }
   0x3   :  { %6034 = vmatprep.mubr.msk.f32.mxu0 %vm99_vm1, %v27_v1  ;;  %6033 = vmatpush3.msk.msra.mxu0 %vm292_vm0, %v91_v0  ;;  %v31_v5 = vld [vmem:[%s9547_s0 + $0x20] sm:$0xff]  ;;  %v33_v7 = vld [vmem:[%s9547_s0 + $0x30] sm:$0xff]  ;;  %v34_v8 = vld [vmem:[%s9547_s0 + $0x38] sm:$0xff] }
   0x4   :  { %6035 = vmatmul.mubr.msk.f32.vlgmr.msra.gmra.mrb[0].mxu0 %vm99_vm1, %v28_v2  ;;  %v35_v9 = vld [vmem:[%s9547_s0 + $0x40] sm:$0xff]  ;;  %v36_v10 = vld [vmem:[%s9547_s0 + $0x48] sm:$0xff]  ;;  %v37_v11 = vld [vmem:[%s9547_s0 + $0x50] sm:$0xff] }
   0x5   :  { %6037 = vmatprep.mubr.msk.f32.mxu0 %vm99_vm1, %v29_v3 }
   0x8   :  { %6038 = vmatmul.mubr.msk.f32.gmra.mrb[2].mxu0 %vm99_vm1, %v30_v4 }
   0x9   :  { %6040 = vmatprep.mubr.msk.f32.mxu0 %vm99_vm1, %v31_v5 }
   0xc   :  { %6041 = vmatmul.mubr.msk.f32.gmra.mrb[4].mxu0 %vm99_vm1, %v32_v6 }
   0xd   :  { %6043 = vmatprep.mubr.msk.f32.mxu0 %vm99_vm1, %v33_v7 }
  0x10   :  { %6044 = vmatmul.mubr.msk.f32.gmra.mrb[6].mxu0 %vm99_vm1, %v34_v8 }
  0x11   :  { %6046 = vmatprep.mubr.msk.f32.mxu0 %vm99_vm1, %v35_v9 }
  0x12   :  { %12 = vsyncpa [#allocation5], 0  ;;  %v38_v12 = vld [vmem:[%s9547_s0 + $0x58] sm:$0xff]  ;;  %v39_v13 = vld [vmem:[%s9547_s0 + $0x60] sm:$0xff]  ;;  %vm873_vm2 = vcmask 261120   ;;  %v6488_v43 = vmov 0.0  }
  0x13   :  { %v40_v14 = vld [vmem:[%s9547_s0 + $0x68] sm:$0xff]  ;;  %v41_v15 = vld [vmem:[%s9547_s0 + $0x70] sm:$0xff]  ;;  %v42_v16 = vld [vmem:[%s9547_s0 + $0x78] sm:$0xff]  ;;  %879 = vst.msk [vmem:[#allocation2 + $0x20] sm:$0xff] %vm873_vm2, %v6488_v43  ;;  %vm876_vm3 = vcmask 254976   ;;  %s6489_s22 = smov 64  }
  0x14   :  { %6047 = vmatmul.mubr.msk.f32.gmra.mrb[8].mxu0 %vm99_vm1, %v36_v10  ;;  %v43_v17 = vld [vmem:[%s9547_s0 + $0x80] sm:$0xff]  ;;  %v44_v18 = vld [vmem:[%s9547_s0 + $0x88] sm:$0xff]  ;;  %v45_v19 = vld [vmem:[%s9547_s0 + $0x90] sm:$0xff]  ;;  %874 = vst.msk [vmem:[#allocation2] sm:$0xff] %vm873_vm2, %v6488_v43  ;;  %s6490_s27 = smov 32   ;;  %vm1186_vm4 = vcmask 523520  }
  0x15   :  { %6049 = vmatprep.mubr.msk.f32.mxu0 %vm99_vm1, %v37_v11  ;;  %v46_v20 = vld [vmem:[%s9547_s0 + $0x98] sm:$0xff]  ;;  %v47_v21 = vld [vmem:[%s9547_s0 + $0xa0] sm:$0xff]  ;;  %v48_v22 = vld [vmem:[%s9547_s0 + $0xa8] sm:$0xff]  ;;  %875 = vst.msk [vmem:[#allocation2 + $0x8] sm:$0xff] %vm873_vm2, %v6488_v43  ;;  %vm1379_vm5 = vcmask 785920   ;;  %s6492_s23 = smov 96  }
  0x16   :  { %v49_v23 = vld [vmem:[%s9547_s0 + $0xb0] sm:$0xff]  ;;  %v50_v24 = vld [vmem:[%s9547_s0 + $0xb8] sm:$0xff]  ;;  %v51_v25 = vld [vmem:[%s9547_s0 + $0xc0] sm:$0xff]  ;;  %878 = vst.msk [vmem:[#allocation2 + $0x18] sm:$0xff] %vm873_vm2, %v6488_v43 }
  0x17   :  { %v52_v26 = vld [vmem:[%s9547_s0 + $0xc8] sm:$0xff]  ;;  %v53_v27 = vld [vmem:[%s9547_s0 + $0xd0] sm:$0xff]  ;;  %v54_v28 = vld [vmem:[%s9547_s0 + $0xd8] sm:$0xff]  ;;  %881 = vst.msk [vmem:[#allocation2 + $0x30] sm:$0xff] %vm873_vm2, %v6488_v43 }
  0x18   :  { %6050 = vmatmul.mubr.msk.f32.gmra.mrb[10].mxu0 %vm99_vm1, %v38_v12  ;;  %v55_v29 = vld [vmem:[%s9547_s0 + $0xe0] sm:$0xff]  ;;  %v56_v30 = vld [vmem:[%s9547_s0 + $0xe8] sm:$0xff]  ;;  %v57_v31 = vld [vmem:[%s9547_s0 + $0xf0] sm:$0xff]  ;;  %882 = vst.msk [vmem:[#allocation2 + $0x38] sm:$0xff] %vm873_vm2, %v6488_v43 }
  0x19   :  { %6052 = vmatprep.mubr.msk.f32.mxu0 %vm99_vm1, %v39_v13  ;;  %v58_v32 = vld [vmem:[%s9547_s0 + $0xf8] sm:$0xff]  ;;  %v59_v33 = vld [vmem:[%s9547_s0 + $0x100] sm:$0xff]  ;;  %v60_v34 = vld [vmem:[%s9547_s0 + $0x108] sm:$0xff]  ;;  %884 = vst.msk [vmem:[#allocation2 + $0x48] sm:$0xff] %vm873_vm2, %v6488_v43 }
  0x1a   :  { %v61_v35 = vld [vmem:[%s9547_s0 + $0x110] sm:$0xff]  ;;  %v62_v36 = vld [vmem:[%s9547_s0 + $0x118] sm:$0xff]  ;;  %v63_v37 = vld [vmem:[%s9547_s0 + $0x120] sm:$0xff]  ;;  %885 = vst.msk [vmem:[#allocation2 + $0x50] sm:$0xff] %vm873_vm2, %v6488_v43 }
  0x1b   :  { %v64_v38 = vld [vmem:[%s9547_s0 + $0x128] sm:$0xff]  ;;  %v65_v39 = vld [vmem:[%s9547_s0 + $0x130] sm:$0xff]  ;;  %v66_v40 = vld [vmem:[%s9547_s0 + $0x138] sm:$0xff]  ;;  %887 = vst.msk [vmem:[#allocation2 + $0x60] sm:$0xff] %vm873_vm2, %v6488_v43 }
  0x1c   :  { %6053 = vmatmul.mubr.msk.f32.gmra.mrb[12].mxu0 %vm99_vm1, %v40_v14  ;;  %v67_v41 = vld [vmem:[%s9547_s0 + $0x140] sm:$0xff]  ;;  %v68_v42 = vld [vmem:[%s9547_s0 + $0x148] sm:$0xff]  ;;  %888 = vst.msk [vmem:[#allocation2 + $0x68] sm:$0xff] %vm873_vm2, %v6488_v43  ;;  %890 = vst.msk [vmem:[#allocation2 + $0x78] sm:$0xff] %vm873_vm2, %v6488_v43  ;;  %v6491_v14 = vmov 0.0|0.0  }
  0x1d   :  { %6055 = vmatprep.mubr.msk.f32.mxu0 %vm99_vm1, %v41_v15  ;;  %891 = vst.msk [vmem:[#allocation2 + $0x80] sm:$0xff] %vm873_vm2, %v6488_v43  ;;  %893 = vst.msk [vmem:[#allocation2 + $0x90] sm:$0xff] %vm873_vm2, %v6488_v43  ;;  %v69_v44 = vld [vmem:[%s9547_s0 + $0x150] sm:$0xff]  ;;  %v70_v45 = vld [vmem:[%s9547_s0 + $0x158] sm:$0xff]  ;;  %6242 = vmatprep.subr.bf16.mxu1 %v6491_v14 }
  0x1e   :  { %894 = vst.msk [vmem:[#allocation2 + $0x98] sm:$0xff] %vm873_vm2, %v6488_v43  ;;  %896 = vst.msk [vmem:[#allocation2 + $0xa8] sm:$0xff] %vm873_vm2, %v6488_v43  ;;  %v71_v46 = vld [vmem:[%s9547_s0 + $0x160] sm:$0xff]  ;;  %v72_v48 = vld [vmem:[%s9547_s0 + $0x168] sm:$0xff] }
  0x1f   :  { %897 = vst.msk [vmem:[#allocation2 + $0xb0] sm:$0xff] %vm873_vm2, %v6488_v43  ;;  %899 = vst.msk [vmem:[#allocation2 + $0xc0] sm:$0xff] %vm873_vm2, %v6488_v43  ;;  %v1219_v47 = vld [vmem:[#allocation2 + $0x2] sm:$0xff]  ;;  %v73_v49 = vld [vmem:[%s9547_s0 + $0x170] sm:$0xff] }
  0x20   :  { %6056 = vmatmul.mubr.msk.f32.gmra.mrb[14].mxu0 %vm99_vm1, %v42_v16  ;;  %900 = vst.msk [vmem:[#allocation2 + $0xc8] sm:$0xff] %vm873_vm2, %v6488_v43  ;;  %902 = vst.msk [vmem:[#allocation2 + $0xd8] sm:$0xff] %vm873_vm2, %v6488_v43  ;;  %1283 = vrot.lane.b32.xlu1 %v1219_v47, %s6489_s22  ;;  %v74_v51 = vld [vmem:[%s9547_s0 + $0x178] sm:$0xff]  ;;  %v75_v52 = vld [vmem:[%s9547_s0 + $0x180] sm:$0xff] }
  0x21   :  { %6058 = vmatprep.mubr.msk.f32.mxu0 %vm99_vm1, %v43_v17  ;;  %903 = vst.msk [vmem:[#allocation2 + $0xe0] sm:$0xff] %vm873_vm2, %v6488_v43  ;;  %905 = vst.msk [vmem:[#allocation2 + $0xf0] sm:$0xff] %vm873_vm2, %v6488_v43  ;;  %v1026_v54 = vld [vmem:[#allocation2 + $0x1] sm:$0xff]  ;;  %v77_v56 = vld [vmem:[%s9547_s0 + $0x190] sm:$0xff] }
  0x22   :  { %906 = vst.msk [vmem:[#allocation2 + $0xf8] sm:$0xff] %vm873_vm2, %v6488_v43  ;;  %908 = vst.msk [vmem:[#allocation2 + $0x108] sm:$0xff] %vm873_vm2, %v6488_v43  ;;  %v76_v55 = vld [vmem:[%s9547_s0 + $0x188] sm:$0xff]  ;;  %1090 = vrot.lane.b32.xlu0 %v1026_v54, %s6490_s27  ;;  %v78_v57 = vld [vmem:[%s9547_s0 + $0x198] sm:$0xff] }
  0x23   :  { %909 = vst.msk [vmem:[#allocation2 + $0x110] sm:$0xff] %vm873_vm2, %v6488_v43  ;;  %911 = vst.msk [vmem:[#allocation2 + $0x120] sm:$0xff] %vm873_vm2, %v6488_v43  ;;  %v79_v58 = vld [vmem:[%s9547_s0 + $0x1a0] sm:$0xff]  ;;  %v2439_v60 = vld [vmem:[%s9550_s3 + $0x108] sm:$0xff] }
  0x24   :  { %6059 = vmatmul.mubr.msk.f32.gmra.mrb[16].mxu0 %vm99_vm1, %v44_v18  ;;  %912 = vst.msk [vmem:[#allocation2 + $0x128] sm:$0xff] %vm873_vm2, %v6488_v43  ;;  %914 = vst.msk [vmem:[#allocation2 + $0x138] sm:$0xff] %vm873_vm2, %v6488_v43  ;;  %v2438_v59 = vld [vmem:[%s9550_s3 + $0x100] sm:$0xff]  ;;  %v80_v61 = vld [vmem:[%s9547_s0 + $0x1a8] sm:$0xff] }
  0x25   :  { %6061 = vmatprep.mubr.msk.f32.mxu0 %vm99_vm1, %v45_v19  ;;  %915 = vst.msk [vmem:[#allocation2 + $0x140] sm:$0xff] %vm873_vm2, %v6488_v43  ;;  %917 = vst.msk [vmem:[#allocation2 + $0x150] sm:$0xff] %vm873_vm2, %v6488_v43  ;;  %v6290_v62 = vpack.c.bf16 %v2439_v60, %v2438_v59  ;;  %v81_v63 = vld [vmem:[%s9547_s0 + $0x1b0] sm:$0xff]  ;;  %v2441_v1 = vld [vmem:[%s9550_s3 + $0x118] sm:$0xff] }
  0x26   :  { %918 = vst.msk [vmem:[#allocation2 + $0x158] sm:$0xff] %vm873_vm2, %v6488_v43  ;;  %920 = vst.msk [vmem:[#allocation2 + $0x168] sm:$0xff] %vm873_vm2, %v6488_v43  ;;  %v2440_v0 = vld [vmem:[%s9550_s3 + $0x110] sm:$0xff]  ;;  %v82_v2 = vld [vmem:[%s9547_s0 + $0x1b8] sm:$0xff] }
  0x27   :  { %921 = vst.msk [vmem:[#allocation2 + $0x170] sm:$0xff] %vm873_vm2, %v6488_v43  ;;  %923 = vst.msk [vmem:[#allocation2 + $0x180] sm:$0xff] %vm873_vm2, %v6488_v43  ;;  %6291 = vmatprep.subr.bf16.mxu0 %v6290_v62  ;;  %v6294_v3 = vpack.c.bf16 %v2441_v1, %v2440_v0  ;;  %v83_v4 = vld [vmem:[%s9547_s0 + $0x1c0] sm:$0xff]  ;;  %v84_v5 = vld [vmem:[%s9547_s0 + $0x1c8] sm:$0xff] }
  0x28   :  { %6062 = vmatmul.mubr.msk.f32.gmra.mrb[18].mxu0 %vm99_vm1, %v46_v20  ;;  %924 = vst.msk [vmem:[#allocation2 + $0x188] sm:$0xff] %vm873_vm2, %v6488_v43  ;;  %926 = vst.msk [vmem:[#allocation2 + $0x198] sm:$0xff] %vm873_vm2, %v6488_v43  ;;  %v85_v6 = vld [vmem:[%s9547_s0 + $0x1d0] sm:$0xff]  ;;  %v86_v7 = vld [vmem:[%s9547_s0 + $0x1d8] sm:$0xff] }
  0x29   :  { %6064 = vmatprep.mubr.msk.f32.mxu0 %vm99_vm1, %v47_v21  ;;  %927 = vst.msk [vmem:[#allocation2 + $0x1a0] sm:$0xff] %vm873_vm2, %v6488_v43  ;;  %6293 = vmatpush3.bf16.msra.mxu0 %v6290_v62  ;;  %v87_v8 = vld [vmem:[%s9547_s0 + $0x1e0] sm:$0xff]  ;;  %v88_v9 = vld [vmem:[%s9547_s0 + $0x1e8] sm:$0xff]  ;;  %v89_v10 = vld [vmem:[%s9547_s0 + $0x1f0] sm:$0xff] }
  0x2a   :  { %880 = vst.msk [vmem:[#allocation2 + $0x28] sm:$0x3] %vm876_vm3, %v6488_v43  ;;  %877 = vst.msk [vmem:[#allocation2 + $0x10] sm:$0x3] %vm876_vm3, %v6488_v43  ;;  %6295 = vmatprep.subr.bf16.mxu0 %v6294_v3  ;;  %v90_v11 = vld [vmem:[%s9547_s0 + $0x1f8] sm:$0xff]  ;;  %v2406_v12 = vld [vmem:[%s9550_s3] sm:$0xff] }
  0x2b   :  { %883 = vst.msk [vmem:[#allocation2 + $0x40] sm:$0x3] %vm876_vm3, %v6488_v43  ;;  %886 = vst.msk [vmem:[#allocation2 + $0x58] sm:$0x3] %vm876_vm3, %v6488_v43  ;;  %v2407_v13 = vld [vmem:[%s9550_s3 + $0x8] sm:$0xff]  ;;  %v2408_v16 = vld [vmem:[%s9550_s3 + $0x10] sm:$0xff] }
  0x2c   :  { %6065 = vmatmul.mubr.msk.f32.gmra.mrb[20].mxu0 %vm99_vm1, %v48_v22  ;;  %889 = vst.msk [vmem:[#allocation2 + $0x70] sm:$0x3] %vm876_vm3, %v6488_v43  ;;  %892 = vst.msk [vmem:[#allocation2 + $0x88] sm:$0x3] %vm876_vm3, %v6488_v43  ;;  %v6243_v15 = vpack.c.bf16 %v2407_v13, %v2406_v12  ;;  %v2409_v17 = vld [vmem:[%s9550_s3 + $0x18] sm:$0xff]  ;;  %v2410_v19 = vld [vmem:[%s9550_s3 + $0x20] sm:$0xff] }
  0x2d   :  { %6067 = vmatprep.mubr.msk.f32.mxu0 %vm99_vm1, %v49_v23  ;;  %895 = vst.msk [vmem:[#allocation2 + $0xa0] sm:$0x3] %vm876_vm3, %v6488_v43  ;;  %898 = vst.msk [vmem:[#allocation2 + $0xb8] sm:$0x3] %vm876_vm3, %v6488_v43  ;;  %6297 = vmatpush3.bf16.msra.mxu0 %v6294_v3  ;;  %v6246_v18 = vpack.c.bf16 %v2409_v17, %v2408_v16  ;;  %v2411_v20 = vld [vmem:[%s9550_s3 + $0x28] sm:$0xff]  ;;  %v2412_v23 = vld [vmem:[%s9550_s3 + $0x30] sm:$0xff] }
  0x2e   :  { %901 = vst.msk [vmem:[#allocation2 + $0xd0] sm:$0x3] %vm876_vm3, %v6488_v43  ;;  %904 = vst.msk [vmem:[#allocation2 + $0xe8] sm:$0x3] %vm876_vm3, %v6488_v43  ;;  %6346 = vmatprep.subr.bf16.mxu0 %v6491_v14  ;;  %6244 = vmatpush1.bf16.msra.mxu1 %v6243_v15  ;;  %v6249_v21 = vpack.c.bf16 %v2411_v20, %v2410_v19  ;;  %v2421_v54 = vld [vmem:[%s9550_s3 + $0x78] sm:$0xff]  ;;  %v2422_v0 = vld [vmem:[%s9550_s3 + $0x80] sm:$0xff] }
  0x2f   :  { %907 = vst.msk [vmem:[#allocation2 + $0x100] sm:$0x3] %vm876_vm3, %v6488_v43  ;;  %910 = vst.msk [vmem:[#allocation2 + $0x118] sm:$0x3] %vm876_vm3, %v6488_v43  ;;  %6245 = vmatprep.subr.bf16.mxu1 %v6491_v14  ;;  %v2423_v1 = vld [vmem:[%s9550_s3 + $0x88] sm:$0xff]  ;;  %v2425_v19 = vld [vmem:[%s9550_s3 + $0x98] sm:$0xff] }
  0x30   :  { %6068 = vmatmul.mubr.msk.f32.gmra.mrb[22].mxu0 %vm99_vm1, %v50_v24  ;;  %913 = vst.msk [vmem:[#allocation2 + $0x130] sm:$0x3] %vm876_vm3, %v6488_v43  ;;  %916 = vst.msk [vmem:[#allocation2 + $0x148] sm:$0x3] %vm876_vm3, %v6488_v43  ;;  %v2413_v24 = vld [vmem:[%s9550_s3 + $0x38] sm:$0xff]  ;;  %v6267_v3 = vpack.c.bf16 %v2423_v1, %v2422_v0 }
  0x31   :  { %6070 = vmatprep.mubr.msk.f32.mxu0 %vm99_vm1, %v51_v25  ;;  %919 = vst.msk [vmem:[#allocation2 + $0x160] sm:$0x3] %vm876_vm3, %v6488_v43  ;;  %922 = vst.msk [vmem:[#allocation2 + $0x178] sm:$0x3] %vm876_vm3, %v6488_v43  ;;  %v1027_v50 = vld [vmem:[#allocation2 + $0x9] sm:$0xff] }
  0x32   :  { %925 = vst.msk [vmem:[#allocation2 + $0x190] sm:$0x3] %vm876_vm3, %v6488_v43  ;;  %928 = vst.msk [vmem:[#allocation2 + $0x1a8] sm:$0x3] %vm876_vm3, %v6488_v43  ;;  %1092 = vrot.lane.b32.xlu1 %v1027_v50, %s6490_s27  ;;  %v1220_v53 = vld [vmem:[#allocation2 + $0xa] sm:$0xff]  ;;  %6247 = vmatpush1.bf16.msra.mxu1 %v6246_v18 }
  0x33   :  { %6248 = vmatprep.subr.bf16.mxu1 %v6491_v14  ;;  %v963_v25 = vld [vmem:[#allocation2 + $0x8] sm:$0xff]  ;;  %v2424_v18 = vld [vmem:[%s9550_s3 + $0x90] sm:$0xff] }
  0x34   :  { %6071 = vmatmul.mubr.msk.f32.gmra.mrb[24].mxu0 %vm99_vm1, %v52_v26  ;;  %v6252_v26 = vpack.c.bf16 %v2413_v24, %v2412_v23  ;;  %995 = vst.msk [vmem:[#allocation3 + $0x18] sm:$0xff] %vm873_vm2, %v963_v25  ;;  %v2419_v43 = vld [vmem:[%s9550_s3 + $0x68] sm:$0xff] }
  0x35   :  { %6073 = vmatprep.mubr.msk.f32.mxu0 %vm99_vm1, %v53_v27 }
  0x36   :  { %1285 = vrot.lane.b32.xlu1 %v1220_v53, %s6489_s22  ;;  %6250 = vmatpush1.bf16.msra.mxu1 %v6249_v21  ;;  %v2420_v53 = vld [vmem:[%s9550_s3 + $0x70] sm:$0xff] }
  0x37   :  { %6251 = vmatprep.subr.bf16.mxu1 %v6491_v14 }
  0x38   :  { %6074 = vmatmul.mubr.msk.f32.gmra.mrb[26].mxu0 %vm99_vm1, %v54_v28  ;;  %v2414_v28 = vld [vmem:[%s9550_s3 + $0x40] sm:$0xff] }
  0x39   :  { %6076 = vmatprep.mubr.msk.f32.mxu0 %vm99_vm1, %v55_v29  ;;  %v2415_v29 = vld [vmem:[%s9550_s3 + $0x48] sm:$0xff] }
  0x3a   :  { %6253 = vmatpush1.bf16.msra.mxu1 %v6252_v26 }
  0x3b   :  { %6254 = vmatprep.subr.bf16.mxu1 %v6491_v14 }
  0x3c   :  { %6077 = vmatmul.mubr.msk.f32.gmra.mrb[28].mxu0 %vm99_vm1, %v56_v30  ;;  %v962_v30 = vld [vmem:[#allocation2] sm:$0xff] }
  0x3d   :  { %6079 = vmatprep.mubr.msk.f32.mxu0 %vm99_vm1, %v57_v31  ;;  %v6255_v31 = vpack.c.bf16 %v2415_v29, %v2414_v28  ;;  %994 = vst.msk [vmem:[#allocation3] sm:$0xff] %vm873_vm2, %v962_v30 }
  0x3f   :  { %6256 = vmatpush1.bf16.msra.mxu1 %v6255_v31 }
  0x40   :  { %6080 = vmatmul.mubr.msk.f32.gmra.mrb[30].mxu0 %vm99_vm1, %v58_v32  ;;  %6257 = vmatprep.subr.bf16.mxu1 %v6491_v14 }
  0x41   :  { %6082 = vmatprep.mubr.msk.f32.mxu0 %vm99_vm1, %v59_v33 }
  0x44   :  { %6083 = vmatmul.mubr.msk.f32.gmra.mrb[32].mxu0 %vm99_vm1, %v60_v34  ;;  %v6909_v34 = vld [vmem:[%s9549_s2] ss:$0 sm:$0xff] }
  0x45   :  { %6085 = vmatprep.mubr.msk.f32.mxu0 %vm99_vm1, %v61_v35  ;;  %v2416_v35 = vld [vmem:[%s9550_s3 + $0x50] sm:$0xff] }
  0x48   :  { %6086 = vmatmul.mubr.msk.f32.gmra.mrb[34].mxu0 %vm99_vm1, %v62_v36  ;;  %v2417_v36 = vld [vmem:[%s9550_s3 + $0x58] sm:$0xff] }
  0x49   :  { %6088 = vmatprep.mubr.msk.f32.mxu0 %vm99_vm1, %v63_v37  ;;  %v6258_v37 = vpack.c.bf16 %v2417_v36, %v2416_v35 }
  0x4b   :  { %6259 = vmatpush1.bf16.msra.mxu1 %v6258_v37  ;;  %v2426_v37 = vld [vmem:[%s9550_s3 + $0xa0] sm:$0xff] }
  0x4c   :  { %6089 = vmatmul.mubr.msk.f32.gmra.mrb[36].mxu0 %vm99_vm1, %v64_v38  ;;  %6260 = vmatprep.subr.bf16.mxu1 %v6491_v14 }
  0x4d   :  { %6091 = vmatprep.mubr.msk.f32.mxu0 %vm99_vm1, %v65_v39 }
  0x50   :  { %6092 = vmatmul.mubr.msk.f32.gmra.mrb[38].mxu0 %vm99_vm1, %v66_v40 }
  0x51   :  { %6094 = vmatprep.mubr.msk.f32.mxu0 %vm99_vm1, %v67_v41 }
  0x54   :  { %6095 = vmatmul.mubr.msk.f32.gmra.mrb[40].mxu0 %vm99_vm1, %v68_v42  ;;  %v2418_v42 = vld [vmem:[%s9550_s3 + $0x60] sm:$0xff] }
  0x55   :  { %6097 = vmatprep.mubr.msk.f32.mxu0 %vm99_vm1, %v69_v44 }
  0x58   :  { %6098 = vmatmul.mubr.msk.f32.gmra.mrb[42].mxu0 %vm99_vm1, %v70_v45  ;;  %v6261_v45 = vpack.c.bf16 %v2419_v43, %v2418_v42 }
  0x59   :  { %6100 = vmatprep.mubr.msk.f32.mxu0 %vm99_vm1, %v71_v46 }
  0x5a   :  { %6262 = vmatpush1.bf16.msra.mxu1 %v6261_v45 }
  0x5b   :  { %6263 = vmatprep.subr.bf16.mxu1 %v6491_v14 }
  0x5c   :  { %6101 = vmatmul.mubr.msk.f32.gmra.mrb[44].mxu0 %vm99_vm1, %v72_v48 }
  0x5d   :  { %6103 = vmatprep.mubr.msk.f32.mxu0 %vm99_vm1, %v73_v49 }
  0x60   :  { %6104 = vmatmul.mubr.msk.f32.gmra.mrb[46].mxu0 %vm99_vm1, %v74_v51 }
  0x61   :  { %6106 = vmatprep.mubr.msk.f32.mxu0 %vm99_vm1, %v75_v52 }
  0x64   :  { %6107 = vmatmul.mubr.msk.f32.gmra.mrb[48].mxu0 %vm99_vm1, %v76_v55 }
  0x65   :  { %6109 = vmatprep.mubr.msk.f32.mxu0 %vm99_vm1, %v77_v56  ;;  %v6264_v56 = vpack.c.bf16 %v2421_v54, %v2420_v53  ;;  %v2428_v54 = vld [vmem:[%s9550_s3 + $0xb0] sm:$0xff] }
  0x67   :  { %6265 = vmatpush1.bf16.msra.mxu1 %v6264_v56 }
  0x68   :  { %6110 = vmatmul.mubr.msk.f32.gmra.mrb[50].mxu0 %vm99_vm1, %v78_v57  ;;  %6266 = vmatprep.subr.bf16.mxu1 %v6491_v14 }
  0x69   :  { %6112 = vmatprep.mubr.msk.f32.mxu0 %vm99_vm1, %v79_v58 }
  0x6b   :  { %6268 = vmatpush1.bf16.msra.mxu1 %v6267_v3 }
  0x6c   :  { %6113 = vmatmul.mubr.msk.f32.gmra.mrb[52].mxu0 %vm99_vm1, %v80_v61  ;;  %6269 = vmatprep.subr.bf16.mxu1 %v6491_v14 }
  0x6d   :  { %6115 = vmatprep.mubr.msk.f32.mxu0 %vm99_vm1, %v81_v63 }
  0x70   :  { %6116 = vmatmul.mubr.msk.f32.gmra.mrb[54].mxu0 %vm99_vm1, %v82_v2 }
  0x71   :  { %6118 = vmatprep.mubr.msk.f32.mxu0 %vm99_vm1, %v83_v4 }
  0x74   :  { %6119 = vmatmul.mubr.msk.f32.gmra.mrb[56].mxu0 %vm99_vm1, %v84_v5 }
  0x75   :  { %6121 = vmatprep.mubr.msk.f32.mxu0 %vm99_vm1, %v85_v6 }
  0x78   :  { %6122 = vmatmul.mubr.msk.f32.gmra.mrb[58].mxu0 %vm99_vm1, %v86_v7 }
  0x79   :  { %6124 = vmatprep.mubr.msk.f32.mxu0 %vm99_vm1, %v87_v8 }
  0x7c   :  { %6125 = vmatmul.mubr.msk.f32.gmra.mrb[60].mxu0 %vm99_vm1, %v88_v9 }
  0x7d   :  { %6127 = vmatprep.mubr.msk.f32.mxu0 %vm99_vm1, %v89_v10 }
  0x80   :  { %6128 = vmatmul.mubr.msk.f32.gmra.mrb[62].mxu0 %vm99_vm1, %v90_v11 }
  0x92   :  { %v1284_v22 = vpop.permute.xlu1 %1283 }
  0x94   :  { %v1091_v33 = vpop.permute.xlu0 %1090 }
  0x95   :  { %1187 = vst.msk [vmem:[#allocation3] sm:$0xff] %vm1186_vm4, %v1091_v33 }
  0x96   :  { %1380 = vst.msk [vmem:[#allocation3] sm:$0xff] %vm1379_vm5, %v1284_v22  ;;  %v6270_v22 = vpack.c.bf16 %v2425_v19, %v2424_v18 }
  0x98   :  { %6271 = vmatpush1.bf16.msra.mxu1 %v6270_v22 }
  0x99   :  { %6272 = vmatprep.subr.bf16.mxu1 %v6491_v14 }
  0xa4   :  { %v1093_v27 = vpop.permute.xlu1 %1092 }
  0xa5   :  { %1188 = vst.msk [vmem:[#allocation3 + $0x18] sm:$0xff] %vm1186_vm4, %v1093_v27 }
  0xa8   :  { %v1286_v32 = vpop.permute.xlu1 %1285 }
  0xa9   :  { %1381 = vst.msk [vmem:[#allocation3 + $0x18] sm:$0xff] %vm1379_vm5, %v1286_v32 }
  0xd7   :  { %v6036_v38 = vpop.f32.mrb[0].mxu0 }
  0xd8   :  { %v368_v39 = vadd.f32 %v6036_v38, %v6909_v34  ;;  %v362_v40 = vpop.f32.mrb[1].mxu0  ;;  %v2427_v38 = vld [vmem:[%s9550_s3 + $0xa8] sm:$0xff] }
  0xd9   :  { %v363_v41 = vadd.f32 %v6909_v34, %v362_v40 }
  0xda   :  { %vm682_vm6 = vcmp.ge.f32.partialorder %v368_v39, 0.0  ;;  %v746_v44 = vmul.f32 0.2, %v368_v39 }
  0xdb   :  { %vm681_vm7 = vcmp.ge.f32.partialorder %v363_v41, 0.0  ;;  %v745_v46 = vmul.f32 0.2, %v363_v41  ;;  %v6039_v47 = vpop.f32.mrb[2].mxu0 }
  0xdc   :  { %v810_v48 = vsel %vm682_vm6, %v368_v39, %v746_v44  ;;  %v378_v49 = vadd.f32 %v6039_v47, %v6909_v34  ;;  %v372_v50 = vpop.f32.mrb[3].mxu0 }
  0xdd   :  { %931 = vst.msk [vmem:[#allocation2 + $0x21] sm:$0xff] %vm873_vm2, %v810_v48  ;;  %v809_v51 = vsel %vm681_vm7, %v363_v41, %v745_v46  ;;  %v373_v52 = vadd.f32 %v6909_v34, %v372_v50  ;;  %v6273_v41 = vpack.c.bf16 %v2427_v38, %v2426_v37 }
  0xde   :  { %930 = vst.msk [vmem:[#allocation2 + $0x19] sm:$0xff] %vm873_vm2, %v809_v51  ;;  %vm684_vm8 = vcmp.ge.f32.partialorder %v378_v49, 0.0  ;;  %v748_v55 = vmul.f32 0.2, %v378_v49 }
  0xdf   :  { %vm683_vm9 = vcmp.ge.f32.partialorder %v373_v52, 0.0  ;;  %v747_v57 = vmul.f32 0.2, %v373_v52  ;;  %v6042_v58 = vpop.f32.mrb[4].mxu0  ;;  %6274 = vmatpush1.bf16.msra.mxu1 %v6273_v41 }
  0xe0   :  { %v812_v59 = vsel %vm684_vm8, %v378_v49, %v748_v55  ;;  %v388_v60 = vadd.f32 %v6042_v58, %v6909_v34  ;;  %v382_v61 = vpop.f32.mrb[5].mxu0  ;;  %v2429_v55 = vld [vmem:[%s9550_s3 + $0xb8] sm:$0xff]  ;;  %6275 = vmatprep.subr.bf16.mxu1 %v6491_v14 }
  0xe1   :  { %933 = vst.msk [vmem:[#allocation2 + $0x39] sm:$0xff] %vm873_vm2, %v812_v59  ;;  %v811_v62 = vsel %vm683_vm9, %v373_v52, %v747_v57  ;;  %v383_v63 = vadd.f32 %v6909_v34, %v382_v61  ;;  %v6276_v58 = vpack.c.bf16 %v2429_v55, %v2428_v54 }
  0xe2   :  { %932 = vst.msk [vmem:[#allocation2 + $0x31] sm:$0xff] %vm873_vm2, %v811_v62  ;;  %vm686_vm10 = vcmp.ge.f32.partialorder %v388_v60, 0.0  ;;  %v750_v2 = vmul.f32 0.2, %v388_v60 }
  0xe3   :  { %vm685_vm11 = vcmp.ge.f32.partialorder %v383_v63, 0.0  ;;  %v749_v4 = vmul.f32 0.2, %v383_v63  ;;  %v6045_v5 = vpop.f32.mrb[6].mxu0  ;;  %6277 = vmatpush1.bf16.msra.mxu1 %v6276_v58 }
  0xe4   :  { %v1670_v6 = vld [vmem:[#allocation2 + $0x22] sm:$0xff]  ;;  %v814_v8 = vsel %vm686_vm10, %v388_v60, %v750_v2  ;;  %v398_v9 = vadd.f32 %v6045_v5, %v6909_v34  ;;  %v392_v10 = vpop.f32.mrb[7].mxu0  ;;  %6278 = vmatprep.subr.bf16.mxu1 %v6491_v14 }
  0xe5   :  { %v1029_v7 = vld [vmem:[#allocation2 + $0x21] sm:$0xff]  ;;  %1735 = vrot.lane.b32.xlu0 %v1670_v6, %s6490_s27  ;;  %v1412_v11 = vld [vmem:[#allocation2 + $0x18] sm:$0xff]  ;;  %935 = vst.msk [vmem:[#allocation2 + $0x51] sm:$0xff] %vm873_vm2, %v814_v8  ;;  %v813_v12 = vsel %vm685_vm11, %v383_v63, %v749_v4  ;;  %v393_v15 = vadd.f32 %v6909_v34, %v392_v10 }
  0xe6   :  { %1096 = vrot.lane.b32.xlu1 %v1029_v7, %s6490_s27  ;;  %v6955_v13 = vld [vmem:[#allocation2 + $0x20] sm:$0xff]  ;;  %1638 = vst.msk [vmem:[#allocation3 + $0x20] sm:$0xff] %vm873_vm2, %v1029_v7  ;;  %934 = vst.msk [vmem:[#allocation2 + $0x49] sm:$0xff] %vm873_vm2, %v813_v12  ;;  %vm688_vm12 = vcmp.ge.f32.partialorder %v398_v9, 0.0  ;;  %v752_v17 = vmul.f32 0.2, %v398_v9 }
  0xe7   :  { %v6960_v16 = vld [vmem:[#allocation2 + $0x19] sm:$0xff]  ;;  %997 = vst.msk [vmem:[#allocation3 + $0x48] sm:$0xff] %vm873_vm2, %v6955_v13  ;;  %996 = vst.msk [vmem:[#allocation3 + $0x30] sm:$0xff] %vm873_vm2, %v1412_v11  ;;  %vm687_vm13 = vcmp.ge.f32.partialorder %v393_v15, 0.0  ;;  %v751_v20 = vmul.f32 0.2, %v393_v15 }
  0xe8   :  { %v6048_v21 = vpop.f32.mrb[8].mxu0  ;;  %1637 = vst.msk [vmem:[#allocation3 + $0x8] sm:$0xff] %vm873_vm2, %v6960_v16  ;;  %v6974_v23 = vld [vmem:[#allocation2 + $0x3a] sm:$0xff]  ;;  %v816_v26 = vsel %vm688_vm12, %v398_v9, %v752_v17 }
  0xe9   :  { %v6976_v24 = vld [vmem:[#allocation2 + $0x1a] sm:$0xff]  ;;  %v408_v27 = vadd.f32 %v6048_v21, %v6909_v34  ;;  %v402_v28 = vpop.f32.mrb[9].mxu0  ;;  %2279 = vst.msk [vmem:[#allocation3 + $0x28] sm:$0xff] %vm873_vm2, %v6974_v23  ;;  %v6986_v29 = vld [vmem:[#allocation2 + $0x32] sm:$0xff]  ;;  %937 = vst.msk [vmem:[#allocation2 + $0x69] sm:$0xff] %vm873_vm2, %v816_v26  ;;  %v815_v32 = vsel %vm687_vm13, %v393_v15, %v751_v20 }
  0xea   :  { %v6978_v25 = vld [vmem:[#allocation2 + $0x39] sm:$0xff]  ;;  %1289 = vrot.lane.b32.xlu1 %v1670_v6, %s6489_s22  ;;  %1733 = vrot.lane.b32.xlu0 %v6976_v24, %s6490_s27  ;;  %v6988_v30 = vld [vmem:[#allocation2 + $0x31] sm:$0xff]  ;;  %v403_v33 = vadd.f32 %v6909_v34, %v402_v28  ;;  %2278 = vst.msk [vmem:[#allocation3 + $0x10] sm:$0xff] %vm873_vm2, %v6986_v29  ;;  %936 = vst.msk [vmem:[#allocation2 + $0x61] sm:$0xff] %vm873_vm2, %v815_v32 }
  0xeb   :  { %v6990_v31 = vld [vmem:[#allocation2 + $0x38] sm:$0xff]  ;;  %1640 = vst.msk [vmem:[#allocation3 + $0x50] sm:$0xff] %vm873_vm2, %v6978_v25  ;;  %v6999_v35 = vld [vmem:[#allocation2 + $0x30] sm:$0xff]  ;;  %vm690_vm14 = vcmp.ge.f32.partialorder %v408_v27, 0.0  ;;  %v754_v36 = vmul.f32 0.2, %v408_v27 }
  0xec   :  { %1639 = vst.msk [vmem:[#allocation3 + $0x38] sm:$0xff] %vm873_vm2, %v6988_v30  ;;  %999 = vst.msk [vmem:[#allocation3 + $0x78] sm:$0xff] %vm873_vm2, %v6990_v31  ;;  %vm689_vm15 = vcmp.ge.f32.partialorder %v403_v33, 0.0  ;;  %v753_v39 = vmul.f32 0.2, %v403_v33  ;;  %v6051_v40 = vpop.f32.mrb[10].mxu0 }
  0xed   :  { %998 = vst.msk [vmem:[#allocation3 + $0x60] sm:$0xff] %vm873_vm2, %v6999_v35  ;;  %v7015_v42 = vld [vmem:[#allocation2 + $0x51] sm:$0xff]  ;;  %v818_v44 = vsel %vm690_vm14, %v408_v27, %v754_v36  ;;  %v418_v45 = vadd.f32 %v6051_v40, %v6909_v34  ;;  %v412_v46 = vpop.f32.mrb[11].mxu0  ;;  %v7027_v48 = vld [vmem:[#allocation2 + $0x48] sm:$0xff]  ;;  %v2430_v8 = vld [vmem:[%s9550_s3 + $0xc0] sm:$0xff] }
  0xee   :  { %v7017_v43 = vld [vmem:[#allocation2 + $0x52] sm:$0xff]  ;;  %2120 = vrot.lane.b32.xlu0 %v6978_v25, %s6492_s23  ;;  %1476 = vrot.lane.b32.xlu1 %v1412_v11, %s6492_s23  ;;  %v7023_v47 = vld [vmem:[#allocation2 + $0x4a] sm:$0xff]  ;;  %939 = vst.msk [vmem:[#allocation2 + $0x81] sm:$0xff] %vm873_vm2, %v818_v44  ;;  %v817_v50 = vsel %vm689_vm15, %v403_v33, %v753_v39  ;;  %v413_v51 = vadd.f32 %v6909_v34, %v412_v46  ;;  %1642 = vst.msk [vmem:[#allocation3 + $0x80] sm:$0xff] %vm873_vm2, %v7015_v42 }
  0xef   :  { %2281 = vst.msk [vmem:[#allocation3 + $0x58] sm:$0xff] %vm873_vm2, %v7017_v43  ;;  %v7029_v49 = vld [vmem:[#allocation2 + $0x49] sm:$0xff]  ;;  %2280 = vst.msk [vmem:[#allocation3 + $0x40] sm:$0xff] %vm873_vm2, %v7023_v47  ;;  %vm692_vm0 = vcmp.ge.f32.partialorder %v418_v45, 0.0  ;;  %v756_v53 = vmul.f32 0.2, %v418_v45 }
  0xf0   :  { %v7038_v52 = vld [vmem:[#allocation2 + $0x50] sm:$0xff]  ;;  %938 = vst.msk [vmem:[#allocation2 + $0x79] sm:$0xff] %vm873_vm2, %v817_v50  ;;  %1641 = vst.msk [vmem:[#allocation3 + $0x68] sm:$0xff] %vm873_vm2, %v7029_v49  ;;  %vm691_vm1 = vcmp.ge.f32.partialorder %v413_v51, 0.0  ;;  %v755_v56 = vmul.f32 0.2, %v413_v51 }
  0xf1   :  { %1000 = vst.msk [vmem:[#allocation3 + $0x90] sm:$0xff] %vm873_vm2, %v7027_v48  ;;  %v6054_v57 = vpop.f32.mrb[12].mxu0  ;;  %1001 = vst.msk [vmem:[#allocation3 + $0xa8] sm:$0xff] %vm873_vm2, %v7038_v52  ;;  %v2315_v59 = vld [vmem:[#allocation3 + $0x28] sm:$0xff]  ;;  %v7054_v60 = vld [vmem:[#allocation2 + $0x69] sm:$0xff]  ;;  %v820_v62 = vsel %vm692_vm0, %v418_v45, %v756_v53 }
  0xf2   :  { %v7056_v61 = vld [vmem:[#allocation2 + $0x6a] sm:$0xff]  ;;  %v428_v63 = vadd.f32 %v6054_v57, %v6909_v34  ;;  %v422_v0 = vpop.f32.mrb[13].mxu0  ;;  %1739 = vrot.lane.b32.xlu0 %v6974_v23, %s6490_s27  ;;  %1478 = vrot.lane.b32.xlu1 %v6955_v13, %s6492_s23  ;;  %v2312_v1 = vld [vmem:[#allocation3 + $0x10] sm:$0xff]  ;;  %941 = vst.msk [vmem:[#allocation2 + $0x99] sm:$0xff] %vm873_vm2, %v820_v62  ;;  %v819_v3 = vsel %vm691_vm1, %v413_v51, %v755_v56  ;;  %1644 = vst.msk [vmem:[#allocation3 + $0xb0] sm:$0xff] %vm873_vm2, %v7054_v60 }
  0xf3   :  { %v7064_v2 = vld [vmem:[#allocation2 + $0x62] sm:$0xff]  ;;  %2283 = vst.msk [vmem:[#allocation3 + $0x88] sm:$0xff] %vm873_vm2, %v7056_v61  ;;  %v423_v4 = vadd.f32 %v6909_v34, %v422_v0  ;;  %6138 = vmatprep.mubr.msk.f32.mxu0 %vm873_vm2, %v2312_v1  ;;  %940 = vst.msk [vmem:[#allocation2 + $0x91] sm:$0xff] %vm873_vm2, %v819_v3  ;;  %v6057_v10 = vpop.f32.mrb[14].mxu0  ;;  %v2432_v28 = vld [vmem:[%s9550_s3 + $0xd0] sm:$0xff] }
  0xf4   :  { %2282 = vst.msk [vmem:[#allocation3 + $0x70] sm:$0xff] %vm873_vm2, %v7064_v2  ;;  %v7076_v5 = vld [vmem:[#allocation2 + $0x61] sm:$0xff]  ;;  %vm694_vm3 = vcmp.ge.f32.partialorder %v428_v63, 0.0  ;;  %v758_v7 = vmul.f32 0.2, %v428_v63  ;;  %6139 = vmatmul.mubr.msk.f32.vlgmr.msra.gmra.mrb[64].mxu0 %vm873_vm2, %v2315_v59  ;;  %v438_v18 = vadd.f32 %v6057_v10, %v6909_v34  ;;  %v432_v19 = vpop.f32.mrb[15].mxu0 }
  0xf5   :  { %v7078_v6 = vld [vmem:[#allocation2 + $0x68] sm:$0xff]  ;;  %vm693_vm6 = vcmp.ge.f32.partialorder %v423_v4, 0.0  ;;  %v757_v9 = vmul.f32 0.2, %v423_v4  ;;  %1643 = vst.msk [vmem:[#allocation3 + $0x98] sm:$0xff] %vm873_vm2, %v7076_v5  ;;  %v970_v12 = vld [vmem:[#allocation2 + $0x60] sm:$0xff]  ;;  %v433_v27 = vadd.f32 %v6909_v34, %v432_v19 }
  0xf6   :  { %v2431_v11 = vld [vmem:[%s9550_s3 + $0xc8] sm:$0xff]  ;;  %1003 = vst.msk [vmem:[#allocation3 + $0xd8] sm:$0xff] %vm873_vm2, %v7078_v6  ;;  %v822_v17 = vsel %vm694_vm3, %v428_v63, %v758_v7  ;;  %1002 = vst.msk [vmem:[#allocation3 + $0xc0] sm:$0xff] %vm873_vm2, %v970_v12  ;;  %2118 = vrot.lane.b32.xlu0 %v6988_v30, %s6492_s23  ;;  %1094 = vrot.lane.b32.xlu1 %v6960_v16, %s6490_s27  ;;  %v2318_v21 = vld [vmem:[#allocation3 + $0x40] sm:$0xff]  ;;  %vm696_vm7 = vcmp.ge.f32.partialorder %v438_v18, 0.0 }
  0xf7   :  { %v2321_v13 = vld [vmem:[#allocation3 + $0x58] sm:$0xff]  ;;  %v6279_v20 = vpack.c.bf16 %v2431_v11, %v2430_v8  ;;  %v7101_v22 = vld [vmem:[#allocation2 + $0x7a] sm:$0xff]  ;;  %943 = vst.msk [vmem:[#allocation2 + $0xb1] sm:$0xff] %vm873_vm2, %v822_v17  ;;  %v821_v26 = vsel %vm693_vm6, %v423_v4, %v757_v9  ;;  %6141 = vmatprep.mubr.msk.f32.mxu0 %vm873_vm2, %v2318_v21  ;;  %v760_v16 = vmul.f32 0.2, %v438_v18  ;;  %vm695_vm8 = vcmp.ge.f32.partialorder %v433_v27, 0.0 }
  0xf8   :  { %v7093_v15 = vld [vmem:[#allocation2 + $0x82] sm:$0xff]  ;;  %2284 = vst.msk [vmem:[#allocation3 + $0xa0] sm:$0xff] %vm873_vm2, %v7101_v22  ;;  %942 = vst.msk [vmem:[#allocation2 + $0xa9] sm:$0xff] %vm873_vm2, %v821_v26  ;;  %6142 = vmatmul.mubr.msk.f32.gmra.mrb[66].mxu0 %vm873_vm2, %v2321_v13  ;;  %v759_v32 = vmul.f32 0.2, %v433_v27  ;;  %v2433_v33 = vld [vmem:[%s9550_s3 + $0xd8] sm:$0xff] }
  0xf9   :  { %2285 = vst.msk [vmem:[#allocation3 + $0xb8] sm:$0xff] %vm873_vm2, %v7093_v15  ;;  %6280 = vmatpush1.bf16.msra.mxu1 %v6279_v20  ;;  %v1614_v36 = vld [vmem:[#allocation2 + $0x81] sm:$0xff]  ;;  %v1613_v37 = vld [vmem:[#allocation2 + $0x79] sm:$0xff]  ;;  %v824_v40 = vsel %vm696_vm7, %v438_v18, %v760_v16  ;;  %v6282_v41 = vpack.c.bf16 %v2433_v33, %v2432_v28  ;;  %v6060_v59 = vpop.f32.mrb[16].mxu0 }
  0xfa   :  { %6281 = vmatprep.subr.bf16.mxu1 %v6491_v14  ;;  %v2327_v38 = vld [vmem:[#allocation3 + $0x88] sm:$0xff]  ;;  %1646 = vst.msk [vmem:[#allocation3 + $0xe0] sm:$0xff] %vm873_vm2, %v1614_v36  ;;  %1645 = vst.msk [vmem:[#allocation3 + $0xc8] sm:$0xff] %vm873_vm2, %v1613_v37  ;;  %1928 = vrot.lane.b32.xlu0 %v6990_v31, %s6489_s22  ;;  %v823_v46 = vsel %vm695_vm8, %v433_v27, %v759_v32  ;;  %v2435_v50 = vld [vmem:[%s9550_s3 + $0xe8] sm:$0xff]  ;;  %v448_v62 = vadd.f32 %v6060_v59, %v6909_v34  ;;  %v442_v63 = vpop.f32.mrb[17].mxu0 }
  0xfb   :  { %v7120_v39 = vld [vmem:[#allocation2 + $0x9a] sm:$0xff]  ;;  %1287 = vrot.lane.b32.xlu1 %v6976_v24, %s6489_s22  ;;  %v7128_v45 = vld [vmem:[#allocation2 + $0x92] sm:$0xff]  ;;  %945 = vst.msk [vmem:[#allocation2 + $0xc9] sm:$0xff] %vm873_vm2, %v824_v40  ;;  %944 = vst.msk [vmem:[#allocation2 + $0xc1] sm:$0xff] %vm873_vm2, %v823_v46  ;;  %v443_v0 = vadd.f32 %v6909_v34, %v442_v63 }
  0xfc   :  { %v2324_v44 = vld [vmem:[#allocation3 + $0x70] sm:$0xff]  ;;  %2287 = vst.msk [vmem:[#allocation3 + $0xe8] sm:$0xff] %vm873_vm2, %v7120_v39  ;;  %2286 = vst.msk [vmem:[#allocation3 + $0xd0] sm:$0xff] %vm873_vm2, %v7128_v45  ;;  %v2437_v1 = vld [vmem:[%s9550_s3 + $0xf8] sm:$0xff]  ;;  %vm698_vm9 = vcmp.ge.f32.partialorder %v448_v62, 0.0 }
  0xfd   :  { %6144 = vmatprep.mubr.msk.f32.mxu0 %vm873_vm2, %v2324_v44  ;;  %6283 = vmatpush1.bf16.msra.mxu1 %v6282_v41  ;;  %v2434_v24 = vld [vmem:[%s9550_s3 + $0xe0] sm:$0xff]  ;;  %v972_v3 = vld [vmem:[#allocation2 + $0x78] sm:$0xff]  ;;  %v762_v9 = vmul.f32 0.2, %v448_v62  ;;  %vm697_vm10 = vcmp.ge.f32.partialorder %v443_v0, 0.0  ;;  %v974_v20 = vld [vmem:[#allocation2 + $0x90] sm:$0xff] }
  0xfe   :  { %6145 = vmatmul.mubr.msk.f32.gmra.mrb[68].mxu0 %vm873_vm2, %v2327_v38  ;;  %6284 = vmatprep.subr.bf16.mxu1 %v6491_v14  ;;  %v973_v51 = vld [vmem:[#allocation2 + $0x80] sm:$0xff]  ;;  %v7146_v55 = vld [vmem:[#allocation2 + $0xb2] sm:$0xff]  ;;  %v6285_v56 = vpack.c.bf16 %v2435_v50, %v2434_v24  ;;  %1004 = vst.msk [vmem:[#allocation3 + $0xf0] sm:$0xff] %vm873_vm2, %v972_v3  ;;  %v761_v13 = vmul.f32 0.2, %v443_v0  ;;  %1006 = vst.msk [vmem:[#allocation3 + $0x120] sm:$0xff] %vm873_vm2, %v974_v20 }
  0xff   :  { %v1616_v53 = vld [vmem:[#allocation2 + $0x99] sm:$0xff]  ;;  %1005 = vst.msk [vmem:[#allocation3 + $0x108] sm:$0xff] %vm873_vm2, %v973_v51  ;;  %1737 = vrot.lane.b32.xlu0 %v6986_v29, %s6490_s27  ;;  %1100 = vrot.lane.b32.xlu1 %v6978_v25, %s6490_s27  ;;  %v2330_v57 = vld [vmem:[#allocation3 + $0xa0] sm:$0xff]  ;;  %2289 = vst.msk [vmem:[#allocation3 + $0x118] sm:$0xff] %vm873_vm2, %v7146_v55  ;;  %v826_v17 = vsel %vm698_vm9, %v448_v62, %v762_v9  ;;  %v6063_v51 = vpop.f32.mrb[18].mxu0 }
 0x100   :  { %v2333_v54 = vld [vmem:[#allocation3 + $0xb8] sm:$0xff]  ;;  %1648 = vst.msk [vmem:[#allocation3 + $0x110] sm:$0xff] %vm873_vm2, %v1616_v53  ;;  %6147 = vmatprep.mubr.msk.f32.mxu0 %vm873_vm2, %v2330_v57  ;;  %v2436_v25 = vld [vmem:[%s9550_s3 + $0xf0] sm:$0xff]  ;;  %v975_v18 = vld [vmem:[#allocation2 + $0x98] sm:$0xff] }
 0x101   :  { %v7154_v58 = vld [vmem:[#allocation2 + $0xaa] sm:$0xff]  ;;  %6286 = vmatpush1.bf16.msra.mxu1 %v6285_v56  ;;  %v6288_v10 = vpack.c.bf16 %v2437_v1, %v2436_v25  ;;  %947 = vst.msk [vmem:[#allocation2 + $0xe1] sm:$0xff] %vm873_vm2, %v826_v17  ;;  %1007 = vst.msk [vmem:[#allocation3 + $0x138] sm:$0xff] %vm873_vm2, %v975_v18  ;;  %v7254_v18 = vld [vmem:[#allocation2 + $0x60] sm:$0xff] }
 0x102   :  { %2288 = vst.msk [vmem:[#allocation3 + $0x100] sm:$0xff] %vm873_vm2, %v7154_v58  ;;  %6148 = vmatmul.mubr.msk.f32.gmra.mrb[70].mxu0 %vm873_vm2, %v2333_v54  ;;  %6287 = vmatprep.subr.bf16.mxu1 %v6491_v14  ;;  %v1615_v4 = vld [vmem:[#allocation2 + $0x91] sm:$0xff]  ;;  %v7179_v12 = vld [vmem:[#allocation2 + $0xc2] sm:$0xff]  ;;  %v452_v54 = vpop.f32.mrb[19].mxu0 }
 0x103   :  { %v2339_v7 = vld [vmem:[#allocation3 + $0xe8] sm:$0xff]  ;;  %v7171_v8 = vld [vmem:[#allocation2 + $0xca] sm:$0xff]  ;;  %1647 = vst.msk [vmem:[#allocation3 + $0xf8] sm:$0xff] %vm873_vm2, %v1615_v4  ;;  %2124 = vrot.lane.b32.xlu0 %v7015_v42, %s6492_s23  ;;  %1293 = vrot.lane.b32.xlu1 %v6974_v23, %s6489_s22  ;;  %v2336_v11 = vld [vmem:[#allocation3 + $0xd0] sm:$0xff]  ;;  %v825_v23 = vsel %vm697_vm10, %v443_v0, %v761_v13  ;;  %v453_v56 = vadd.f32 %v6909_v34, %v452_v54  ;;  %v6066_v59 = vpop.f32.mrb[20].mxu0 }
 0x104   :  { %2291 = vst.msk [vmem:[#allocation3 + $0x148] sm:$0xff] %vm873_vm2, %v7171_v8  ;;  %6150 = vmatprep.mubr.msk.f32.mxu0 %vm873_vm2, %v2336_v11  ;;  %2290 = vst.msk [vmem:[#allocation3 + $0x130] sm:$0xff] %vm873_vm2, %v7179_v12  ;;  %v1618_v19 = vld [vmem:[#allocation2 + $0xb1] sm:$0xff]  ;;  %v1617_v21 = vld [vmem:[#allocation2 + $0xa9] sm:$0xff]  ;;  %v468_v63 = vadd.f32 %v6066_v59, %v6909_v34  ;;  %v462_v25 = vpop.f32.mrb[21].mxu0 }
 0x105   :  { %6289 = vmatpush1.bf16.msra.mxu1 %v6288_v10  ;;  %946 = vst.msk [vmem:[#allocation2 + $0xd9] sm:$0xff] %vm873_vm2, %v825_v23  ;;  %1650 = vst.msk [vmem:[#allocation3 + $0x140] sm:$0xff] %vm873_vm2, %v1618_v19  ;;  %v977_v27 = vld [vmem:[#allocation2 + $0xb0] sm:$0xff]  ;;  %v976_v32 = vld [vmem:[#allocation2 + $0xa8] sm:$0xff]  ;;  %vm699_vm12 = vcmp.ge.f32.partialorder %v453_v56, 0.0  ;;  %v463_v1 = vadd.f32 %v6909_v34, %v462_v25  ;;  %v6069_v4 = vpop.f32.mrb[22].mxu0 }
 0x106   :  { %6151 = vmatmul.mubr.msk.f32.gmra.mrb[72].mxu0 %vm873_vm2, %v2339_v7  ;;  %v2345_v26 = vld [vmem:[#allocation3 + $0x118] sm:$0xff]  ;;  %1649 = vst.msk [vmem:[#allocation3 + $0x128] sm:$0xff] %vm873_vm2, %v1617_v21  ;;  %1009 = vst.msk [vmem:[#allocation3 + $0x168] sm:$0xff] %vm873_vm2, %v977_v27  ;;  %v978_v37 = vld [vmem:[#allocation2 + $0xc0] sm:$0xff]  ;;  %vm702_vm13 = vcmp.ge.f32.partialorder %v468_v63, 0.0  ;;  %v478_v9 = vadd.f32 %v6069_v4, %v6909_v34  ;;  %v472_v10 = vpop.f32.mrb[23].mxu0 }
 0x107   :  { %v1620_v16 = vld [vmem:[#allocation2 + $0xc9] sm:$0xff]  ;;  %1743 = vrot.lane.b32.xlu0 %v7017_v43, %s6490_s27  ;;  %1926 = vrot.lane.b32.xlu1 %v6999_v35, %s6489_s22  ;;  %v1619_v33 = vld [vmem:[#allocation2 + $0xc1] sm:$0xff]  ;;  %1008 = vst.msk [vmem:[#allocation3 + $0x150] sm:$0xff] %vm873_vm2, %v976_v32  ;;  %1010 = vst.msk [vmem:[#allocation3 + $0x180] sm:$0xff] %vm873_vm2, %v978_v37  ;;  %v766_v3 = vmul.f32 0.2, %v468_v63  ;;  %v473_v13 = vadd.f32 %v6909_v34, %v472_v10 }
 0x108   :  { %1652 = vst.msk [vmem:[#allocation3 + $0x170] sm:$0xff] %vm873_vm2, %v1620_v16  ;;  %1651 = vst.msk [vmem:[#allocation3 + $0x158] sm:$0xff] %vm873_vm2, %v1619_v33  ;;  %v979_v36 = vld [vmem:[#allocation2 + $0xc8] sm:$0xff]  ;;  %vm701_vm14 = vcmp.ge.f32.partialorder %v463_v1, 0.0  ;;  %v6072_v17 = vpop.f32.mrb[24].mxu0  ;;  %vm704_vm15 = vcmp.ge.f32.partialorder %v478_v9, 0.0 }
 0x109   :  { %v2342_v28 = vld [vmem:[#allocation3 + $0x100] sm:$0xff]  ;;  %1011 = vst.msk [vmem:[#allocation3 + $0x198] sm:$0xff] %vm873_vm2, %v979_v36  ;;  %v7219_v44 = vld [vmem:[#allocation2 + $0xe2] sm:$0xff]  ;;  %v830_v7 = vsel %vm702_vm13, %v468_v63, %v766_v3  ;;  %v768_v23 = vmul.f32 0.2, %v478_v9  ;;  %v482_v19 = vpop.f32.mrb[25].mxu0 }
 0x10a   :  { %6153 = vmatprep.mubr.msk.f32.mxu0 %vm873_vm2, %v2342_v28  ;;  %2293 = vst.msk [vmem:[#allocation3 + $0x178] sm:$0xff] %vm873_vm2, %v7219_v44  ;;  %951 = vst.msk [vmem:[#allocation2 + $0x111] sm:$0xff] %vm873_vm2, %v830_v7  ;;  %vm703_vm0 = vcmp.ge.f32.partialorder %v473_v13, 0.0  ;;  %v767_v20 = vmul.f32 0.2, %v473_v13  ;;  %v483_v21 = vadd.f32 %v6909_v34, %v482_v19 }
 0x10b   :  { %6154 = vmatmul.mubr.msk.f32.gmra.mrb[74].mxu0 %vm873_vm2, %v2345_v26  ;;  %v2351_v38 = vld [vmem:[#allocation3 + $0x148] sm:$0xff]  ;;  %1930 = vrot.lane.b32.xlu0 %v7027_v48, %s6489_s22  ;;  %v2348_v40 = vld [vmem:[#allocation3 + $0x130] sm:$0xff]  ;;  %v6075_v26 = vpop.f32.mrb[26].mxu0  ;;  %v832_v27 = vsel %vm704_vm15, %v478_v9, %v768_v23 }
 0x10c   :  { %1480 = vrot.lane.b32.xlu1 %v6999_v35, %s6492_s23  ;;  %6156 = vmatprep.mubr.msk.f32.mxu0 %vm873_vm2, %v2348_v40  ;;  %v7215_v41 = vld [vmem:[#allocation2 + $0xda] sm:$0xff]  ;;  %v498_v28 = vadd.f32 %v6075_v26, %v6909_v34  ;;  %v492_v32 = vpop.f32.mrb[27].mxu0  ;;  %953 = vst.msk [vmem:[#allocation2 + $0x129] sm:$0xff] %vm873_vm2, %v832_v27  ;;  %v831_v33 = vsel %vm703_vm0, %v473_v13, %v767_v20  ;;  %vm705_vm3 = vcmp.ge.f32.partialorder %v483_v21, 0.0  ;;  %v769_v36 = vmul.f32 0.2, %v483_v21 }
 0x10d   :  { %2292 = vst.msk [vmem:[#allocation3 + $0x160] sm:$0xff] %vm873_vm2, %v7215_v41  ;;  %v1622_v35 = vld [vmem:[#allocation2 + $0xe1] sm:$0xff]  ;;  %v1621_v46 = vld [vmem:[#allocation2 + $0xd9] sm:$0xff]  ;;  %v493_v37 = vadd.f32 %v6909_v34, %v492_v32  ;;  %952 = vst.msk [vmem:[#allocation2 + $0x121] sm:$0xff] %vm873_vm2, %v831_v33 }
 0x10e   :  { %1654 = vst.msk [vmem:[#allocation3 + $0x1a0] sm:$0xff] %vm873_vm2, %v1622_v35  ;;  %1653 = vst.msk [vmem:[#allocation3 + $0x188] sm:$0xff] %vm873_vm2, %v1621_v46  ;;  %v980_v24 = vld [vmem:[#allocation2 + $0xd8] sm:$0xff]  ;;  %vm708_vm6 = vcmp.ge.f32.partialorder %v498_v28, 0.0  ;;  %v772_v40 = vmul.f32 0.2, %v498_v28 }
 0x10f   :  { %6157 = vmatmul.mubr.msk.f32.gmra.mrb[76].mxu0 %vm873_vm2, %v2351_v38  ;;  %2122 = vrot.lane.b32.xlu0 %v7029_v49, %s6492_s23  ;;  %1012 = vst.msk [vmem:[#allocation3 + $0x1b0] sm:$0xff] %vm873_vm2, %v980_v24  ;;  %v6078_v38 = vpop.f32.mrb[28].mxu0  ;;  %vm707_vm7 = vcmp.ge.f32.partialorder %v493_v37, 0.0  ;;  %v771_v24 = vmul.f32 0.2, %v493_v37 }
 0x110   :  { %1482 = vrot.lane.b32.xlu1 %v6990_v31, %s6492_s23  ;;  %v981_v31 = vld [vmem:[#allocation2 + $0xe0] sm:$0xff]  ;;  %v508_v35 = vadd.f32 %v6078_v38, %v6909_v34  ;;  %v502_v46 = vpop.f32.mrb[29].mxu0 }
 0x111   :  { %1013 = vst.msk [vmem:[#allocation3 + $0x1c8] sm:$0xff] %vm873_vm2, %v981_v31  ;;  %v2357_v53 = vld [vmem:[#allocation3 + $0x178] sm:$0xff]  ;;  %v833_v31 = vsel %vm705_vm3, %v483_v21, %v769_v36 }
 0x112   :  { %954 = vst.msk [vmem:[#allocation2 + $0x139] sm:$0xff] %vm873_vm2, %v833_v31  ;;  %vm710_vm8 = vcmp.ge.f32.partialorder %v508_v35, 0.0  ;;  %v774_v54 = vmul.f32 0.2, %v508_v35 }
 0x113   :  { %1932 = vrot.lane.b32.xlu0 %v7038_v52, %s6489_s22 }
 0x114   :  { %1098 = vrot.lane.b32.xlu1 %v6988_v30, %s6490_s27  ;;  %v2354_v50 = vld [vmem:[#allocation3 + $0x160] sm:$0xff]  ;;  %v458_v30 = vadd.f32 %v6063_v51, %v6909_v34  ;;  %v6081_v51 = vpop.f32.mrb[30].mxu0  ;;  %v838_v25 = vsel %vm710_vm8, %v508_v35, %v774_v54 }
 0x115   :  { %6159 = vmatprep.mubr.msk.f32.mxu0 %vm873_vm2, %v2354_v50  ;;  %v503_v50 = vadd.f32 %v6909_v34, %v502_v46  ;;  %959 = vst.msk [vmem:[#allocation2 + $0x171] sm:$0xff] %vm873_vm2, %v838_v25 }
 0x116   :  { %6160 = vmatmul.mubr.msk.f32.gmra.mrb[78].mxu0 %vm873_vm2, %v2357_v53  ;;  %vm700_vm11 = vcmp.ge.f32.partialorder %v458_v30, 0.0  ;;  %v764_v57 = vmul.f32 0.2, %v458_v30  ;;  %v836_v53 = vsel %vm708_vm6, %v498_v28, %v772_v40 }
 0x117   :  { %1741 = vrot.lane.b32.xlu0 %v7023_v47, %s6490_s27  ;;  %957 = vst.msk [vmem:[#allocation2 + $0x159] sm:$0xff] %vm873_vm2, %v836_v53  ;;  %vm709_vm9 = vcmp.ge.f32.partialorder %v503_v50, 0.0  ;;  %v773_v59 = vmul.f32 0.2, %v503_v50 }
 0x118   :  { %1291 = vrot.lane.b32.xlu1 %v6986_v29, %s6489_s22  ;;  %v763_v29 = vmul.f32 0.2, %v453_v56  ;;  %v828_v62 = vsel %vm700_vm11, %v458_v30, %v764_v57  ;;  %v512_v57 = vpop.f32.mrb[31].mxu0 }
 0x119   :  { %949 = vst.msk [vmem:[#allocation2 + $0xf9] sm:$0xff] %vm873_vm2, %v828_v62  ;;  %v513_v62 = vadd.f32 %v6909_v34, %v512_v57  ;;  %v6084_v63 = vpop.f32.mrb[32].mxu0 }
 0x11a   :  { %v827_v0 = vsel %vm699_vm12, %v453_v56, %v763_v29  ;;  %v518_v56 = vadd.f32 %v6081_v51, %v6909_v34  ;;  %v835_v29 = vsel %vm707_vm7, %v493_v37, %v771_v24  ;;  %v522_v3 = vpop.f32.mrb[33].mxu0 }
 0x11b   :  { %2128 = vrot.lane.b32.xlu0 %v7054_v60, %s6492_s23  ;;  %948 = vst.msk [vmem:[#allocation2 + $0xf1] sm:$0xff] %vm873_vm2, %v827_v0  ;;  %956 = vst.msk [vmem:[#allocation2 + $0x151] sm:$0xff] %vm873_vm2, %v835_v29  ;;  %vm711_vm11 = vcmp.ge.f32.partialorder %v513_v62, 0.0  ;;  %v775_v4 = vmul.f32 0.2, %v513_v62  ;;  %v523_v7 = vadd.f32 %v6909_v34, %v522_v3  ;;  %v6087_v9 = vpop.f32.mrb[34].mxu0 }
 0x11c   :  { %1104 = vrot.lane.b32.xlu1 %v7015_v42, %s6490_s27  ;;  %v765_v42 = vmul.f32 0.2, %v463_v1  ;;  %vm712_vm10 = vcmp.ge.f32.partialorder %v518_v56, 0.0  ;;  %v776_v0 = vmul.f32 0.2, %v518_v56  ;;  %v538_v23 = vadd.f32 %v6087_v9, %v6909_v34 }
 0x11d   :  { %v839_v20 = vsel %vm711_vm11, %v513_v62, %v775_v4  ;;  %vm713_vm13 = vcmp.ge.f32.partialorder %v523_v7, 0.0  ;;  %v777_v21 = vmul.f32 0.2, %v523_v7 }
 0x11e   :  { %v829_v11 = vsel %vm701_vm14, %v463_v1, %v765_v42  ;;  %v528_v1 = vadd.f32 %v6084_v63, %v6909_v34  ;;  %v837_v42 = vsel %vm709_vm9, %v503_v50, %v773_v59  ;;  %v840_v13 = vsel %vm712_vm10, %v518_v56, %v776_v0  ;;  %960 = vst.msk [vmem:[#allocation2 + $0x181] sm:$0xff] %vm873_vm2, %v839_v20  ;;  %v7318_v56 = vld [vmem:[#allocation2 + $0x81] sm:$0xff]  ;;  %v7342_v20 = vld [vmem:[#allocation2 + $0x79] sm:$0xff] }
 0x11f   :  { %1747 = vrot.lane.b32.xlu0 %v7056_v61, %s6490_s27  ;;  %950 = vst.msk [vmem:[#allocation2 + $0x109] sm:$0xff] %vm873_vm2, %v829_v11  ;;  %958 = vst.msk [vmem:[#allocation2 + $0x169] sm:$0xff] %vm873_vm2, %v837_v42  ;;  %vm716_vm14 = vcmp.ge.f32.partialorder %v538_v23, 0.0  ;;  %v780_v28 = vmul.f32 0.2, %v538_v23  ;;  %v841_v36 = vsel %vm713_vm13, %v523_v7, %v777_v21 }
 0x120   :  { %1297 = vrot.lane.b32.xlu1 %v7017_v43, %s6489_s22  ;;  %v488_v43 = vadd.f32 %v6072_v17, %v6909_v34  ;;  %v1624_v10 = vld [vmem:[#allocation2 + $0xf9] sm:$0xff]  ;;  %vm714_vm12 = vcmp.ge.f32.partialorder %v528_v1, 0.0  ;;  %v778_v17 = vmul.f32 0.2, %v528_v1  ;;  %961 = vst.msk [vmem:[#allocation2 + $0x189] sm:$0xff] %vm873_vm2, %v840_v13  ;;  %3273 = vst.msk [vmem:[#allocation2 + $0x19] sm:$0xff] %vm873_vm2, %v841_v36 }
 0x121   :  { %1656 = vst.msk [vmem:[#allocation3 + $0x1d0] sm:$0xff] %vm873_vm2, %v1624_v10  ;;  %v844_v35 = vsel %vm716_vm14, %v538_v23, %v780_v28  ;;  %v7332_v13 = vld [vmem:[#allocation2 + $0x80] sm:$0xff] }
 0x122   :  { %vm706_vm1 = vcmp.ge.f32.partialorder %v488_v43, 0.0  ;;  %v770_v16 = vmul.f32 0.2, %v488_v43  ;;  %v7274_v30 = vld [vmem:[#allocation2 + $0xf2] sm:$0xff]  ;;  %3276 = vst.msk [vmem:[#allocation2 + $0x39] sm:$0xff] %vm873_vm2, %v844_v35 }
 0x123   :  { %1934 = vrot.lane.b32.xlu0 %v7254_v18, %s6489_s22  ;;  %2294 = vst.msk [vmem:[#allocation3 + $0x190] sm:$0xff] %vm873_vm2, %v7274_v30  ;;  %v1623_v11 = vld [vmem:[#allocation2 + $0xf1] sm:$0xff]  ;;  %v7351_v28 = vld [vmem:[#allocation2 + $0x99] sm:$0xff] }
 0x124   :  { %1484 = vrot.lane.b32.xlu1 %v7027_v48, %s6492_s23  ;;  %v834_v48 = vsel %vm706_vm1, %v488_v43, %v770_v16  ;;  %v532_v43 = vpop.f32.mrb[35].mxu0  ;;  %1655 = vst.msk [vmem:[#allocation3 + $0x1b8] sm:$0xff] %vm873_vm2, %v1623_v11  ;;  %v982_v19 = vld [vmem:[#allocation2 + $0xf0] sm:$0xff]  ;;  %v842_v16 = vsel %vm714_vm12, %v528_v1, %v778_v17 }
 0x125   :  { %955 = vst.msk [vmem:[#allocation2 + $0x141] sm:$0xff] %vm873_vm2, %v834_v48  ;;  %v533_v26 = vadd.f32 %v6909_v34, %v532_v43  ;;  %v6090_v27 = vpop.f32.mrb[36].mxu0  ;;  %1014 = vst.msk [vmem:[#allocation3 + $0x1e0] sm:$0xff] %vm873_vm2, %v982_v19  ;;  %v7340_v19 = vld [vmem:[#allocation2 + $0x78] sm:$0xff] }
 0x126   :  { %v548_v32 = vadd.f32 %v6090_v27, %v6909_v34  ;;  %v542_v33 = vpop.f32.mrb[37].mxu0  ;;  %3274 = vst.msk [vmem:[#allocation2 + $0x21] sm:$0xff] %vm873_vm2, %v842_v16 }
 0x127   :  { %2126 = vrot.lane.b32.xlu0 %v7076_v5, %s6492_s23  ;;  %vm715_vm15 = vcmp.ge.f32.partialorder %v533_v26, 0.0  ;;  %v779_v37 = vmul.f32 0.2, %v533_v26  ;;  %v543_v38 = vadd.f32 %v6909_v34, %v542_v33  ;;  %v6093_v48 = vpop.f32.mrb[38].mxu0 }
 0x128   :  { %1486 = vrot.lane.b32.xlu1 %v7038_v52, %s6492_s23  ;;  %v7280_v52 = vld [vmem:[#allocation2 + $0xfa] sm:$0xff]  ;;  %vm718_vm0 = vcmp.ge.f32.partialorder %v548_v32, 0.0  ;;  %v782_v46 = vmul.f32 0.2, %v548_v32  ;;  %v558_v31 = vadd.f32 %v6093_v48, %v6909_v34  ;;  %v552_v24 = vpop.f32.mrb[39].mxu0  ;;  %v7360_v48 = vld [vmem:[#allocation2 + $0x91] sm:$0xff] }
 0x129   :  { %2295 = vst.msk [vmem:[#allocation3 + $0x1a8] sm:$0xff] %vm873_vm2, %v7280_v52  ;;  %v843_v50 = vsel %vm715_vm15, %v533_v26, %v779_v37  ;;  %vm717_vm1 = vcmp.ge.f32.partialorder %v543_v38, 0.0  ;;  %v781_v51 = vmul.f32 0.2, %v543_v38  ;;  %v553_v53 = vadd.f32 %v6909_v34, %v552_v24  ;;  %v6096_v54 = vpop.f32.mrb[40].mxu0  ;;  %v7365_v24 = vld [vmem:[#allocation2 + $0xb1] sm:$0xff] }
 0x12a   :  { %v2360_v40 = vld [vmem:[#allocation3 + $0x190] sm:$0xff]  ;;  %3275 = vst.msk [vmem:[#allocation2 + $0x31] sm:$0xff] %vm873_vm2, %v843_v50  ;;  %v846_v57 = vsel %vm718_vm0, %v548_v32, %v782_v46  ;;  %vm720_vm3 = vcmp.ge.f32.partialorder %v558_v31, 0.0  ;;  %v784_v29 = vmul.f32 0.2, %v558_v31  ;;  %v568_v59 = vadd.f32 %v6096_v54, %v6909_v34  ;;  %v562_v62 = vpop.f32.mrb[41].mxu0 }
 0x12b   :  { %1936 = vrot.lane.b32.xlu0 %v7078_v6, %s6489_s22  ;;  %6162 = vmatprep.mubr.msk.f32.mxu0 %vm873_vm2, %v2360_v40  ;;  %3278 = vst.msk [vmem:[#allocation2 + $0x51] sm:$0xff] %vm873_vm2, %v846_v57  ;;  %v845_v63 = vsel %vm717_vm1, %v543_v38, %v781_v51  ;;  %vm719_vm6 = vcmp.ge.f32.partialorder %v553_v53, 0.0  ;;  %v783_v25 = vmul.f32 0.2, %v553_v53  ;;  %v563_v0 = vadd.f32 %v6909_v34, %v562_v62  ;;  %v6099_v1 = vpop.f32.mrb[42].mxu0  ;;  %v7358_v38 = vld [vmem:[#allocation2 + $0x90] sm:$0xff] }
 0x12c   :  { %1102 = vrot.lane.b32.xlu1 %v7029_v49, %s6490_s27  ;;  %v983_v49 = vld [vmem:[#allocation2 + $0xf8] sm:$0xff]  ;;  %3277 = vst.msk [vmem:[#allocation2 + $0x49] sm:$0xff] %vm873_vm2, %v845_v63  ;;  %v848_v3 = vsel %vm720_vm3, %v558_v31, %v784_v29  ;;  %vm722_vm7 = vcmp.ge.f32.partialorder %v568_v59, 0.0  ;;  %v786_v42 = vmul.f32 0.2, %v568_v59  ;;  %v578_v4 = vadd.f32 %v6099_v1, %v6909_v34  ;;  %v572_v7 = vpop.f32.mrb[43].mxu0 }
 0x12d   :  { %1015 = vst.msk [vmem:[#allocation3 + $0x1f8] sm:$0xff] %vm873_vm2, %v983_v49  ;;  %3280 = vst.msk [vmem:[#allocation2 + $0x69] sm:$0xff] %vm873_vm2, %v848_v3  ;;  %v847_v9 = vsel %vm719_vm6, %v553_v53, %v783_v25  ;;  %vm721_vm8 = vcmp.ge.f32.partialorder %v563_v0, 0.0  ;;  %v573_v10 = vadd.f32 %v6909_v34, %v572_v7  ;;  %v7375_v57 = vld [vmem:[#allocation2 + $0xa8] sm:$0xff]  ;;  %v7388_v3 = vld [vmem:[#allocation2 + $0xc0] sm:$0xff] }
 0x12e   :  { %v850_v17 = vsel %vm722_vm7, %v568_v59, %v786_v42  ;;  %vm724_vm9 = vcmp.ge.f32.partialorder %v578_v4, 0.0  ;;  %v788_v23 = vmul.f32 0.2, %v578_v4  ;;  %3279 = vst.msk [vmem:[#allocation2 + $0x61] sm:$0xff] %vm873_vm2, %v847_v9  ;;  %v7377_v29 = vld [vmem:[#allocation2 + $0xa9] sm:$0xff]  ;;  %v7390_v42 = vld [vmem:[#allocation2 + $0xc1] sm:$0xff] }
 0x12f   :  { %1745 = vrot.lane.b32.xlu0 %v7064_v2, %s6490_s27  ;;  %v6102_v11 = vpop.f32.mrb[44].mxu0  ;;  %vm723_vm10 = vcmp.ge.f32.partialorder %v573_v10, 0.0  ;;  %v787_v26 = vmul.f32 0.2, %v573_v10  ;;  %3282 = vst.msk [vmem:[#allocation2 + $0x81] sm:$0xff] %vm873_vm2, %v850_v17  ;;  %v7382_v25 = vld [vmem:[#allocation2 + $0xc9] sm:$0xff] }
 0x130   :  { %1295 = vrot.lane.b32.xlu1 %v7023_v47, %s6489_s22  ;;  %v2363_v47 = vld [vmem:[#allocation3 + $0x1a8] sm:$0xff]  ;;  %v588_v43 = vadd.f32 %v6102_v11, %v6909_v34  ;;  %v582_v49 = vpop.f32.mrb[45].mxu0  ;;  %v7347_v34 = vld [vmem:[%s9549_s2] ss:$0 sm:$0xff]  ;;  %v852_v32 = vsel %vm724_vm9, %v578_v4, %v788_v23 }
 0x131   :  { %6163 = vmatmul.mubr.msk.f32.gmra.mrb[80].mxu0 %vm873_vm2, %v2363_v47  ;;  %v583_v27 = vadd.f32 %v7347_v34, %v582_v49  ;;  %v851_v40 = vsel %vm723_vm10, %v573_v10, %v787_v26  ;;  %v7367_v47 = vld [vmem:[#allocation2 + $0xb0] sm:$0xff]  ;;  %v7395_v10 = vld [vmem:[#allocation2 + $0xe0] sm:$0xff]  ;;  %vm1572_vm10 = vcmask 1048320  }
 0x132   :  { %vm726_vm11 = vcmp.ge.f32.partialorder %v588_v43, 0.0  ;;  %v790_v33 = vmul.f32 0.2, %v588_v43  ;;  %v7405_v49 = vld [vmem:[#allocation2 + $0xd9] sm:$0xff] }
 0x133   :  { %2132 = vrot.lane.b32.xlu0 %v7318_v56, %s6492_s23  ;;  %v6105_v16 = vpop.f32.mrb[46].mxu0  ;;  %vm725_vm12 = vcmp.ge.f32.partialorder %v583_v27, 0.0  ;;  %v789_v35 = vmul.f32 0.2, %v583_v27 }
 0x134   :  { %1108 = vrot.lane.b32.xlu1 %v7054_v60, %s6490_s27  ;;  %v785_v60 = vmul.f32 0.2, %v563_v0  ;;  %v598_v36 = vadd.f32 %v7347_v34, %v6105_v16  ;;  %v592_v37 = vpop.f32.mrb[47].mxu0  ;;  %v854_v50 = vsel %vm726_vm11, %v588_v43, %v790_v33  ;;  %v7403_v43 = vld [vmem:[#allocation2 + $0xd8] sm:$0xff] }
 0x135   :  { %v593_v46 = vadd.f32 %v7347_v34, %v592_v37  ;;  %v853_v59 = vsel %vm725_vm12, %v583_v27, %v789_v35  ;;  %3286 = vst.msk [vmem:[#allocation2 + $0xb1] sm:$0xff] %vm873_vm2, %v854_v50  ;;  %v7408_v27 = vld [vmem:[#allocation2 + $0x10a] sm:$0xff]  ;;  %v7411_v16 = vld [vmem:[#allocation2 + $0xf9] sm:$0xff] }
 0x136   :  { %v849_v21 = vsel %vm721_vm8, %v563_v0, %v785_v60  ;;  %vm728_vm13 = vcmp.ge.f32.partialorder %v598_v36, 0.0  ;;  %v792_v51 = vmul.f32 0.2, %v598_v36  ;;  %v7384_v0 = vld [vmem:[#allocation2 + $0xc8] sm:$0xff]  ;;  %3285 = vst.msk [vmem:[#allocation2 + $0xa9] sm:$0xff] %vm873_vm2, %v853_v59  ;;  %v7413_v33 = vld [vmem:[#allocation2 + $0x112] sm:$0xff] }
 0x137   :  { %1751 = vrot.lane.b32.xlu0 %v7093_v15, %s6490_s27  ;;  %3281 = vst.msk [vmem:[#allocation2 + $0x79] sm:$0xff] %vm873_vm2, %v849_v21  ;;  %v6108_v31 = vpop.f32.mrb[48].mxu0  ;;  %vm727_vm14 = vcmp.ge.f32.partialorder %v593_v46, 0.0  ;;  %v791_v62 = vmul.f32 0.2, %v593_v46  ;;  %v7393_v60 = vld [vmem:[#allocation2 + $0xe1] sm:$0xff] }
 0x138   :  { %1301 = vrot.lane.b32.xlu1 %v7056_v61, %s6489_s22  ;;  %v7353_v61 = vld [vmem:[#allocation2 + $0x98] sm:$0xff]  ;;  %v608_v53 = vadd.f32 %v7347_v34, %v6108_v31  ;;  %v602_v54 = vpop.f32.mrb[49].mxu0  ;;  %v856_v1 = vsel %vm728_vm13, %v598_v36, %v792_v51  ;;  %2296 = vst.msk [vmem:[#allocation3 + $0x1c0] sm:$0xff] %vm873_vm2, %v7408_v27  ;;  %2297 = vst.msk [vmem:[#allocation3 + $0x1d8] sm:$0xff] %vm873_vm2, %v7413_v33  ;;  %v7427_v51 = vld [vmem:[#allocation2 + $0x110] sm:$0xff] }
 0x139   :  { %3284 = vst.msk [vmem:[#allocation2 + $0x99] sm:$0xff] %vm873_vm2, %v852_v32  ;;  %3283 = vst.msk [vmem:[#allocation2 + $0x91] sm:$0xff] %vm873_vm2, %v851_v40  ;;  %v603_v63 = vadd.f32 %v7347_v34, %v602_v54  ;;  %v855_v4 = vsel %vm727_vm14, %v593_v46, %v791_v62  ;;  %v7418_v37 = vld [vmem:[#allocation2 + $0x111] sm:$0xff]  ;;  %v7420_v40 = vld [vmem:[#allocation2 + $0x108] sm:$0xff] }
 0x13a   :  { %vm730_vm15 = vcmp.ge.f32.partialorder %v608_v53, 0.0  ;;  %3288 = vst.msk [vmem:[#allocation2 + $0xc9] sm:$0xff] %vm873_vm2, %v856_v1  ;;  %3287 = vst.msk [vmem:[#allocation2 + $0xc1] sm:$0xff] %vm873_vm2, %v855_v4  ;;  %v7424_v46 = vld [vmem:[#allocation2 + $0xf8] sm:$0xff]  ;;  %v7439_v54 = vld [vmem:[#allocation2 + $0xf0] sm:$0xff] }
 0x13b   :  { %1938 = vrot.lane.b32.xlu0 %v7340_v19, %s6489_s22  ;;  %vm729_vm0 = vcmp.ge.f32.partialorder %v603_v63, 0.0  ;;  %v793_v7 = vmul.f32 0.2, %v603_v63  ;;  %v6111_v9 = vpop.f32.mrb[50].mxu0  ;;  %1016 = vst.msk [vmem:[#allocation3 + $0x210] sm:$0xff] %vm873_vm2, %v7420_v40  ;;  %1658 = vst.msk [vmem:[#allocation3 + $0x200] sm:$0xff] %vm873_vm2, %v7418_v37 }
 0x13c   :  { %1488 = vrot.lane.b32.xlu1 %v7254_v18, %s6492_s23  ;;  %v794_v18 = vmul.f32 0.2, %v608_v53  ;;  %v618_v17 = vadd.f32 %v7347_v34, %v6111_v9  ;;  %v612_v23 = vpop.f32.mrb[51].mxu0  ;;  %v7441_v59 = vld [vmem:[#allocation2 + $0xf1] sm:$0xff]  ;;  %1017 = vst.msk [vmem:[#allocation3 + $0x228] sm:$0xff] %vm873_vm2, %v7427_v51 }
 0x13d   :  { %v857_v21 = vsel %vm729_vm0, %v603_v63, %v793_v7  ;;  %v613_v26 = vadd.f32 %v7347_v34, %v612_v23 }
 0x13e   :  { %v858_v11 = vsel %vm730_vm15, %v608_v53, %v794_v18  ;;  %vm732_vm1 = vcmp.ge.f32.partialorder %v618_v17, 0.0  ;;  %v796_v32 = vmul.f32 0.2, %v618_v17  ;;  %3289 = vst.msk [vmem:[#allocation2 + $0xd9] sm:$0xff] %vm873_vm2, %v857_v21  ;;  %v7429_v53 = vld [vmem:[#allocation2 + $0x109] sm:$0xff] }
 0x13f   :  { %2130 = vrot.lane.b32.xlu0 %v7342_v20, %s6492_s23  ;;  %3290 = vst.msk [vmem:[#allocation2 + $0xe1] sm:$0xff] %vm873_vm2, %v858_v11  ;;  %vm731_vm3 = vcmp.ge.f32.partialorder %v613_v26, 0.0  ;;  %v6114_v36 = vpop.f32.mrb[52].mxu0  ;;  %1657 = vst.msk [vmem:[#allocation3 + $0x1e8] sm:$0xff] %vm873_vm2, %v7429_v53  ;;  %v2366_v11 = vld [vmem:[#allocation3 + $0x1c0] sm:$0xff] }
 0x140   :  { %1490 = vrot.lane.b32.xlu1 %v7078_v6, %s6492_s23  ;;  %v795_v6 = vmul.f32 0.2, %v613_v26  ;;  %v860_v35 = vsel %vm732_vm1, %v618_v17, %v796_v32  ;;  %v628_v31 = vadd.f32 %v7347_v34, %v6114_v36  ;;  %v622_v50 = vpop.f32.mrb[53].mxu0  ;;  %6165 = vmatprep.mubr.msk.f32.mxu0 %vm873_vm2, %v2366_v11  ;;  %v2369_v17 = vld [vmem:[#allocation3 + $0x1d8] sm:$0xff]  ;;  %v7503_v11 = vld [vmem:[#allocation2 + $0x120] sm:$0xff] }
 0x141   :  { %v623_v63 = vadd.f32 %v7347_v34, %v622_v50  ;;  %3292 = vst.msk [vmem:[#allocation2 + $0xf9] sm:$0xff] %vm873_vm2, %v860_v35  ;;  %6166 = vmatmul.mubr.msk.f32.gmra.mrb[82].mxu0 %vm873_vm2, %v2369_v17  ;;  %v7505_v17 = vld [vmem:[#allocation2 + $0x128] sm:$0xff]  ;;  %1018 = vst.msk [vmem:[#allocation3 + $0x240] sm:$0xff] %vm873_vm2, %v7503_v11 }
 0x142   :  { %v859_v62 = vsel %vm731_vm3, %v613_v26, %v795_v6  ;;  %vm734_vm6 = vcmp.ge.f32.partialorder %v628_v31, 0.0  ;;  %v798_v1 = vmul.f32 0.2, %v628_v31  ;;  %1019 = vst.msk [vmem:[#allocation3 + $0x258] sm:$0xff] %vm873_vm2, %v7505_v17 }
 0x143   :  { %1940 = vrot.lane.b32.xlu0 %v7332_v13, %s6489_s22  ;;  %3291 = vst.msk [vmem:[#allocation2 + $0xf1] sm:$0xff] %vm873_vm2, %v859_v62  ;;  %vm733_vm7 = vcmp.ge.f32.partialorder %v623_v63, 0.0  ;;  %v6117_v18 = vpop.f32.mrb[54].mxu0 }
 0x144   :  { %1106 = vrot.lane.b32.xlu1 %v7076_v5, %s6490_s27  ;;  %v797_v5 = vmul.f32 0.2, %v623_v63  ;;  %v862_v4 = vsel %vm734_vm6, %v628_v31, %v798_v1  ;;  %v632_v7 = vpop.f32.mrb[55].mxu0  ;;  %v638_v6 = vadd.f32 %v7347_v34, %v6117_v18 }
 0x145   :  { %3294 = vst.msk [vmem:[#allocation2 + $0x111] sm:$0xff] %vm873_vm2, %v862_v4  ;;  %v633_v35 = vadd.f32 %v7347_v34, %v632_v7  ;;  %v7497_v4 = vld [vmem:[#allocation2 + $0x12a] sm:$0xff] }
 0x146   :  { %v861_v9 = vsel %vm733_vm7, %v623_v63, %v797_v5  ;;  %vm736_vm8 = vcmp.ge.f32.partialorder %v638_v6, 0.0  ;;  %v7495_v5 = vld [vmem:[#allocation2 + $0x122] sm:$0xff]  ;;  %2299 = vst.msk [vmem:[#allocation3 + $0x208] sm:$0xff] %vm873_vm2, %v7497_v4 }
 0x147   :  { %1749 = vrot.lane.b32.xlu0 %v7101_v22, %s6490_s27  ;;  %3293 = vst.msk [vmem:[#allocation2 + $0x109] sm:$0xff] %vm873_vm2, %v861_v9  ;;  %v7458_v23 = vpop.f32.mrb[56].mxu0  ;;  %v799_v50 = vmul.f32 0.2, %v633_v35  ;;  %vm735_vm9 = vcmp.ge.f32.partialorder %v633_v35, 0.0  ;;  %2298 = vst.msk [vmem:[#allocation3 + $0x1f0] sm:$0xff] %vm873_vm2, %v7495_v5 }
 0x148   :  { %1299 = vrot.lane.b32.xlu1 %v7064_v2, %s6489_s22  ;;  %v7461_v21 = vpop.f32.mrb[57].mxu0  ;;  %v7501_v9 = vld [vmem:[#allocation2 + $0x129] sm:$0xff] }
 0x149   :  { %v863_v18 = vsel %vm735_vm9, %v633_v35, %v799_v50  ;;  %1660 = vst.msk [vmem:[#allocation3 + $0x230] sm:$0xff] %vm873_vm2, %v7501_v9 }
 0x14b   :  { %2136 = vrot.lane.b32.xlu0 %v7351_v28, %s6492_s23  ;;  %v7467_v2 = vpop.f32.mrb[58].mxu0 }
 0x14c   :  { %1112 = vrot.lane.b32.xlu1 %v7318_v56, %s6490_s27  ;;  %v7469_v26 = vpop.f32.mrb[59].mxu0  ;;  %v4604_v32 = vld [vmem:[#allocation2 + $0x112] sm:$0xff] }
 0x14d   :  { %4636 = vst.msk [vmem:[#allocation3 + $0x1d8] sm:$0xff] %vm873_vm2, %v4604_v32 }
 0x14e   :  { %v4603_v36 = vld [vmem:[#allocation2 + $0x10a] sm:$0xff] }
 0x14f   :  { %1755 = vrot.lane.b32.xlu0 %v7120_v39, %s6490_s27  ;;  %4635 = vst.msk [vmem:[#allocation3 + $0x1c0] sm:$0xff] %vm873_vm2, %v4603_v36  ;;  %v7479_v56 = vpop.f32.mrb[60].mxu0  ;;  %v2372_v36 = vld [vmem:[#allocation3 + $0x1f0] sm:$0xff] }
 0x150   :  { %1305 = vrot.lane.b32.xlu1 %v7093_v15, %s6489_s22  ;;  %v7481_v31 = vpop.f32.mrb[61].mxu0  ;;  %v800_v15 = vmul.f32 0.2, %v638_v6  ;;  %6168 = vmatprep.mubr.msk.f32.mxu0 %vm873_vm2, %v2372_v36 }
 0x152   :  { %v864_v1 = vsel %vm736_vm8, %v638_v6, %v800_v15 }
 0x153   :  { %1942 = vrot.lane.b32.xlu0 %v7358_v38, %s6489_s22  ;;  %v7487_v62 = vpop.f32.mrb[62].mxu0  ;;  %3296 = vst.msk [vmem:[#allocation2 + $0x129] sm:$0xff] %vm873_vm2, %v864_v1 }
 0x154   :  { %1492 = vrot.lane.b32.xlu1 %v7340_v19, %s6492_s23  ;;  %v7489_v63 = vpop.f32.mrb[63].mxu0 }
 0x157   :  { %2134 = vrot.lane.b32.xlu0 %v7360_v48, %s6492_s23  ;;  %v1736_v19 = vpop.permute.xlu0 %1735 }
 0x158   :  { %1494 = vrot.lane.b32.xlu1 %v7332_v13, %s6492_s23  ;;  %v1097_v7 = vpop.permute.xlu1 %1096  ;;  %1830 = vst.msk [vmem:[#allocation3 + $0x20] sm:$0xff] %vm1186_vm4, %v1736_v19  ;;  %v7511_v13 = vld [vmem:[#allocation2 + $0x121] sm:$0xff]  ;;  %v643_v19 = vadd.f32 %v7347_v34, %v7461_v21 }
 0x159   :  { %1190 = vst.msk [vmem:[#allocation3 + $0x48] sm:$0xff] %vm1186_vm4, %v1097_v7 }
 0x15a   :  { %3295 = vst.msk [vmem:[#allocation2 + $0x121] sm:$0xff] %vm873_vm2, %v863_v18  ;;  %1659 = vst.msk [vmem:[#allocation3 + $0x218] sm:$0xff] %vm873_vm2, %v7511_v13  ;;  %v4606_v50 = vld [vmem:[#allocation2 + $0x12a] sm:$0xff]  ;;  %vm737_vm11 = vcmp.ge.f32.partialorder %v643_v19, 0.0 }
 0x15b   :  { %1944 = vrot.lane.b32.xlu0 %v7353_v61, %s6489_s22 }
 0x15c   :  { %1110 = vrot.lane.b32.xlu1 %v7342_v20, %s6490_s27  ;;  %v1290_v32 = vpop.permute.xlu1 %1289  ;;  %v1734_v6 = vpop.permute.xlu0 %1733  ;;  %v2375_v20 = vld [vmem:[#allocation3 + $0x208] sm:$0xff] }
 0x15d   :  { %1383 = vst.msk [vmem:[#allocation3 + $0x48] sm:$0xff] %vm1379_vm5, %v1290_v32  ;;  %6169 = vmatmul.mubr.msk.f32.gmra.mrb[84].mxu0 %vm873_vm2, %v2375_v20 }
 0x15e   :  { %1829 = vst.msk [vmem:[#allocation3 + $0x8] sm:$0xff] %vm1186_vm4, %v1734_v6  ;;  %v801_v6 = vmul.f32 0.2, %v643_v19 }
 0x15f   :  { %1753 = vrot.lane.b32.xlu0 %v7128_v45, %s6490_s27  ;;  %4638 = vst.msk [vmem:[#allocation3 + $0x208] sm:$0xff] %vm873_vm2, %v4606_v50  ;;  %v7570_v50 = vld [vmem:[#allocation2 + $0x138] sm:$0xff] }
 0x160   :  { %1303 = vrot.lane.b32.xlu1 %v7101_v22, %s6489_s22  ;;  %v2121_v35 = vpop.permute.xlu0 %2120  ;;  %v1477_v15 = vpop.permute.xlu1 %1476  ;;  %1020 = vst.msk [vmem:[#allocation3 + $0x270] sm:$0xff] %vm873_vm2, %v7570_v50 }
 0x161   :  { %1573 = vst.msk [vmem:[#allocation3] sm:$0xff] %vm1572_vm10, %v1477_v15  ;;  %v4605_v1 = vld [vmem:[#allocation2 + $0x122] sm:$0xff] }
 0x162   :  { %4637 = vst.msk [vmem:[#allocation3 + $0x1f0] sm:$0xff] %vm873_vm2, %v4605_v1  ;;  %v7566_v15 = vld [vmem:[#allocation2 + $0x142] sm:$0xff] }
 0x163   :  { %2140 = vrot.lane.b32.xlu0 %v7365_v24, %s6492_s23  ;;  %v7572_v1 = vld [vmem:[#allocation2 + $0x140] sm:$0xff]  ;;  %2301 = vst.msk [vmem:[#allocation3 + $0x238] sm:$0xff] %vm873_vm2, %v7566_v15 }
 0x164   :  { %1116 = vrot.lane.b32.xlu1 %v7351_v28, %s6490_s27  ;;  %v1740_v22 = vpop.permute.xlu0 %1739  ;;  %v1479_v18 = vpop.permute.xlu1 %1478  ;;  %v648_v28 = vadd.f32 %v7347_v34, %v7458_v23  ;;  %v7559_v23 = vld [vmem:[#allocation2 + $0x13a] sm:$0xff]  ;;  %1021 = vst.msk [vmem:[#allocation3 + $0x288] sm:$0xff] %vm873_vm2, %v7572_v1 }
 0x165   :  { %1832 = vst.msk [vmem:[#allocation3 + $0x50] sm:$0xff] %vm1186_vm4, %v1740_v22  ;;  %v7574_v22 = vld [vmem:[#allocation2 + $0x139] sm:$0xff] }
 0x166   :  { %1574 = vst.msk [vmem:[#allocation3 + $0x18] sm:$0xff] %vm1572_vm10, %v1479_v18  ;;  %v802_v21 = vmul.f32 0.2, %v648_v28  ;;  %vm738_vm12 = vcmp.ge.f32.partialorder %v648_v28, 0.0 }
 0x167   :  { %1759 = vrot.lane.b32.xlu0 %v7146_v55, %s6490_s27  ;;  %2300 = vst.msk [vmem:[#allocation3 + $0x220] sm:$0xff] %vm873_vm2, %v7559_v23  ;;  %1661 = vst.msk [vmem:[#allocation3 + $0x248] sm:$0xff] %vm873_vm2, %v7574_v22 }
 0x168   :  { %1309 = vrot.lane.b32.xlu1 %v7120_v39, %s6489_s22  ;;  %v2119_v7 = vpop.permute.xlu0 %2118  ;;  %v1095_v32 = vpop.permute.xlu1 %1094  ;;  %v865_v39 = vsel %vm737_vm11, %v643_v19, %v801_v6  ;;  %v7578_v19 = vld [vmem:[#allocation2 + $0x141] sm:$0xff] }
 0x169   :  { %1189 = vst.msk [vmem:[#allocation3 + $0x30] sm:$0xff] %vm1186_vm4, %v1095_v32 }
 0x16a   :  { %3297 = vst.msk [vmem:[#allocation2 + $0x139] sm:$0xff] %vm873_vm2, %v865_v39  ;;  %1662 = vst.msk [vmem:[#allocation3 + $0x260] sm:$0xff] %vm873_vm2, %v7578_v19  ;;  %v2381_v6 = vld [vmem:[#allocation3 + $0x238] sm:$0xff]  ;;  %v653_v39 = vadd.f32 %v7347_v34, %v7469_v26 }
 0x16b   :  { %1946 = vrot.lane.b32.xlu0 %v7375_v57, %s6489_s22 }
 0x16c   :  { %1496 = vrot.lane.b32.xlu1 %v7358_v38, %s6492_s23  ;;  %v1929_v36 = vpop.permute.xlu0 %1928  ;;  %v866_v38 = vsel %vm738_vm12, %v648_v28, %v802_v21  ;;  %v803_v26 = vmul.f32 0.2, %v653_v39  ;;  %vm739_vm13 = vcmp.ge.f32.partialorder %v653_v39, 0.0 }
 0x16d   :  { %v1288_v20 = vpop.permute.xlu1 %1287  ;;  %2023 = vst.msk [vmem:[#allocation3 + $0x20] sm:$0xff] %vm1379_vm5, %v1929_v36 }
 0x16e   :  { %1382 = vst.msk [vmem:[#allocation3 + $0x30] sm:$0xff] %vm1379_vm5, %v1288_v20  ;;  %v2378_v32 = vld [vmem:[#allocation3 + $0x220] sm:$0xff] }
 0x16f   :  { %2215 = vst.msk [vmem:[#allocation3 + $0x20] sm:$0xff] %vm1572_vm10, %v2121_v35  ;;  %2138 = vrot.lane.b32.xlu0 %v7377_v29, %s6492_s23  ;;  %6171 = vmatprep.mubr.msk.f32.mxu0 %vm873_vm2, %v2378_v32  ;;  %v7626_v32 = vld [vmem:[#allocation2 + $0x152] sm:$0xff] }
 0x170   :  { %1498 = vrot.lane.b32.xlu1 %v7353_v61, %s6492_s23  ;;  %3298 = vst.msk [vmem:[#allocation2 + $0x141] sm:$0xff] %vm873_vm2, %v866_v38  ;;  %6172 = vmatmul.mubr.msk.f32.gmra.mrb[86].mxu0 %vm873_vm2, %v2381_v6  ;;  %2302 = vst.msk [vmem:[#allocation3 + $0x250] sm:$0xff] %vm873_vm2, %v7626_v32 }
 0x171   :  { %v1738_v35 = vpop.permute.xlu0 %1737  ;;  %v1101_v18 = vpop.permute.xlu1 %1100 }
 0x172   :  { %1831 = vst.msk [vmem:[#allocation3 + $0x38] sm:$0xff] %vm1186_vm4, %v1738_v35  ;;  %1192 = vst.msk [vmem:[#allocation3 + $0x78] sm:$0xff] %vm1186_vm4, %v1101_v18 }
 0x173   :  { %1948 = vrot.lane.b32.xlu0 %v7367_v47, %s6489_s22 }
 0x174   :  { %1114 = vrot.lane.b32.xlu1 %v7360_v48, %s6490_s27 }
 0x175   :  { %v7596_v61 = vpop.permute.xlu0 %2124  ;;  %v1294_v28 = vpop.permute.xlu1 %1293 }
 0x176   :  { %1385 = vst.msk [vmem:[#allocation3 + $0x78] sm:$0xff] %vm1379_vm5, %v1294_v28  ;;  %v867_v28 = vsel %vm739_vm13, %v653_v39, %v803_v26 }
 0x177   :  { %1757 = vrot.lane.b32.xlu0 %v7154_v58, %s6490_s27  ;;  %v4607_v20 = vld [vmem:[#allocation2 + $0x13a] sm:$0xff]  ;;  %v4608_v48 = vld [vmem:[#allocation2 + $0x142] sm:$0xff] }
 0x178   :  { %1307 = vrot.lane.b32.xlu1 %v7128_v45, %s6489_s22  ;;  %4639 = vst.msk [vmem:[#allocation3 + $0x220] sm:$0xff] %vm873_vm2, %v4607_v20  ;;  %4640 = vst.msk [vmem:[#allocation3 + $0x238] sm:$0xff] %vm873_vm2, %v4608_v48  ;;  %v658_v45 = vadd.f32 %v7347_v34, %v7467_v2  ;;  %v7638_v20 = vld [vmem:[#allocation2 + $0x158] sm:$0xff] }
 0x179   :  { %v1744_v21 = vpop.permute.xlu0 %1743  ;;  %v1927_v36 = vpop.permute.xlu1 %1926  ;;  %v7640_v48 = vld [vmem:[#allocation2 + $0x151] sm:$0xff]  ;;  %1023 = vst.msk [vmem:[#allocation3 + $0x2b8] sm:$0xff] %vm873_vm2, %v7638_v20 }
 0x17a   :  { %1834 = vst.msk [vmem:[#allocation3 + $0x80] sm:$0xff] %vm1186_vm4, %v1744_v21  ;;  %vm740_vm14 = vcmp.ge.f32.partialorder %v658_v45, 0.0  ;;  %v7632_v21 = vld [vmem:[#allocation2 + $0x15a] sm:$0xff] }
 0x17b   :  { %2022 = vst.msk [vmem:[#allocation3 + $0x8] sm:$0xff] %vm1379_vm5, %v1927_v36  ;;  %2144 = vrot.lane.b32.xlu0 %v7382_v25, %s6492_s23  ;;  %v7636_v36 = vld [vmem:[#allocation2 + $0x150] sm:$0xff] }
 0x17c   :  { %2214 = vst.msk [vmem:[#allocation3 + $0x8] sm:$0xff] %vm1572_vm10, %v2119_v7  ;;  %1120 = vrot.lane.b32.xlu1 %v7365_v24, %s6490_s27  ;;  %v804_v7 = vmul.f32 0.2, %v658_v45 }
 0x17d   :  { %v1931_v38 = vpop.permute.xlu0 %1930  ;;  %2303 = vst.msk [vmem:[#allocation3 + $0x268] sm:$0xff] %vm873_vm2, %v7632_v21  ;;  %3299 = vst.msk [vmem:[#allocation2 + $0x151] sm:$0xff] %vm873_vm2, %v867_v28 }
 0x17e   :  { %v1481_v35 = vpop.permute.xlu1 %1480  ;;  %2024 = vst.msk [vmem:[#allocation3 + $0x38] sm:$0xff] %vm1379_vm5, %v1931_v38  ;;  %v868_v6 = vsel %vm740_vm14, %v658_v45, %v804_v7  ;;  %v7644_v45 = vld [vmem:[#allocation2 + $0x159] sm:$0xff] }
 0x17f   :  { %1575 = vst.msk [vmem:[#allocation3 + $0x30] sm:$0xff] %vm1572_vm10, %v1481_v35  ;;  %1763 = vrot.lane.b32.xlu0 %v7171_v8, %s6490_s27  ;;  %v2313_v35 = vld [vmem:[#allocation3 + $0x18] sm:$0xff] }
 0x180   :  { %1313 = vrot.lane.b32.xlu1 %v7146_v55, %s6489_s22  ;;  %v2310_v55 = vld [vmem:[#allocation3] sm:$0xff]  ;;  %1022 = vst.msk [vmem:[#allocation3 + $0x2a0] sm:$0xff] %vm873_vm2, %v7636_v36  ;;  %1663 = vst.msk [vmem:[#allocation3 + $0x278] sm:$0xff] %vm873_vm2, %v7640_v48 }
 0x181   :  { %v2123_v24 = vpop.permute.xlu0 %2122  ;;  %3300 = vst.msk [vmem:[#allocation2 + $0x159] sm:$0xff] %vm873_vm2, %v868_v6  ;;  %1664 = vst.msk [vmem:[#allocation3 + $0x290] sm:$0xff] %vm873_vm2, %v7644_v45 }
 0x182   :  { %v1483_v18 = vpop.permute.xlu1 %1482  ;;  %2216 = vst.msk [vmem:[#allocation3 + $0x38] sm:$0xff] %vm1572_vm10, %v2123_v24 }
 0x183   :  { %1576 = vst.msk [vmem:[#allocation3 + $0x48] sm:$0xff] %vm1572_vm10, %v1483_v18  ;;  %v2311_v2 = vld [vmem:[#allocation3 + $0x8] sm:$0xff]  ;;  %1950 = vrot.lane.b32.xlu0 %v7388_v3, %s6489_s22  ;;  %v2384_v18 = vld [vmem:[#allocation3 + $0x250] sm:$0xff] }
 0x184   :  { %1500 = vrot.lane.b32.xlu1 %v7375_v57, %s6492_s23  ;;  %2609 = vmatprep.mubr.f32.mxu1 %v2311_v2  ;;  %v2314_v57 = vld [vmem:[#allocation3 + $0x20] sm:$0xff] }
 0x185   :  { %2610 = vmatmul.mubr.f32.vlgmr.msra.gmra.mrb[0].mxu1 %v2310_v55  ;;  %v1933_v39 = vpop.permute.xlu0 %1932  ;;  %6174 = vmatprep.mubr.msk.f32.mxu0 %vm873_vm2, %v2384_v18 }
 0x186   :  { %v1099_v38 = vpop.permute.xlu1 %1098  ;;  %2025 = vst.msk [vmem:[#allocation3 + $0x50] sm:$0xff] %vm1379_vm5, %v1933_v39  ;;  %2614 = vmatprep.mubr.f32.mxu1 %v2314_v57  ;;  %v2316_v2 = vld [vmem:[#allocation3 + $0x30] sm:$0xff] }
 0x187   :  { %1191 = vst.msk [vmem:[#allocation3 + $0x60] sm:$0xff] %vm1186_vm4, %v1099_v38  ;;  %2142 = vrot.lane.b32.xlu0 %v7390_v42, %s6492_s23 }
 0x188   :  { %2217 = vst.msk [vmem:[#allocation3 + $0x50] sm:$0xff] %vm1572_vm10, %v7596_v61  ;;  %1502 = vrot.lane.b32.xlu1 %v7367_v47, %s6492_s23  ;;  %v2387_v61 = vld [vmem:[#allocation3 + $0x268] sm:$0xff] }
 0x189   :  { %2615 = vmatmul.mubr.f32.gmra.mrb[2].mxu1 %v2313_v35  ;;  %v1742_v26 = vpop.permute.xlu0 %1741  ;;  %v2317_v24 = vld [vmem:[#allocation3 + $0x38] sm:$0xff]  ;;  %v4609_v55 = vld [vmem:[#allocation2 + $0x152] sm:$0xff]  ;;  %6175 = vmatmul.mubr.msk.f32.gmra.mrb[88].mxu0 %vm873_vm2, %v2387_v61  ;;  %v4610_v6 = vld [vmem:[#allocation2 + $0x15a] sm:$0xff]  ;;  %v663_v35 = vadd.f32 %v7347_v34, %v7481_v31 }
 0x18a   :  { %v1292_v7 = vpop.permute.xlu1 %1291  ;;  %1833 = vst.msk [vmem:[#allocation3 + $0x68] sm:$0xff] %vm1186_vm4, %v1742_v26  ;;  %2619 = vmatprep.mubr.f32.mxu1 %v2317_v24  ;;  %v7697_v61 = vld [vmem:[#allocation2 + $0x16a] sm:$0xff] }
 0x18b   :  { %1384 = vst.msk [vmem:[#allocation3 + $0x60] sm:$0xff] %vm1379_vm5, %v1292_v7  ;;  %1952 = vrot.lane.b32.xlu0 %v7384_v0, %s6489_s22  ;;  %v805_v24 = vmul.f32 0.2, %v663_v35  ;;  %vm741_vm15 = vcmp.ge.f32.partialorder %v663_v35, 0.0 }
 0x18c   :  { %1118 = vrot.lane.b32.xlu1 %v7377_v29, %s6490_s27  ;;  %4641 = vst.msk [vmem:[#allocation3 + $0x250] sm:$0xff] %vm873_vm2, %v4609_v55  ;;  %4642 = vst.msk [vmem:[#allocation3 + $0x268] sm:$0xff] %vm873_vm2, %v4610_v6  ;;  %v2319_v29 = vld [vmem:[#allocation3 + $0x48] sm:$0xff]  ;;  %v7709_v55 = vld [vmem:[#allocation2 + $0x170] sm:$0xff] }
 0x18d   :  { %2620 = vmatmul.mubr.f32.gmra.mrb[4].mxu1 %v2316_v2  ;;  %v2129_v47 = vpop.permute.xlu0 %2128  ;;  %2304 = vst.msk [vmem:[#allocation3 + $0x280] sm:$0xff] %vm873_vm2, %v7697_v61  ;;  %v7711_v6 = vld [vmem:[#allocation2 + $0x169] sm:$0xff]  ;;  %1025 = vst.msk [vmem:[#allocation3 + $0x2e8] sm:$0xff] %vm873_vm2, %v7709_v55 }
 0x18e   :  { %v1105_v28 = vpop.permute.xlu1 %1104  ;;  %1665 = vst.msk [vmem:[#allocation3 + $0x2a8] sm:$0xff] %vm873_vm2, %v7711_v6 }
 0x18f   :  { %1194 = vst.msk [vmem:[#allocation3 + $0xa8] sm:$0xff] %vm1186_vm4, %v1105_v28  ;;  %v2320_v39 = vld [vmem:[#allocation3 + $0x50] sm:$0xff]  ;;  %1761 = vrot.lane.b32.xlu0 %v7179_v12, %s6490_s27  ;;  %v7707_v28 = vld [vmem:[#allocation2 + $0x168] sm:$0xff] }
 0x190   :  { %1311 = vrot.lane.b32.xlu1 %v7154_v58, %s6489_s22  ;;  %2624 = vmatprep.mubr.f32.mxu1 %v2320_v39  ;;  %v668_v58 = vadd.f32 %v7347_v34, %v7479_v56  ;;  %v869_v56 = vsel %vm741_vm15, %v663_v35, %v805_v24  ;;  %1024 = vst.msk [vmem:[#allocation3 + $0x2d0] sm:$0xff] %vm873_vm2, %v7707_v28 }
 0x191   :  { %2625 = vmatmul.mubr.f32.gmra.mrb[6].mxu1 %v2319_v29  ;;  %v1748_v57 = vpop.permute.xlu0 %1747  ;;  %3301 = vst.msk [vmem:[#allocation2 + $0x169] sm:$0xff] %vm873_vm2, %v869_v56 }
 0x192   :  { %v1298_v38 = vpop.permute.xlu1 %1297  ;;  %1836 = vst.msk [vmem:[#allocation3 + $0xb0] sm:$0xff] %vm1186_vm4, %v1748_v57  ;;  %v806_v31 = vmul.f32 0.2, %v668_v58  ;;  %vm742_vm0 = vcmp.ge.f32.partialorder %v668_v58, 0.0  ;;  %v7715_v57 = vld [vmem:[#allocation2 + $0x171] sm:$0xff] }
 0x193   :  { %1387 = vst.msk [vmem:[#allocation3 + $0xa8] sm:$0xff] %vm1379_vm5, %v1298_v38  ;;  %2148 = vrot.lane.b32.xlu0 %v7393_v60, %s6492_s23 }
 0x194   :  { %1124 = vrot.lane.b32.xlu1 %v7382_v25, %s6490_s27  ;;  %v870_v2 = vsel %vm742_vm0, %v668_v58, %v806_v31  ;;  %1666 = vst.msk [vmem:[#allocation3 + $0x2c0] sm:$0xff] %vm873_vm2, %v7715_v57  ;;  %v2390_v58 = vld [vmem:[#allocation3 + $0x280] sm:$0xff] }
 0x195   :  { %v1935_v26 = vpop.permute.xlu0 %1934  ;;  %6177 = vmatprep.mubr.msk.f32.mxu0 %vm873_vm2, %v2390_v58  ;;  %v7777_v58 = vld [vmem:[#allocation2 + $0x180] sm:$0xff] }
 0x196   :  { %v1485_v7 = vpop.permute.xlu1 %1484  ;;  %2026 = vst.msk [vmem:[#allocation3 + $0x68] sm:$0xff] %vm1379_vm5, %v1935_v26 }
 0x197   :  { %1577 = vst.msk [vmem:[#allocation3 + $0x60] sm:$0xff] %vm1572_vm10, %v1485_v7  ;;  %1767 = vrot.lane.b32.xlu0 %v7219_v44, %s6490_s27 }
 0x198   :  { %1317 = vrot.lane.b32.xlu1 %v7171_v8, %s6489_s22  ;;  %v7703_v8 = vld [vmem:[#allocation2 + $0x172] sm:$0xff] }
 0x199   :  { %v2127_v25 = vpop.permute.xlu0 %2126  ;;  %2305 = vst.msk [vmem:[#allocation3 + $0x298] sm:$0xff] %vm873_vm2, %v7703_v8  ;;  %3302 = vst.msk [vmem:[#allocation2 + $0x171] sm:$0xff] %vm873_vm2, %v870_v2  ;;  %v673_v2 = vadd.f32 %v7347_v34, %v7489_v63 }
 0x19a   :  { %v1487_v18 = vpop.permute.xlu1 %1486  ;;  %2218 = vst.msk [vmem:[#allocation3 + $0x68] sm:$0xff] %vm1572_vm10, %v2127_v25 }
 0x19b   :  { %1578 = vst.msk [vmem:[#allocation3 + $0x78] sm:$0xff] %vm1572_vm10, %v1487_v18  ;;  %1954 = vrot.lane.b32.xlu0 %v7403_v43, %s6489_s22  ;;  %vm743_vm1 = vcmp.ge.f32.partialorder %v673_v2, 0.0 }
 0x19c   :  { %1504 = vrot.lane.b32.xlu1 %v7388_v3, %s6492_s23 }
 0x19d   :  { %v1937_v39 = vpop.permute.xlu0 %1936 }
 0x19e   :  { %v1103_v29 = vpop.permute.xlu1 %1102  ;;  %2027 = vst.msk [vmem:[#allocation3 + $0x80] sm:$0xff] %vm1379_vm5, %v1937_v39 }
 0x19f   :  { %1193 = vst.msk [vmem:[#allocation3 + $0x90] sm:$0xff] %vm1186_vm4, %v1103_v29  ;;  %2146 = vrot.lane.b32.xlu0 %v7405_v49, %s6492_s23 }
 0x1a0   :  { %2219 = vst.msk [vmem:[#allocation3 + $0x80] sm:$0xff] %vm1572_vm10, %v2129_v47  ;;  %1506 = vrot.lane.b32.xlu1 %v7384_v0, %s6492_s23  ;;  %v2322_v47 = vld [vmem:[#allocation3 + $0x60] sm:$0xff]  ;;  %v2393_v26 = vld [vmem:[#allocation3 + $0x298] sm:$0xff] }
 0x1a1   :  { %v1746_v3 = vpop.permute.xlu0 %1745  ;;  %v2323_v35 = vld [vmem:[#allocation3 + $0x68] sm:$0xff]  ;;  %v4611_v24 = vld [vmem:[#allocation2 + $0x16a] sm:$0xff]  ;;  %6178 = vmatmul.mubr.msk.f32.gmra.mrb[90].mxu0 %vm873_vm2, %v2393_v26 }
 0x1a2   :  { %v1296_v38 = vpop.permute.xlu1 %1295  ;;  %1835 = vst.msk [vmem:[#allocation3 + $0x98] sm:$0xff] %vm1186_vm4, %v1746_v3  ;;  %2629 = vmatprep.mubr.f32.mxu1 %v2323_v35  ;;  %v4612_v31 = vld [vmem:[#allocation2 + $0x172] sm:$0xff]  ;;  %v807_v3 = vmul.f32 0.2, %v673_v2  ;;  %v7783_v26 = vld [vmem:[#allocation2 + $0x188] sm:$0xff] }
 0x1a3   :  { %1386 = vst.msk [vmem:[#allocation3 + $0x90] sm:$0xff] %vm1379_vm5, %v1296_v38  ;;  %1956 = vrot.lane.b32.xlu0 %v7395_v10, %s6489_s22  ;;  %2630 = vmatmul.mubr.f32.gmra.mrb[8].mxu1 %v2322_v47  ;;  %v7781_v47 = vld [vmem:[#allocation2 + $0x181] sm:$0xff] }
 0x1a4   :  { %1122 = vrot.lane.b32.xlu1 %v7390_v42, %s6490_s27  ;;  %4643 = vst.msk [vmem:[#allocation3 + $0x280] sm:$0xff] %vm873_vm2, %v4611_v24  ;;  %4644 = vst.msk [vmem:[#allocation3 + $0x298] sm:$0xff] %vm873_vm2, %v4612_v31  ;;  %v2325_v42 = vld [vmem:[#allocation3 + $0x78] sm:$0xff] }
 0x1a5   :  { %v2133_v0 = vpop.permute.xlu0 %2132  ;;  %v7785_v31 = vld [vmem:[#allocation2 + $0x189] sm:$0xff]  ;;  %1667 = vst.msk [vmem:[#allocation3 + $0x2d8] sm:$0xff] %vm873_vm2, %v7781_v47 }
 0x1a6   :  { %v1109_v7 = vpop.permute.xlu1 %1108  ;;  %1668 = vst.msk [vmem:[#allocation3 + $0x2f0] sm:$0xff] %vm873_vm2, %v7785_v31 }
 0x1a7   :  { %1196 = vst.msk [vmem:[#allocation3 + $0xd8] sm:$0xff] %vm1186_vm4, %v1109_v7  ;;  %v2326_v25 = vld [vmem:[#allocation3 + $0x80] sm:$0xff]  ;;  %1765 = vrot.lane.b32.xlu0 %v7215_v41, %s6490_s27 }
 0x1a8   :  { %1315 = vrot.lane.b32.xlu1 %v7179_v12, %s6489_s22  ;;  %2634 = vmatprep.mubr.f32.mxu1 %v2326_v25  ;;  %v678_v12 = vadd.f32 %v7347_v34, %v7487_v62  ;;  %v871_v34 = vsel %vm743_vm1, %v673_v2, %v807_v3  ;;  %v7767_v62 = vld [vmem:[#allocation2 + $0x182] sm:$0xff] }
 0x1a9   :  { %2635 = vmatmul.mubr.f32.gmra.mrb[10].mxu1 %v2325_v42  ;;  %v1752_v18 = vpop.permute.xlu0 %1751  ;;  %2306 = vst.msk [vmem:[#allocation3 + $0x2b0] sm:$0xff] %vm873_vm2, %v7767_v62  ;;  %3303 = vst.msk [vmem:[#allocation2 + $0x181] sm:$0xff] %vm873_vm2, %v871_v34 }
 0x1aa   :  { %v1302_v56 = vpop.permute.xlu1 %1301  ;;  %1838 = vst.msk [vmem:[#allocation3 + $0xe0] sm:$0xff] %vm1186_vm4, %v1752_v18  ;;  %v808_v63 = vmul.f32 0.2, %v678_v12  ;;  %vm744_vm3 = vcmp.ge.f32.partialorder %v678_v12, 0.0 }
 0x1ab   :  { %1389 = vst.msk [vmem:[#allocation3 + $0xd8] sm:$0xff] %vm1379_vm5, %v1302_v56  ;;  %2152 = vrot.lane.b32.xlu0 %v7411_v16, %s6492_s23 }
 0x1ac   :  { %1128 = vrot.lane.b32.xlu1 %v7393_v60, %s6490_s27  ;;  %v872_v35 = vsel %vm744_vm3, %v678_v12, %v808_v63 }
 0x1ad   :  { %v1939_v39 = vpop.permute.xlu0 %1938 }
 0x1ae   :  { %v1489_v29 = vpop.permute.xlu1 %1488  ;;  %2028 = vst.msk [vmem:[#allocation3 + $0x98] sm:$0xff] %vm1379_vm5, %v1939_v39 }
 0x1af   :  { %1579 = vst.msk [vmem:[#allocation3 + $0x90] sm:$0xff] %vm1572_vm10, %v1489_v29  ;;  %1771 = vrot.lane.b32.xlu0 %v7280_v52, %s6490_s27 }
 0x1b0   :  { %1321 = vrot.lane.b32.xlu1 %v7219_v44, %s6489_s22  ;;  %v7775_v44 = vld [vmem:[#allocation2 + $0x18a] sm:$0xff]  ;;  %v2396_v18 = vld [vmem:[#allocation3 + $0x2b0] sm:$0xff] }
 0x1b1   :  { %v2131_v60 = vpop.permute.xlu0 %2130  ;;  %2307 = vst.msk [vmem:[#allocation3 + $0x2c8] sm:$0xff] %vm873_vm2, %v7775_v44  ;;  %3304 = vst.msk [vmem:[#allocation2 + $0x189] sm:$0xff] %vm873_vm2, %v872_v35  ;;  %6180 = vmatprep.mubr.msk.f32.mxu0 %vm873_vm2, %v2396_v18 }
 0x1b2   :  { %v1491_v38 = vpop.permute.xlu1 %1490  ;;  %2220 = vst.msk [vmem:[#allocation3 + $0x98] sm:$0xff] %vm1572_vm10, %v2131_v60 }
 0x1b3   :  { %1580 = vst.msk [vmem:[#allocation3 + $0xa8] sm:$0xff] %vm1572_vm10, %v1491_v38  ;;  %1958 = vrot.lane.b32.xlu0 %v7439_v54, %s6489_s22 }
 0x1b4   :  { %1508 = vrot.lane.b32.xlu1 %v7403_v43, %s6492_s23 }
 0x1b5   :  { %v1941_v7 = vpop.permute.xlu0 %1940 }
 0x1b6   :  { %v1107_v24 = vpop.permute.xlu1 %1106  ;;  %2029 = vst.msk [vmem:[#allocation3 + $0xb0] sm:$0xff] %vm1379_vm5, %v1941_v7 }
 0x1b7   :  { %1195 = vst.msk [vmem:[#allocation3 + $0xc0] sm:$0xff] %vm1186_vm4, %v1107_v24  ;;  %2150 = vrot.lane.b32.xlu0 %v7441_v59, %s6492_s23 }
 0x1b8   :  { %2221 = vst.msk [vmem:[#allocation3 + $0xb0] sm:$0xff] %vm1572_vm10, %v2133_v0  ;;  %1510 = vrot.lane.b32.xlu1 %v7395_v10, %s6492_s23  ;;  %v2328_v0 = vld [vmem:[#allocation3 + $0x90] sm:$0xff]  ;;  %v2399_v56 = vld [vmem:[#allocation3 + $0x2c8] sm:$0xff] }
 0x1b9   :  { %v1750_v43 = vpop.permute.xlu0 %1749  ;;  %v2329_v42 = vld [vmem:[#allocation3 + $0x98] sm:$0xff]  ;;  %6181 = vmatmul.mubr.msk.f32.gmra.mrb[92].mxu0 %vm873_vm2, %v2399_v56 }
 0x1ba   :  { %v1300_v25 = vpop.permute.xlu1 %1299  ;;  %1837 = vst.msk [vmem:[#allocation3 + $0xc8] sm:$0xff] %vm1186_vm4, %v1750_v43  ;;  %2639 = vmatprep.mubr.f32.mxu1 %v2329_v42 }
 0x1bb   :  { %1388 = vst.msk [vmem:[#allocation3 + $0xc0] sm:$0xff] %vm1379_vm5, %v1300_v25  ;;  %1960 = vrot.lane.b32.xlu0 %v7424_v46, %s6489_s22  ;;  %2640 = vmatmul.mubr.f32.gmra.mrb[12].mxu1 %v2328_v0 }
 0x1bc   :  { %1126 = vrot.lane.b32.xlu1 %v7405_v49, %s6490_s27  ;;  %v2331_v49 = vld [vmem:[#allocation3 + $0xa8] sm:$0xff] }
 0x1bd   :  { %v2137_v10 = vpop.permute.xlu0 %2136 }
 0x1be   :  { %v1113_v2 = vpop.permute.xlu1 %1112 }
 0x1bf   :  { %1198 = vst.msk [vmem:[#allocation3 + $0x108] sm:$0xff] %vm1186_vm4, %v1113_v2  ;;  %v2332_v12 = vld [vmem:[#allocation3 + $0xb0] sm:$0xff]  ;;  %1769 = vrot.lane.b32.xlu0 %v7274_v30, %s6490_s27 }
 0x1c0   :  { %1319 = vrot.lane.b32.xlu1 %v7215_v41, %s6489_s22  ;;  %2644 = vmatprep.mubr.f32.mxu1 %v2332_v12 }
 0x1c1   :  { %2645 = vmatmul.mubr.f32.gmra.mrb[14].mxu1 %v2331_v49  ;;  %v1756_v39 = vpop.permute.xlu0 %1755 }
 0x1c2   :  { %v1306_v29 = vpop.permute.xlu1 %1305  ;;  %1840 = vst.msk [vmem:[#allocation3 + $0x110] sm:$0xff] %vm1186_vm4, %v1756_v39 }
 0x1c3   :  { %1391 = vst.msk [vmem:[#allocation3 + $0x108] sm:$0xff] %vm1379_vm5, %v1306_v29  ;;  %2156 = vrot.lane.b32.xlu0 %v7418_v37, %s6492_s23 }
 0x1c4   :  { %1132 = vrot.lane.b32.xlu1 %v7411_v16, %s6490_s27 }
 0x1c5   :  { %v1943_v3 = vpop.permute.xlu0 %1942 }
 0x1c6   :  { %v1493_v63 = vpop.permute.xlu1 %1492  ;;  %2030 = vst.msk [vmem:[#allocation3 + $0xc8] sm:$0xff] %vm1379_vm5, %v1943_v3 }
 0x1c7   :  { %1581 = vst.msk [vmem:[#allocation3 + $0xc0] sm:$0xff] %vm1572_vm10, %v1493_v63  ;;  %1775 = vrot.lane.b32.xlu0 %v7413_v33, %s6490_s27  ;;  %v7825_v41 = vpop.f32.mrb[64].mxu0 }
 0x1c8   :  { %1325 = vrot.lane.b32.xlu1 %v7280_v52, %s6489_s22  ;;  %v7827_v60 = vpop.f32.mrb[65].mxu0 }
 0x1c9   :  { %v2135_v38 = vpop.permute.xlu0 %2134 }
 0x1ca   :  { %2222 = vst.msk [vmem:[#allocation3 + $0xc8] sm:$0xff] %vm1572_vm10, %v2135_v38  ;;  %v1495_v16 = vpop.permute.xlu1 %1494 }
 0x1cb   :  { %1582 = vst.msk [vmem:[#allocation3 + $0xd8] sm:$0xff] %vm1572_vm10, %v1495_v16  ;;  %1962 = vrot.lane.b32.xlu0 %v7420_v40, %s6489_s22  ;;  %v7835_v34 = vpop.f32.mrb[66].mxu0 }
 0x1cc   :  { %1512 = vrot.lane.b32.xlu1 %v7439_v54, %s6492_s23  ;;  %v7837_v52 = vpop.f32.mrb[67].mxu0 }
 0x1cd   :  { %v1945_v35 = vpop.permute.xlu0 %1944 }
 0x1ce   :  { %2031 = vst.msk [vmem:[#allocation3 + $0xe0] sm:$0xff] %vm1379_vm5, %v1945_v35  ;;  %v1111_v7 = vpop.permute.xlu1 %1110  ;;  %v2334_v18 = vld [vmem:[#allocation3 + $0xc0] sm:$0xff]  ;;  %v7887_v35 = vld [vmem:[#allocation2 + $0x18] sm:$0xff] }
 0x1cf   :  { %2223 = vst.msk [vmem:[#allocation3 + $0xe0] sm:$0xff] %vm1572_vm10, %v2137_v10  ;;  %2154 = vrot.lane.b32.xlu0 %v7429_v53, %s6492_s23 }
 0x1d0   :  { %1197 = vst.msk [vmem:[#allocation3 + $0xf0] sm:$0xff] %vm1186_vm4, %v1111_v7  ;;  %1514 = vrot.lane.b32.xlu1 %v7424_v46, %s6492_s23 }
 0x1d1   :  { %v7846_v24 = vpop.f32.mrb[68].mxu0  ;;  %v1754_v54 = vpop.permute.xlu0 %1753  ;;  %v2335_v43 = vld [vmem:[#allocation3 + $0xc8] sm:$0xff]  ;;  %3339 = vst.msk [vmem:[#allocation3 + $0x30] sm:$0xff] %vm873_vm2, %v7887_v35 }
 0x1d2   :  { %v7848_v25 = vpop.f32.mrb[69].mxu0  ;;  %1839 = vst.msk [vmem:[#allocation3 + $0xf8] sm:$0xff] %vm1186_vm4, %v1754_v54  ;;  %v1304_v42 = vpop.permute.xlu1 %1303  ;;  %2649 = vmatprep.mubr.f32.mxu1 %v2335_v43  ;;  %v2337_v12 = vld [vmem:[#allocation3 + $0xd8] sm:$0xff]  ;;  %v7891_v54 = vld [vmem:[#allocation2 + $0x20] sm:$0xff] }
 0x1d3   :  { %1390 = vst.msk [vmem:[#allocation3 + $0xf0] sm:$0xff] %vm1379_vm5, %v1304_v42  ;;  %1964 = vrot.lane.b32.xlu0 %v7427_v51, %s6489_s22  ;;  %2650 = vmatmul.mubr.f32.gmra.mrb[16].mxu1 %v2334_v18  ;;  %v7893_v43 = vld [vmem:[#allocation2 + $0x19] sm:$0xff]  ;;  %v7895_v42 = vld [vmem:[#allocation2 + $0x21] sm:$0xff] }
 0x1d4   :  { %1130 = vrot.lane.b32.xlu1 %v7441_v59, %s6490_s27  ;;  %3977 = vst.msk [vmem:[#allocation3 + $0x8] sm:$0xff] %vm873_vm2, %v7893_v43  ;;  %3978 = vst.msk [vmem:[#allocation3 + $0x20] sm:$0xff] %vm873_vm2, %v7895_v42 }
 0x1d5   :  { %v7856_v46 = vpop.f32.mrb[70].mxu0  ;;  %v2141_v0 = vpop.permute.xlu0 %2140  ;;  %3340 = vst.msk [vmem:[#allocation3 + $0x48] sm:$0xff] %vm873_vm2, %v7891_v54 }
 0x1d6   :  { %v7858_v56 = vpop.f32.mrb[71].mxu0  ;;  %v1117_v10 = vpop.permute.xlu1 %1116  ;;  %v2338_v2 = vld [vmem:[#allocation3 + $0xe0] sm:$0xff] }
 0x1d7   :  { %1200 = vst.msk [vmem:[#allocation3 + $0x138] sm:$0xff] %vm1186_vm4, %v1117_v10  ;;  %1773 = vrot.lane.b32.xlu0 %v7408_v27, %s6490_s27  ;;  %2654 = vmatprep.mubr.f32.mxu1 %v2338_v2  ;;  %v7913_v2 = vld [vmem:[#allocation2 + $0x39] sm:$0xff] }
 0x1d8   :  { %1323 = vrot.lane.b32.xlu1 %v7274_v30, %s6489_s22  ;;  %2655 = vmatmul.mubr.f32.gmra.mrb[18].mxu1 %v2337_v12  ;;  %3980 = vst.msk [vmem:[#allocation3 + $0x50] sm:$0xff] %vm873_vm2, %v7913_v2 }
 0x1d9   :  { %v7865_v59 = vpop.f32.mrb[72].mxu0  ;;  %v1760_v49 = vpop.permute.xlu0 %1759 }
 0x1da   :  { %v7867_v39 = vpop.f32.mrb[73].mxu0  ;;  %1842 = vst.msk [vmem:[#allocation3 + $0x140] sm:$0xff] %vm1186_vm4, %v1760_v49  ;;  %v1310_v29 = vpop.permute.xlu1 %1309  ;;  %v3309_v49 = vld [vmem:[#allocation2 + $0x30] sm:$0xff] }
 0x1db   :  { %1393 = vst.msk [vmem:[#allocation3 + $0x138] sm:$0xff] %vm1379_vm5, %v1310_v29  ;;  %2160 = vrot.lane.b32.xlu0 %v7501_v9, %s6492_s23  ;;  %v3310_v29 = vld [vmem:[#allocation2 + $0x38] sm:$0xff] }
 0x1dc   :  { %1516 = vrot.lane.b32.xlu1 %v7420_v40, %s6492_s23  ;;  %3341 = vst.msk [vmem:[#allocation3 + $0x60] sm:$0xff] %vm873_vm2, %v3309_v49  ;;  %3342 = vst.msk [vmem:[#allocation3 + $0x78] sm:$0xff] %vm873_vm2, %v3310_v29 }
 0x1dd   :  { %v1947_v3 = vpop.permute.xlu0 %1946 }
 0x1de   :  { %v7875_v30 = vpop.f32.mrb[74].mxu0  ;;  %2032 = vst.msk [vmem:[#allocation3 + $0xf8] sm:$0xff] %vm1379_vm5, %v1947_v3  ;;  %v1497_v38 = vpop.permute.xlu1 %1496  ;;  %v4586_v3 = vld [vmem:[#allocation2 + $0x3a] sm:$0xff] }
 0x1df   :  { %v7877_v63 = vpop.f32.mrb[75].mxu0  ;;  %1583 = vst.msk [vmem:[#allocation3 + $0xf0] sm:$0xff] %vm1572_vm10, %v1497_v38  ;;  %1779 = vrot.lane.b32.xlu0 %v7497_v4, %s6490_s27 }
 0x1e0   :  { %1518 = vrot.lane.b32.xlu1 %v7427_v51, %s6492_s23  ;;  %v7911_v51 = vld [vmem:[#allocation2 + $0x31] sm:$0xff]  ;;  %4618 = vst.msk [vmem:[#allocation3 + $0x28] sm:$0xff] %vm873_vm2, %v4586_v3 }
 0x1e1   :  { %v2139_v40 = vpop.permute.xlu0 %2138  ;;  %3979 = vst.msk [vmem:[#allocation3 + $0x38] sm:$0xff] %vm873_vm2, %v7911_v51 }
 0x1e2   :  { %v7885_v16 = vpop.f32.mrb[76].mxu0  ;;  %2224 = vst.msk [vmem:[#allocation3 + $0xf8] sm:$0xff] %vm1572_vm10, %v2139_v40  ;;  %v1499_v18 = vpop.permute.xlu1 %1498 }
 0x1e3   :  { %v7889_v7 = vpop.f32.mrb[77].mxu0  ;;  %1584 = vst.msk [vmem:[#allocation3 + $0x108] sm:$0xff] %vm1572_vm10, %v1499_v18  ;;  %1966 = vrot.lane.b32.xlu0 %v7503_v11, %s6489_s22 }
 0x1e4   :  { %1134 = vrot.lane.b32.xlu1 %v7429_v53, %s6490_s27  ;;  %v4585_v53 = vld [vmem:[#allocation2 + $0x32] sm:$0xff] }
 0x1e5   :  { %v1949_v10 = vpop.permute.xlu0 %1948  ;;  %4617 = vst.msk [vmem:[#allocation3 + $0x10] sm:$0xff] %vm873_vm2, %v4585_v53 }
 0x1e6   :  { %2033 = vst.msk [vmem:[#allocation3 + $0x110] sm:$0xff] %vm1379_vm5, %v1949_v10  ;;  %v1115_v12 = vpop.permute.xlu1 %1114 }
 0x1e7   :  { %2225 = vst.msk [vmem:[#allocation3 + $0x110] sm:$0xff] %vm1572_vm10, %v2141_v0  ;;  %2158 = vrot.lane.b32.xlu0 %v7511_v13, %s6492_s23 }
 0x1e8   :  { %1199 = vst.msk [vmem:[#allocation3 + $0x120] sm:$0xff] %vm1186_vm4, %v1115_v12  ;;  %1327 = vrot.lane.b32.xlu1 %v7408_v27, %s6489_s22  ;;  %v2340_v27 = vld [vmem:[#allocation3 + $0xf0] sm:$0xff] }
 0x1e9   :  { %v1758_v38 = vpop.permute.xlu0 %1757  ;;  %v2341_v0 = vld [vmem:[#allocation3 + $0xf8] sm:$0xff]  ;;  %v7936_v18 = vpop.f32.mrb[78].mxu0 }
 0x1ea   :  { %1841 = vst.msk [vmem:[#allocation3 + $0x128] sm:$0xff] %vm1186_vm4, %v1758_v38  ;;  %v1308_v40 = vpop.permute.xlu1 %1307  ;;  %2659 = vmatprep.mubr.f32.mxu1 %v2341_v0  ;;  %v7938_v12 = vpop.f32.mrb[79].mxu0  ;;  %v2343_v53 = vld [vmem:[#allocation3 + $0x108] sm:$0xff] }
 0x1eb   :  { %1392 = vst.msk [vmem:[#allocation3 + $0x120] sm:$0xff] %vm1379_vm5, %v1308_v40  ;;  %1968 = vrot.lane.b32.xlu0 %v7505_v17, %s6489_s22  ;;  %2660 = vmatmul.mubr.f32.gmra.mrb[20].mxu1 %v2340_v27 }
 0x1ec   :  { %1520 = vrot.lane.b32.xlu1 %v7503_v11, %s6492_s23 }
 0x1ed   :  { %v2145_v10 = vpop.permute.xlu0 %2144 }
 0x1ee   :  { %v1121_v49 = vpop.permute.xlu1 %1120  ;;  %v2344_v29 = vld [vmem:[#allocation3 + $0x110] sm:$0xff] }
 0x1ef   :  { %1202 = vst.msk [vmem:[#allocation3 + $0x168] sm:$0xff] %vm1186_vm4, %v1121_v49  ;;  %1777 = vrot.lane.b32.xlu0 %v7495_v5, %s6490_s27  ;;  %2664 = vmatprep.mubr.f32.mxu1 %v2344_v29  ;;  %v3950_v49 = vld [vmem:[#allocation2 + $0x51] sm:$0xff]  ;;  %v3311_v29 = vld [vmem:[#allocation2 + $0x48] sm:$0xff] }
 0x1f0   :  { %1136 = vrot.lane.b32.xlu1 %v7418_v37, %s6490_s27  ;;  %2665 = vmatmul.mubr.f32.gmra.mrb[22].mxu1 %v2343_v53  ;;  %3982 = vst.msk [vmem:[#allocation3 + $0x80] sm:$0xff] %vm873_vm2, %v3950_v49  ;;  %3343 = vst.msk [vmem:[#allocation3 + $0x90] sm:$0xff] %vm873_vm2, %v3311_v29  ;;  %v4587_v53 = vld [vmem:[#allocation2 + $0x4a] sm:$0xff] }
 0x1f1   :  { %v1764_v11 = vpop.permute.xlu0 %1763  ;;  %4619 = vst.msk [vmem:[#allocation3 + $0x40] sm:$0xff] %vm873_vm2, %v4587_v53 }
 0x1f2   :  { %1844 = vst.msk [vmem:[#allocation3 + $0x170] sm:$0xff] %vm1186_vm4, %v1764_v11  ;;  %v1314_v3 = vpop.permute.xlu1 %1313  ;;  %v4588_v11 = vld [vmem:[#allocation2 + $0x52] sm:$0xff] }
 0x1f3   :  { %1395 = vst.msk [vmem:[#allocation3 + $0x168] sm:$0xff] %vm1379_vm5, %v1314_v3  ;;  %1970 = vrot.lane.b32.xlu0 %v7570_v50, %s6489_s22 }
 0x1f4   :  { %1329 = vrot.lane.b32.xlu1 %v7413_v33, %s6489_s22  ;;  %v7963_v33 = vld [vmem:[#allocation2 + $0x49] sm:$0xff]  ;;  %4620 = vst.msk [vmem:[#allocation3 + $0x58] sm:$0xff] %vm873_vm2, %v4588_v11 }
 0x1f5   :  { %v1951_v38 = vpop.permute.xlu0 %1950  ;;  %3981 = vst.msk [vmem:[#allocation3 + $0x68] sm:$0xff] %vm873_vm2, %v7963_v33 }
 0x1f6   :  { %2034 = vst.msk [vmem:[#allocation3 + $0x128] sm:$0xff] %vm1379_vm5, %v1951_v38  ;;  %v1501_v0 = vpop.permute.xlu1 %1500 }
 0x1f7   :  { %1585 = vst.msk [vmem:[#allocation3 + $0x120] sm:$0xff] %vm1572_vm10, %v1501_v0  ;;  %2162 = vrot.lane.b32.xlu0 %v7574_v22, %s6492_s23 }
 0x1f8   :  { %1522 = vrot.lane.b32.xlu1 %v7505_v17, %s6492_s23 }
 0x1f9   :  { %v2143_v37 = vpop.permute.xlu0 %2142 }
 0x1fa   :  { %2226 = vst.msk [vmem:[#allocation3 + $0x128] sm:$0xff] %vm1572_vm10, %v2143_v37  ;;  %v1503_v40 = vpop.permute.xlu1 %1502 }
 0x1fb   :  { %1586 = vst.msk [vmem:[#allocation3 + $0x138] sm:$0xff] %vm1572_vm10, %v1503_v40  ;;  %1972 = vrot.lane.b32.xlu0 %v7572_v1, %s6489_s22 }
 0x1fc   :  { %1138 = vrot.lane.b32.xlu1 %v7511_v13, %s6490_s27  ;;  %v3312_v13 = vld [vmem:[#allocation2 + $0x50] sm:$0xff] }
 0x1fd   :  { %v1953_v27 = vpop.permute.xlu0 %1952  ;;  %3344 = vst.msk [vmem:[#allocation3 + $0xa8] sm:$0xff] %vm873_vm2, %v3312_v13 }
 0x1fe   :  { %2035 = vst.msk [vmem:[#allocation3 + $0x140] sm:$0xff] %vm1379_vm5, %v1953_v27  ;;  %v1119_v17 = vpop.permute.xlu1 %1118 }
 0x1ff   :  { %2227 = vst.msk [vmem:[#allocation3 + $0x140] sm:$0xff] %vm1572_vm10, %v2145_v10  ;;  %2164 = vrot.lane.b32.xlu0 %v7578_v19, %s6492_s23 }
 0x200   :  { %1201 = vst.msk [vmem:[#allocation3 + $0x150] sm:$0xff] %vm1186_vm4, %v1119_v17  ;;  %1331 = vrot.lane.b32.xlu1 %v7495_v5, %s6489_s22  ;;  %v2346_v5 = vld [vmem:[#allocation3 + $0x120] sm:$0xff] }
 0x201   :  { %v1762_v10 = vpop.permute.xlu0 %1761  ;;  %v2347_v3 = vld [vmem:[#allocation3 + $0x128] sm:$0xff] }
 0x202   :  { %1843 = vst.msk [vmem:[#allocation3 + $0x158] sm:$0xff] %vm1186_vm4, %v1762_v10  ;;  %v1312_v38 = vpop.permute.xlu1 %1311  ;;  %2669 = vmatprep.mubr.f32.mxu1 %v2347_v3  ;;  %v2349_v49 = vld [vmem:[#allocation3 + $0x138] sm:$0xff] }
 0x203   :  { %1394 = vst.msk [vmem:[#allocation3 + $0x150] sm:$0xff] %vm1379_vm5, %v1312_v38  ;;  %1781 = vrot.lane.b32.xlu0 %v7559_v23, %s6490_s27  ;;  %2670 = vmatmul.mubr.f32.gmra.mrb[24].mxu1 %v2346_v5  ;;  %v3951_v3 = vld [vmem:[#allocation2 + $0x61] sm:$0xff]  ;;  %v3952_v38 = vld [vmem:[#allocation2 + $0x69] sm:$0xff] }
 0x204   :  { %1524 = vrot.lane.b32.xlu1 %v7570_v50, %s6492_s23  ;;  %v7985_v0 = vpop.f32.mrb[80].mxu0  ;;  %3983 = vst.msk [vmem:[#allocation3 + $0x98] sm:$0xff] %vm873_vm2, %v3951_v3  ;;  %3984 = vst.msk [vmem:[#allocation3 + $0xb0] sm:$0xff] %vm873_vm2, %v3952_v38  ;;  %v4589_v5 = vld [vmem:[#allocation2 + $0x62] sm:$0xff] }
 0x205   :  { %v2149_v37 = vpop.permute.xlu0 %2148  ;;  %v7987_v40 = vpop.f32.mrb[81].mxu0  ;;  %4621 = vst.msk [vmem:[#allocation3 + $0x70] sm:$0xff] %vm873_vm2, %v4589_v5  ;;  %v4746_v38 = vld [vmem:[%s9550_s3 + $0x8] sm:$0xff]  ;;  %v4747_v5 = vld [vmem:[%s9550_s3 + $0x10] sm:$0xff] }
 0x206   :  { %v1125_v27 = vpop.permute.xlu1 %1124  ;;  %v2350_v17 = vld [vmem:[#allocation3 + $0x140] sm:$0xff] }
 0x207   :  { %1204 = vst.msk [vmem:[#allocation3 + $0x198] sm:$0xff] %vm1186_vm4, %v1125_v27  ;;  %1974 = vrot.lane.b32.xlu0 %v7636_v36, %s6489_s22  ;;  %2674 = vmatprep.mubr.f32.mxu1 %v2350_v17 }
 0x208   :  { %1140 = vrot.lane.b32.xlu1 %v7501_v9, %s6490_s27  ;;  %2675 = vmatmul.mubr.f32.gmra.mrb[26].mxu1 %v2349_v49 }
 0x209   :  { %v1768_v50 = vpop.permute.xlu0 %1767 }
 0x20a   :  { %1846 = vst.msk [vmem:[#allocation3 + $0x1a0] sm:$0xff] %vm1186_vm4, %v1768_v50  ;;  %v1318_v29 = vpop.permute.xlu1 %1317 }
 0x20b   :  { %1397 = vst.msk [vmem:[#allocation3 + $0x198] sm:$0xff] %vm1379_vm5, %v1318_v29  ;;  %2166 = vrot.lane.b32.xlu0 %v7640_v48, %s6492_s23 }
 0x20c   :  { %1333 = vrot.lane.b32.xlu1 %v7497_v4, %s6489_s22 }
 0x20d   :  { %v1955_v13 = vpop.permute.xlu0 %1954 }
 0x20e   :  { %2036 = vst.msk [vmem:[#allocation3 + $0x158] sm:$0xff] %vm1379_vm5, %v1955_v13  ;;  %v1505_v53 = vpop.permute.xlu1 %1504 }
 0x20f   :  { %1587 = vst.msk [vmem:[#allocation3 + $0x150] sm:$0xff] %vm1572_vm10, %v1505_v53  ;;  %1783 = vrot.lane.b32.xlu0 %v7566_v15, %s6490_s27 }
 0x210   :  { %1526 = vrot.lane.b32.xlu1 %v7572_v1, %s6492_s23  ;;  %v3313_v1 = vld [vmem:[#allocation2 + $0x60] sm:$0xff] }
 0x211   :  { %v2147_v9 = vpop.permute.xlu0 %2146  ;;  %3345 = vst.msk [vmem:[#allocation3 + $0xc0] sm:$0xff] %vm873_vm2, %v3313_v1 }
 0x212   :  { %2228 = vst.msk [vmem:[#allocation3 + $0x158] sm:$0xff] %vm1572_vm10, %v2147_v9  ;;  %v1507_v11 = vpop.permute.xlu1 %1506 }
 0x213   :  { %1588 = vst.msk [vmem:[#allocation3 + $0x168] sm:$0xff] %vm1572_vm10, %v1507_v11  ;;  %1976 = vrot.lane.b32.xlu0 %v7638_v20, %s6489_s22 }
 0x214   :  { %1142 = vrot.lane.b32.xlu1 %v7574_v22, %s6490_s27  ;;  %v3314_v22 = vld [vmem:[#allocation2 + $0x68] sm:$0xff]  ;;  %v8031_v50 = vpop.f32.mrb[82].mxu0 }
 0x215   :  { %v1957_v4 = vpop.permute.xlu0 %1956  ;;  %3346 = vst.msk [vmem:[#allocation3 + $0xd8] sm:$0xff] %vm873_vm2, %v3314_v22  ;;  %v8033_v13 = vpop.f32.mrb[83].mxu0 }
 0x216   :  { %2037 = vst.msk [vmem:[#allocation3 + $0x170] sm:$0xff] %vm1379_vm5, %v1957_v4  ;;  %v1123_v10 = vpop.permute.xlu1 %1122  ;;  %v2352_v49 = vld [vmem:[#allocation3 + $0x150] sm:$0xff] }
 0x217   :  { %2229 = vst.msk [vmem:[#allocation3 + $0x170] sm:$0xff] %vm1572_vm10, %v2149_v37  ;;  %2168 = vrot.lane.b32.xlu0 %v7644_v45, %s6492_s23  ;;  %v4590_v37 = vld [vmem:[#allocation2 + $0x6a] sm:$0xff] }
 0x218   :  { %1203 = vst.msk [vmem:[#allocation3 + $0x180] sm:$0xff] %vm1186_vm4, %v1123_v10  ;;  %1335 = vrot.lane.b32.xlu1 %v7559_v23, %s6489_s22 }
 0x219   :  { %v1766_v27 = vpop.permute.xlu0 %1765  ;;  %v2353_v17 = vld [vmem:[#allocation3 + $0x158] sm:$0xff]  ;;  %4622 = vst.msk [vmem:[#allocation3 + $0x88] sm:$0xff] %vm873_vm2, %v4590_v37  ;;  %v4748_v37 = vld [vmem:[%s9550_s3 + $0x18] sm:$0xff] }
 0x21a   :  { %1845 = vst.msk [vmem:[#allocation3 + $0x188] sm:$0xff] %vm1186_vm4, %v1766_v27  ;;  %v1316_v23 = vpop.permute.xlu1 %1315  ;;  %2679 = vmatprep.mubr.f32.mxu1 %v2353_v17  ;;  %v2355_v11 = vld [vmem:[#allocation3 + $0x168] sm:$0xff] }
 0x21b   :  { %1396 = vst.msk [vmem:[#allocation3 + $0x180] sm:$0xff] %vm1379_vm5, %v1316_v23  ;;  %1785 = vrot.lane.b32.xlu0 %v7626_v32, %s6490_s27  ;;  %2680 = vmatmul.mubr.f32.gmra.mrb[28].mxu1 %v2352_v49  ;;  %v8071_v27 = vld [vmem:[#allocation2 + $0x79] sm:$0xff]  ;;  %v8073_v23 = vld [vmem:[#allocation2 + $0x81] sm:$0xff] }
 0x21c   :  { %1528 = vrot.lane.b32.xlu1 %v7636_v36, %s6492_s23  ;;  %3985 = vst.msk [vmem:[#allocation3 + $0xc8] sm:$0xff] %vm873_vm2, %v8071_v27  ;;  %3986 = vst.msk [vmem:[#allocation3 + $0xe0] sm:$0xff] %vm873_vm2, %v8073_v23 }
 0x21d   :  { %v2153_v29 = vpop.permute.xlu0 %2152 }
 0x21e   :  { %v1129_v53 = vpop.permute.xlu1 %1128  ;;  %v2356_v9 = vld [vmem:[#allocation3 + $0x170] sm:$0xff] }
 0x21f   :  { %1206 = vst.msk [vmem:[#allocation3 + $0x1c8] sm:$0xff] %vm1186_vm4, %v1129_v53  ;;  %1978 = vrot.lane.b32.xlu0 %v7707_v28, %s6489_s22  ;;  %2684 = vmatprep.mubr.f32.mxu1 %v2356_v9  ;;  %v4749_v53 = vld [vmem:[%s9550_s3 + $0x20] sm:$0xff] }
 0x220   :  { %1144 = vrot.lane.b32.xlu1 %v7578_v19, %s6490_s27  ;;  %2685 = vmatmul.mubr.f32.gmra.mrb[30].mxu1 %v2355_v11  ;;  %v4745_v19 = vld [vmem:[%s9550_s3] sm:$0xff]  ;;  %v3315_v11 = vld [vmem:[#allocation2 + $0x78] sm:$0xff] }
 0x221   :  { %v1772_v36 = vpop.permute.xlu0 %1771  ;;  %3347 = vst.msk [vmem:[#allocation3 + $0xf0] sm:$0xff] %vm873_vm2, %v3315_v11 }
 0x222   :  { %1848 = vst.msk [vmem:[#allocation3 + $0x1d0] sm:$0xff] %vm1186_vm4, %v1772_v36  ;;  %v1322_v4 = vpop.permute.xlu1 %1321  ;;  %v3316_v36 = vld [vmem:[#allocation2 + $0x80] sm:$0xff] }
 0x223   :  { %1399 = vst.msk [vmem:[#allocation3 + $0x1c8] sm:$0xff] %vm1379_vm5, %v1322_v4  ;;  %2170 = vrot.lane.b32.xlu0 %v7711_v6, %s6492_s23  ;;  %v4591_v4 = vld [vmem:[#allocation2 + $0x7a] sm:$0xff] }
 0x224   :  { %1337 = vrot.lane.b32.xlu1 %v7566_v15, %s6489_s22  ;;  %v6347_v15 = vpack.c.bf16 %v4746_v38, %v4745_v19  ;;  %3348 = vst.msk [vmem:[#allocation3 + $0x108] sm:$0xff] %vm873_vm2, %v3316_v36  ;;  %4623 = vst.msk [vmem:[#allocation3 + $0xa0] sm:$0xff] %vm873_vm2, %v4591_v4  ;;  %v4752_v38 = vld [vmem:[%s9550_s3 + $0x38] sm:$0xff]  ;;  %v4755_v36 = vld [vmem:[%s9550_s3 + $0x50] sm:$0xff] }
 0x225   :  { %v1959_v10 = vpop.permute.xlu0 %1958  ;;  %v4756_v4 = vld [vmem:[%s9550_s3 + $0x58] sm:$0xff] }
 0x226   :  { %2038 = vst.msk [vmem:[#allocation3 + $0x188] sm:$0xff] %vm1379_vm5, %v1959_v10  ;;  %v1509_v3 = vpop.permute.xlu1 %1508  ;;  %6348 = vmatpush1.bf16.msra.mxu0 %v6347_v15  ;;  %v4592_v10 = vld [vmem:[#allocation2 + $0x82] sm:$0xff] }
 0x227   :  { %1589 = vst.msk [vmem:[#allocation3 + $0x180] sm:$0xff] %vm1572_vm10, %v1509_v3  ;;  %1787 = vrot.lane.b32.xlu0 %v7632_v21, %s6490_s27  ;;  %6349 = vmatprep.subr.bf16.mxu0 %v6491_v14 }
 0x228   :  { %1530 = vrot.lane.b32.xlu1 %v7638_v20, %s6492_s23  ;;  %v6350_v20 = vpack.c.bf16 %v4748_v37, %v4747_v5  ;;  %4624 = vst.msk [vmem:[#allocation3 + $0xb8] sm:$0xff] %vm873_vm2, %v4592_v10 }
 0x229   :  { %v2151_v1 = vpop.permute.xlu0 %2150 }
 0x22a   :  { %2230 = vst.msk [vmem:[#allocation3 + $0x188] sm:$0xff] %vm1572_vm10, %v2151_v1  ;;  %v1511_v22 = vpop.permute.xlu1 %1510  ;;  %6351 = vmatpush1.bf16.msra.mxu0 %v6350_v20 }
 0x22b   :  { %1590 = vst.msk [vmem:[#allocation3 + $0x198] sm:$0xff] %vm1572_vm10, %v1511_v22  ;;  %1980 = vrot.lane.b32.xlu0 %v7709_v55, %s6489_s22  ;;  %6352 = vmatprep.subr.bf16.mxu0 %v6491_v14 }
 0x22c   :  { %1146 = vrot.lane.b32.xlu1 %v7640_v48, %s6490_s27  ;;  %v4750_v48 = vld [vmem:[%s9550_s3 + $0x28] sm:$0xff] }
 0x22d   :  { %v1961_v17 = vpop.permute.xlu0 %1960  ;;  %v6353_v9 = vpack.c.bf16 %v4750_v48, %v4749_v53 }
 0x22e   :  { %2039 = vst.msk [vmem:[#allocation3 + $0x1a0] sm:$0xff] %vm1379_vm5, %v1961_v17  ;;  %v1127_v49 = vpop.permute.xlu1 %1126  ;;  %v2358_v15 = vld [vmem:[#allocation3 + $0x180] sm:$0xff] }
 0x22f   :  { %2231 = vst.msk [vmem:[#allocation3 + $0x1a0] sm:$0xff] %vm1572_vm10, %v2153_v29  ;;  %2172 = vrot.lane.b32.xlu0 %v7715_v57, %s6492_s23  ;;  %6354 = vmatpush1.bf16.msra.mxu0 %v6353_v9 }
 0x230   :  { %1205 = vst.msk [vmem:[#allocation3 + $0x1b0] sm:$0xff] %vm1186_vm4, %v1127_v49  ;;  %1339 = vrot.lane.b32.xlu1 %v7626_v32, %s6489_s22  ;;  %6355 = vmatprep.subr.bf16.mxu0 %v6491_v14  ;;  %v4751_v32 = vld [vmem:[%s9550_s3 + $0x30] sm:$0xff]  ;;  %v8110_v22 = vpop.f32.mrb[84].mxu0  ;;  %v4753_v49 = vld [vmem:[%s9550_s3 + $0x40] sm:$0xff] }
 0x231   :  { %v1770_v29 = vpop.permute.xlu0 %1769  ;;  %v2359_v3 = vld [vmem:[#allocation3 + $0x188] sm:$0xff]  ;;  %v6356_v1 = vpack.c.bf16 %v4752_v38, %v4751_v32  ;;  %v8112_v37 = vpop.f32.mrb[85].mxu0  ;;  %v4759_v38 = vld [vmem:[%s9550_s3 + $0x70] sm:$0xff] }
 0x232   :  { %1847 = vst.msk [vmem:[#allocation3 + $0x1b8] sm:$0xff] %vm1186_vm4, %v1770_v29  ;;  %v1320_v19 = vpop.permute.xlu1 %1319  ;;  %2689 = vmatprep.mubr.f32.mxu1 %v2359_v3  ;;  %v2361_v48 = vld [vmem:[#allocation3 + $0x198] sm:$0xff]  ;;  %v4757_v3 = vld [vmem:[%s9550_s3 + $0x60] sm:$0xff] }
 0x233   :  { %1398 = vst.msk [vmem:[#allocation3 + $0x1b0] sm:$0xff] %vm1379_vm5, %v1320_v19  ;;  %1789 = vrot.lane.b32.xlu0 %v7697_v61, %s6490_s27  ;;  %2690 = vmatmul.mubr.f32.gmra.mrb[32].mxu1 %v2358_v15  ;;  %v4758_v19 = vld [vmem:[%s9550_s3 + $0x68] sm:$0xff]  ;;  %v4760_v15 = vld [vmem:[%s9550_s3 + $0x78] sm:$0xff] }
 0x234   :  { %1532 = vrot.lane.b32.xlu1 %v7707_v28, %s6492_s23  ;;  %6357 = vmatpush1.bf16.msra.mxu0 %v6356_v1  ;;  %v4754_v28 = vld [vmem:[%s9550_s3 + $0x48] sm:$0xff]  ;;  %v8165_v1 = vld [vmem:[#allocation2 + $0x91] sm:$0xff] }
 0x235   :  { %v2157_v5 = vpop.permute.xlu0 %2156  ;;  %6358 = vmatprep.subr.bf16.mxu0 %v6491_v14  ;;  %v6359_v53 = vpack.c.bf16 %v4754_v28, %v4753_v49  ;;  %3987 = vst.msk [vmem:[#allocation3 + $0xf8] sm:$0xff] %vm873_vm2, %v8165_v1  ;;  %v4761_v28 = vld [vmem:[%s9550_s3 + $0x80] sm:$0xff] }
 0x236   :  { %v1133_v20 = vpop.permute.xlu1 %1132  ;;  %v2362_v17 = vld [vmem:[#allocation3 + $0x1a0] sm:$0xff] }
 0x237   :  { %1208 = vst.msk [vmem:[#allocation3 + $0x1f8] sm:$0xff] %vm1186_vm4, %v1133_v20  ;;  %1982 = vrot.lane.b32.xlu0 %v7777_v58, %s6489_s22  ;;  %2694 = vmatprep.mubr.f32.mxu1 %v2362_v17  ;;  %v8167_v17 = vld [vmem:[#allocation2 + $0x99] sm:$0xff] }
 0x238   :  { %1148 = vrot.lane.b32.xlu1 %v7644_v45, %s6490_s27  ;;  %2695 = vmatmul.mubr.f32.gmra.mrb[34].mxu1 %v2361_v48  ;;  %v6362_v45 = vpack.c.bf16 %v4756_v4, %v4755_v36  ;;  %3988 = vst.msk [vmem:[#allocation3 + $0x110] sm:$0xff] %vm873_vm2, %v8167_v17  ;;  %v2276_v48 = vld [vmem:[#allocation2 + $0x19a] sm:$0xff]  ;;  %v2277_v36 = vld [vmem:[#allocation2 + $0x1a2] sm:$0xff] }
 0x239   :  { %v1776_v9 = vpop.permute.xlu0 %1775  ;;  %6360 = vmatpush1.bf16.msra.mxu0 %v6359_v53  ;;  %2308 = vst.msk [vmem:[#allocation3 + $0x2e0] sm:$0xff] %vm873_vm2, %v2276_v48  ;;  %v4594_v4 = vld [vmem:[#allocation2 + $0x9a] sm:$0xff]  ;;  %2309 = vst.msk [vmem:[#allocation3 + $0x2f8] sm:$0xff] %vm873_vm2, %v2277_v36 }
 0x23a   :  { %1850 = vst.msk [vmem:[#allocation3 + $0x200] sm:$0xff] %vm1186_vm4, %v1776_v9  ;;  %v1326_v11 = vpop.permute.xlu1 %1325  ;;  %6361 = vmatprep.subr.bf16.mxu0 %v6491_v14  ;;  %v3317_v9 = vld [vmem:[#allocation2 + $0x90] sm:$0xff] }
 0x23b   :  { %1401 = vst.msk [vmem:[#allocation3 + $0x1f8] sm:$0xff] %vm1379_vm5, %v1326_v11  ;;  %2174 = vrot.lane.b32.xlu0 %v7781_v47, %s6492_s23  ;;  %v3318_v11 = vld [vmem:[#allocation2 + $0x98] sm:$0xff] }
 0x23c   :  { %1341 = vrot.lane.b32.xlu1 %v7632_v21, %s6489_s22  ;;  %v6365_v21 = vpack.c.bf16 %v4758_v19, %v4757_v3  ;;  %3349 = vst.msk [vmem:[#allocation3 + $0x120] sm:$0xff] %vm873_vm2, %v3317_v9  ;;  %3350 = vst.msk [vmem:[#allocation3 + $0x138] sm:$0xff] %vm873_vm2, %v3318_v11 }
 0x23d   :  { %v1963_v10 = vpop.permute.xlu0 %1962  ;;  %6363 = vmatpush1.bf16.msra.mxu0 %v6362_v45  ;;  %4626 = vst.msk [vmem:[#allocation3 + $0xe8] sm:$0xff] %vm873_vm2, %v4594_v4 }
 0x23e   :  { %2040 = vst.msk [vmem:[#allocation3 + $0x1b8] sm:$0xff] %vm1379_vm5, %v1963_v10  ;;  %v1513_v29 = vpop.permute.xlu1 %1512  ;;  %6364 = vmatprep.subr.bf16.mxu0 %v6491_v14 }
 0x23f   :  { %1591 = vst.msk [vmem:[#allocation3 + $0x1b0] sm:$0xff] %vm1572_vm10, %v1513_v29  ;;  %1791 = vrot.lane.b32.xlu0 %v7703_v8, %s6490_s27  ;;  %v4764_v29 = vld [vmem:[%s9550_s3 + $0x98] sm:$0xff] }
 0x240   :  { %1534 = vrot.lane.b32.xlu1 %v7709_v55, %s6492_s23  ;;  %v6368_v55 = vpack.c.bf16 %v4760_v15, %v4759_v38 }
 0x241   :  { %v2155_v47 = vpop.permute.xlu0 %2154  ;;  %6366 = vmatpush1.bf16.msra.mxu0 %v6365_v21  ;;  %v1892_v21 = vld [vmem:[#allocation2 + $0x198] sm:$0xff] }
 0x242   :  { %2232 = vst.msk [vmem:[#allocation3 + $0x1b8] sm:$0xff] %vm1572_vm10, %v2155_v47  ;;  %v1515_v32 = vpop.permute.xlu1 %1514  ;;  %6367 = vmatprep.subr.bf16.mxu0 %v6491_v14 }
 0x243   :  { %1592 = vst.msk [vmem:[#allocation3 + $0x1c8] sm:$0xff] %vm1572_vm10, %v1515_v32  ;;  %1984 = vrot.lane.b32.xlu0 %v7783_v26, %s6489_s22  ;;  %v8206_v47 = vpop.f32.mrb[86].mxu0 }
 0x244   :  { %1150 = vrot.lane.b32.xlu1 %v7711_v6, %s6490_s27  ;;  %v4762_v6 = vld [vmem:[%s9550_s3 + $0x88] sm:$0xff]  ;;  %v8210_v38 = vpop.f32.mrb[87].mxu0 }
 0x245   :  { %v1965_v20 = vpop.permute.xlu0 %1964  ;;  %6369 = vmatpush1.bf16.msra.mxu0 %v6368_v55  ;;  %v6371_v53 = vpack.c.bf16 %v4762_v6, %v4761_v28  ;;  %v2084_v6 = vld [vmem:[#allocation2 + $0x199] sm:$0xff] }
 0x246   :  { %2041 = vst.msk [vmem:[#allocation3 + $0x1d0] sm:$0xff] %vm1379_vm5, %v1965_v20  ;;  %v1131_v49 = vpop.permute.xlu1 %1130  ;;  %6370 = vmatprep.subr.bf16.mxu0 %v6491_v14  ;;  %v2364_v3 = vld [vmem:[#allocation3 + $0x1b0] sm:$0xff] }
 0x247   :  { %2233 = vst.msk [vmem:[#allocation3 + $0x1d0] sm:$0xff] %vm1572_vm10, %v2157_v5  ;;  %2176 = vrot.lane.b32.xlu0 %v7785_v31, %s6492_s23  ;;  %v4593_v5 = vld [vmem:[#allocation2 + $0x92] sm:$0xff]  ;;  %v3305_v20 = vld [vmem:[#allocation2] sm:$0xff] }
 0x248   :  { %1207 = vst.msk [vmem:[#allocation3 + $0x1e0] sm:$0xff] %vm1186_vm4, %v1131_v49  ;;  %1343 = vrot.lane.b32.xlu1 %v7697_v61, %s6489_s22  ;;  %v4763_v31 = vld [vmem:[%s9550_s3 + $0x90] sm:$0xff]  ;;  %v4766_v49 = vld [vmem:[%s9550_s3 + $0xa8] sm:$0xff] }
 0x249   :  { %v1774_v45 = vpop.permute.xlu0 %1773  ;;  %v2365_v10 = vld [vmem:[#allocation3 + $0x1b8] sm:$0xff]  ;;  %6372 = vmatpush1.bf16.msra.mxu0 %v6371_v53  ;;  %4625 = vst.msk [vmem:[#allocation3 + $0xd0] sm:$0xff] %vm873_vm2, %v4593_v5  ;;  %v6374_v19 = vpack.c.bf16 %v4764_v29, %v4763_v31  ;;  %3337 = vst.msk [vmem:[#allocation3] sm:$0xff] %vm873_vm2, %v3305_v20  ;;  %v4767_v5 = vld [vmem:[%s9550_s3 + $0xb0] sm:$0xff] }
 0x24a   :  { %1849 = vst.msk [vmem:[#allocation3 + $0x1e8] sm:$0xff] %vm1186_vm4, %v1774_v45  ;;  %v1324_v61 = vpop.permute.xlu1 %1323  ;;  %2699 = vmatprep.mubr.f32.mxu1 %v2365_v10  ;;  %6373 = vmatprep.subr.bf16.mxu0 %v6491_v14  ;;  %v2367_v28 = vld [vmem:[#allocation3 + $0x1c8] sm:$0xff]  ;;  %v2405_v53 = vld [vmem:[#allocation3 + $0x2f8] sm:$0xff]  ;;  %v8244_v10 = vld [vmem:[%s9551_s4] ss:$0 sm:$0xff] }
 0x24b   :  { %1400 = vst.msk [vmem:[#allocation3 + $0x1e0] sm:$0xff] %vm1379_vm5, %v1324_v61  ;;  %1793 = vrot.lane.b32.xlu0 %v7767_v62, %s6490_s27  ;;  %2700 = vmatmul.mubr.f32.gmra.mrb[36].mxu1 %v2364_v3  ;;  %v4765_v62 = vld [vmem:[%s9550_s3 + $0xa0] sm:$0xff] }
 0x24c   :  { %1536 = vrot.lane.b32.xlu1 %v7777_v58, %s6492_s23  ;;  %v2402_v58 = vld [vmem:[#allocation3 + $0x2e0] sm:$0xff]  ;;  %v6377_v9 = vpack.c.bf16 %v4766_v49, %v4765_v62  ;;  %4648 = vst.msk [vmem:[#allocation3 + $0x2f8] sm:$0xff] %vm873_vm2, %v2277_v36  ;;  %v4769_v61 = vld [vmem:[%s9550_s3 + $0xc0] sm:$0xff] }
 0x24d   :  { %v8208_v32 = vpop.permute.xlu0 %2160  ;;  %6375 = vmatpush1.bf16.msra.mxu0 %v6374_v19  ;;  %6183 = vmatprep.mubr.msk.f32.mxu0 %vm873_vm2, %v2402_v58  ;;  %4647 = vst.msk [vmem:[#allocation3 + $0x2e0] sm:$0xff] %vm873_vm2, %v2276_v48  ;;  %v4768_v48 = vld [vmem:[%s9550_s3 + $0xb8] sm:$0xff]  ;;  %v1893_v3 = vld [vmem:[#allocation2 + $0x1a0] sm:$0xff] }
 0x24e   :  { %v1517_v15 = vpop.permute.xlu1 %1516  ;;  %v2368_v55 = vld [vmem:[#allocation3 + $0x1d0] sm:$0xff]  ;;  %6376 = vmatprep.subr.bf16.mxu0 %v6491_v14  ;;  %6184 = vmatmul.mubr.msk.f32.gmra.mrb[94].mxu0 %vm873_vm2, %v2405_v53  ;;  %v6380_v36 = vpack.c.bf16 %v4768_v48, %v4767_v5  ;;  %v8271_v53 = vld [vmem:[#allocation2 + $0xa9] sm:$0xff]  ;;  %v8274_v5 = vld [vmem:[#allocation2 + $0xb1] sm:$0xff] }
 0x24f   :  { %1593 = vst.msk [vmem:[#allocation3 + $0x1e0] sm:$0xff] %vm1572_vm10, %v1517_v15  ;;  %1986 = vrot.lane.b32.xlu0 %v1892_v21, %s6489_s22  ;;  %2704 = vmatprep.mubr.f32.mxu1 %v2368_v55  ;;  %v3369_v19 = vld [vmem:[#allocation2 + $0x1] sm:$0xff] }
 0x250   :  { %1152 = vrot.lane.b32.xlu1 %v7715_v57, %s6490_s27  ;;  %2705 = vmatmul.mubr.f32.gmra.mrb[38].mxu1 %v2367_v28  ;;  %v2085_v28 = vld [vmem:[#allocation2 + $0x1a1] sm:$0xff]  ;;  %3989 = vst.msk [vmem:[#allocation3 + $0x128] sm:$0xff] %vm873_vm2, %v8271_v53  ;;  %3990 = vst.msk [vmem:[#allocation3 + $0x140] sm:$0xff] %vm873_vm2, %v8274_v5 }
 0x251   :  { %v1780_v11 = vpop.permute.xlu0 %1779  ;;  %6378 = vmatpush1.bf16.msra.mxu0 %v6377_v9 }
 0x252   :  { %1852 = vst.msk [vmem:[#allocation3 + $0x230] sm:$0xff] %vm1186_vm4, %v1780_v11  ;;  %v1519_v57 = vpop.permute.xlu1 %1518  ;;  %6379 = vmatprep.subr.bf16.mxu0 %v6491_v14 }
 0x253   :  { %1594 = vst.msk [vmem:[#allocation3 + $0x1f8] sm:$0xff] %vm1572_vm10, %v1519_v57  ;;  %2178 = vrot.lane.b32.xlu0 %v2084_v6, %s6492_s23  ;;  %v3561_v6 = vld [vmem:[#allocation2 + $0x2] sm:$0xff] }
 0x254   :  { %1345 = vrot.lane.b32.xlu1 %v7703_v8, %s6489_s22  ;;  %v4770_v8 = vld [vmem:[%s9550_s3 + $0xc8] sm:$0xff] }
 0x255   :  { %v1967_v4 = vpop.permute.xlu0 %1966  ;;  %6381 = vmatpush1.bf16.msra.mxu0 %v6380_v36  ;;  %v6383_v31 = vpack.c.bf16 %v4770_v8, %v4769_v61  ;;  %v3306_v36 = vld [vmem:[#allocation2 + $0x8] sm:$0xff] }
 0x256   :  { %2042 = vst.msk [vmem:[#allocation3 + $0x1e8] sm:$0xff] %vm1379_vm5, %v1967_v4  ;;  %v1135_v45 = vpop.permute.xlu1 %1134  ;;  %6382 = vmatprep.subr.bf16.mxu0 %v6491_v14  ;;  %v4773_v4 = vld [vmem:[%s9550_s3 + $0xe0] sm:$0xff] }
 0x257   :  { %1209 = vst.msk [vmem:[#allocation3 + $0x210] sm:$0xff] %vm1186_vm4, %v1135_v45  ;;  %1795 = vrot.lane.b32.xlu0 %v7775_v44, %s6490_s27  ;;  %v4771_v44 = vld [vmem:[%s9550_s3 + $0xd0] sm:$0xff]  ;;  %v4774_v45 = vld [vmem:[%s9550_s3 + $0xe8] sm:$0xff] }
 0x258   :  { %1538 = vrot.lane.b32.xlu1 %v7783_v26, %s6492_s23  ;;  %v2611_v29 = vpop.f32.mrb[0].mxu1  ;;  %v4772_v26 = vld [vmem:[%s9550_s3 + $0xd8] sm:$0xff]  ;;  %3338 = vst.msk [vmem:[#allocation3 + $0x18] sm:$0xff] %vm873_vm2, %v3306_v36  ;;  %v6389_v8 = vpack.c.bf16 %v4774_v45, %v4773_v4  ;;  %v3370_v4 = vld [vmem:[#allocation2 + $0x9] sm:$0xff] }
 0x259   :  { %v2612_v21 = vadd.f32 %v8244_v10, %v2611_v29  ;;  %v2613_v15 = vpop.f32.mrb[1].mxu1  ;;  %v2159_v55 = vpop.permute.xlu0 %2158  ;;  %6384 = vmatpush1.bf16.msra.mxu0 %v6383_v31  ;;  %v6386_v58 = vpack.c.bf16 %v4772_v26, %v4771_v44  ;;  %v3319_v31 = vld [vmem:[#allocation2 + $0xa8] sm:$0xff]  ;;  %v3320_v29 = vld [vmem:[#allocation2 + $0xb0] sm:$0xff] }
 0x25a   :  { %2234 = vst.msk [vmem:[#allocation3 + $0x1e8] sm:$0xff] %vm1572_vm10, %v2159_v55  ;;  %v1328_v20 = vpop.permute.xlu1 %1327  ;;  %6385 = vmatprep.subr.bf16.mxu0 %v6491_v14 }
 0x25b   :  { %v2837_v62 = vadd.f32 %v7827_v60, %v2612_v21  ;;  %1402 = vst.msk [vmem:[#allocation3 + $0x210] sm:$0xff] %vm1379_vm5, %v1328_v20  ;;  %1988 = vrot.lane.b32.xlu0 %v1893_v3, %s6489_s22 }
 0x25c   :  { %3433 = vrot.lane.b32.xlu1 %v3369_v19, %s6490_s27  ;;  %v2616_v49 = vpop.f32.mrb[2].mxu1  ;;  %v8294_v19 = vpop.f32.mrb[88].mxu0  ;;  %3351 = vst.msk [vmem:[#allocation3 + $0x150] sm:$0xff] %vm873_vm2, %v3319_v31  ;;  %3352 = vst.msk [vmem:[#allocation3 + $0x168] sm:$0xff] %vm873_vm2, %v3320_v29  ;;  %v8330_v31 = vld [vmem:[#allocation2 + $0x30] sm:$0xff] }
 0x25d   :  { %v2617_v9 = vadd.f32 %v8244_v10, %v2616_v49  ;;  %v2618_v11 = vpop.f32.mrb[3].mxu1  ;;  %v1969_v57 = vpop.permute.xlu0 %1968  ;;  %v3027_v60 = vmul.f32 0.2, %v2837_v62  ;;  %6387 = vmatpush1.bf16.msra.mxu0 %v6386_v58  ;;  %vm2995_vm6 = vcmp.ge.f32.partialorder %v2837_v62, 0.0  ;;  %v8306_v49 = vld [vmem:[#allocation2 + $0x1a] sm:$0xff] }
 0x25e   :  { %2043 = vst.msk [vmem:[#allocation3 + $0x200] sm:$0xff] %vm1379_vm5, %v1969_v57  ;;  %v1521_v48 = vpop.permute.xlu1 %1520  ;;  %6388 = vmatprep.subr.bf16.mxu0 %v6491_v14  ;;  %v2370_v57 = vld [vmem:[#allocation3 + $0x1e0] sm:$0xff] }
 0x25f   :  { %v2842_v61 = vadd.f32 %v7825_v41, %v2617_v9  ;;  %2235 = vst.msk [vmem:[#allocation3 + $0x200] sm:$0xff] %vm1572_vm10, %v8208_v32  ;;  %1595 = vst.msk [vmem:[#allocation3 + $0x210] sm:$0xff] %vm1572_vm10, %v1521_v48  ;;  %2180 = vrot.lane.b32.xlu0 %v2085_v28, %s6492_s23  ;;  %v4595_v41 = vld [vmem:[#allocation2 + $0xaa] sm:$0xff]  ;;  %v4596_v32 = vld [vmem:[#allocation2 + $0xb2] sm:$0xff]  ;;  %v8303_v26 = vsel %vm2995_vm6, %v2837_v62, %v3027_v60  ;;  %v8308_v28 = vpop.f32.mrb[89].mxu0 }
 0x260   :  { %3625 = vrot.lane.b32.xlu1 %v3561_v6, %s6489_s22  ;;  %v2621_v3 = vpop.f32.mrb[4].mxu1  ;;  %4627 = vst.msk [vmem:[#allocation3 + $0x100] sm:$0xff] %vm873_vm2, %v4595_v41  ;;  %4628 = vst.msk [vmem:[#allocation3 + $0x118] sm:$0xff] %vm873_vm2, %v4596_v32  ;;  %v4775_v6 = vld [vmem:[%s9550_s3 + $0xf0] sm:$0xff]  ;;  %v4776_v9 = vld [vmem:[%s9550_s3 + $0xf8] sm:$0xff] }
 0x261   :  { %vm2996_vm7 = vcmp.ge.f32.partialorder %v2842_v61, 0.0  ;;  %v3028_v21 = vmul.f32 0.2, %v2842_v61  ;;  %v2622_v15 = vadd.f32 %v8244_v10, %v2621_v3  ;;  %v2623_v55 = vpop.f32.mrb[5].mxu1  ;;  %v1778_v20 = vpop.permute.xlu0 %1777  ;;  %v2371_v44 = vld [vmem:[#allocation3 + $0x1e8] sm:$0xff]  ;;  %6390 = vmatpush1.bf16.msra.mxu0 %v6389_v8  ;;  %v6392_v60 = vpack.c.bf16 %v4776_v9, %v4775_v6  ;;  %v3562_v41 = vld [vmem:[#allocation2 + $0xa] sm:$0xff] }
 0x262   :  { %1851 = vst.msk [vmem:[#allocation3 + $0x218] sm:$0xff] %vm1186_vm4, %v1778_v20  ;;  %v1137_v58 = vpop.permute.xlu1 %1136  ;;  %2709 = vmatprep.mubr.f32.mxu1 %v2371_v44  ;;  %6391 = vmatprep.subr.bf16.mxu0 %v6491_v14  ;;  %v2373_v14 = vld [vmem:[#allocation3 + $0x1f8] sm:$0xff] }
 0x263   :  { %v8317_v62 = vsel %vm2996_vm7, %v2842_v61, %v3028_v21  ;;  %v2847_v11 = vadd.f32 %v7837_v52, %v2622_v15  ;;  %1210 = vst.msk [vmem:[#allocation3 + $0x228] sm:$0xff] %vm1186_vm4, %v1137_v58  ;;  %4073 = vrot.lane.b32.xlu0 %v8306_v49, %s6490_s27  ;;  %2710 = vmatmul.mubr.f32.gmra.mrb[40].mxu1 %v2370_v57  ;;  %v8349_v6 = vld [vmem:[#allocation2 + $0x22] sm:$0xff] }
 0x264   :  { %3817 = vrot.lane.b32.xlu1 %v7887_v35, %s6492_s23  ;;  %v6301_v48 = vpack.c.bf16 %v8317_v62, %v8303_v26  ;;  %v2626_v36 = vpop.f32.mrb[6].mxu1  ;;  %v4015_v20 = vld [vmem:[#allocation2 + $0x62] sm:$0xff] }
 0x265   :  { %v2627_v52 = vadd.f32 %v8244_v10, %v2626_v36  ;;  %v2628_v45 = vpop.f32.mrb[7].mxu1  ;;  %v1971_v61 = vpop.permute.xlu0 %1970  ;;  %6393 = vmatpush1.bf16.msra.mxu0 %v6392_v60  ;;  %v3029_v29 = vmul.f32 0.2, %v2847_v11  ;;  %vm2997_vm8 = vcmp.ge.f32.partialorder %v2847_v11, 0.0  ;;  %v8357_v60 = vld [vmem:[#allocation2 + $0x38] sm:$0xff] }
 0x266   :  { %2044 = vst.msk [vmem:[#allocation3 + $0x218] sm:$0xff] %vm1379_vm5, %v1971_v61  ;;  %v1330_v8 = vpop.permute.xlu1 %1329  ;;  %v2374_v35 = vld [vmem:[#allocation3 + $0x200] sm:$0xff]  ;;  %v2376_v36 = vld [vmem:[#allocation3 + $0x210] sm:$0xff] }
 0x267   :  { %v2852_v3 = vadd.f32 %v7835_v34, %v2627_v52  ;;  %1403 = vst.msk [vmem:[#allocation3 + $0x228] sm:$0xff] %vm1379_vm5, %v1330_v8  ;;  %4265 = vrot.lane.b32.xlu0 %v8330_v31, %s6489_s22  ;;  %2714 = vmatprep.mubr.f32.mxu1 %v2374_v35  ;;  %v8338_v55 = vsel %vm2997_vm8, %v2847_v11, %v3029_v29  ;;  %v8368_v45 = vld [vmem:[#allocation2 + $0xc9] sm:$0xff] }
 0x268   :  { %3435 = vrot.lane.b32.xlu1 %v3370_v4, %s6490_s27  ;;  %2715 = vmatmul.mubr.f32.gmra.mrb[42].mxu1 %v2373_v14  ;;  %v8364_v4 = vld [vmem:[#allocation2 + $0xc0] sm:$0xff]  ;;  %3992 = vst.msk [vmem:[#allocation3 + $0x170] sm:$0xff] %vm873_vm2, %v8368_v45  ;;  %v4598_v35 = vld [vmem:[#allocation2 + $0xca] sm:$0xff] }
 0x269   :  { %vm2998_vm9 = vcmp.ge.f32.partialorder %v2852_v3, 0.0  ;;  %v3030_v32 = vmul.f32 0.2, %v2852_v3  ;;  %v2163_v21 = vpop.permute.xlu0 %2162  ;;  %3353 = vst.msk [vmem:[#allocation3 + $0x180] sm:$0xff] %vm873_vm2, %v8364_v4  ;;  %v4597_v8 = vld [vmem:[#allocation2 + $0xc2] sm:$0xff]  ;;  %4630 = vst.msk [vmem:[#allocation3 + $0x148] sm:$0xff] %vm873_vm2, %v4598_v35 }
 0x26a   :  { %2236 = vst.msk [vmem:[#allocation3 + $0x218] sm:$0xff] %vm1572_vm10, %v2163_v21  ;;  %v1523_v15 = vpop.permute.xlu1 %1522 }
 0x26b   :  { %v8340_v34 = vsel %vm2998_vm9, %v2852_v3, %v3030_v32  ;;  %1596 = vst.msk [vmem:[#allocation3 + $0x228] sm:$0xff] %vm1572_vm10, %v1523_v15  ;;  %4457 = vrot.lane.b32.xlu0 %v7911_v51, %s6492_s23 }
 0x26c   :  { %3627 = vrot.lane.b32.xlu1 %v3562_v41, %s6489_s22  ;;  %4629 = vst.msk [vmem:[#allocation3 + $0x130] sm:$0xff] %vm873_vm2, %v4597_v8 }
 0x26d   :  { %v1973_v44 = vpop.permute.xlu0 %1972 }
 0x26e   :  { %2045 = vst.msk [vmem:[#allocation3 + $0x230] sm:$0xff] %vm1379_vm5, %v1973_v44  ;;  %v1139_v58 = vpop.permute.xlu1 %1138 }
 0x26f   :  { %1211 = vst.msk [vmem:[#allocation3 + $0x240] sm:$0xff] %vm1186_vm4, %v1139_v58  ;;  %4075 = vrot.lane.b32.xlu0 %v8349_v6, %s6490_s27  ;;  %v4011_v58 = vld [vmem:[#allocation2 + $0x32] sm:$0xff] }
 0x270   :  { %3819 = vrot.lane.b32.xlu1 %v7891_v54, %s6492_s23  ;;  %v8366_v54 = vld [vmem:[#allocation2 + $0xc1] sm:$0xff] }
 0x271   :  { %v2165_v9 = vpop.permute.xlu0 %2164  ;;  %v2377_v11 = vld [vmem:[#allocation3 + $0x218] sm:$0xff]  ;;  %3991 = vst.msk [vmem:[#allocation3 + $0x158] sm:$0xff] %vm873_vm2, %v8366_v54 }
 0x272   :  { %2237 = vst.msk [vmem:[#allocation3 + $0x230] sm:$0xff] %vm1572_vm10, %v2165_v9  ;;  %v1332_v57 = vpop.permute.xlu1 %1331  ;;  %2719 = vmatprep.mubr.f32.mxu1 %v2377_v11  ;;  %v2379_v9 = vld [vmem:[#allocation3 + $0x228] sm:$0xff] }
 0x273   :  { %1404 = vst.msk [vmem:[#allocation3 + $0x240] sm:$0xff] %vm1379_vm5, %v1332_v57  ;;  %4267 = vrot.lane.b32.xlu0 %v8357_v60, %s6489_s22  ;;  %2720 = vmatmul.mubr.f32.gmra.mrb[44].mxu1 %v2376_v36 }
 0x274   :  { %3437 = vrot.lane.b32.xlu1 %v7893_v43, %s6490_s27  ;;  %v3322_v43 = vld [vmem:[#allocation2 + $0xc8] sm:$0xff]  ;;  %v8386_v41 = vpop.f32.mrb[90].mxu0 }
 0x275   :  { %v1782_v52 = vpop.permute.xlu0 %1781  ;;  %3354 = vst.msk [vmem:[#allocation3 + $0x198] sm:$0xff] %vm873_vm2, %v3322_v43  ;;  %v8388_v15 = vpop.f32.mrb[91].mxu0 }
 0x276   :  { %1853 = vst.msk [vmem:[#allocation3 + $0x248] sm:$0xff] %vm1186_vm4, %v1782_v52  ;;  %v1525_v61 = vpop.permute.xlu1 %1524  ;;  %v2631_v29 = vpop.f32.mrb[8].mxu1 }
 0x277   :  { %1597 = vst.msk [vmem:[#allocation3 + $0x240] sm:$0xff] %vm1572_vm10, %v1525_v61  ;;  %4459 = vrot.lane.b32.xlu0 %v7913_v2, %s6492_s23  ;;  %v2632_v3 = vadd.f32 %v8244_v10, %v2631_v29  ;;  %v2633_v14 = vpop.f32.mrb[9].mxu1  ;;  %v8398_v61 = vld [vmem:[#allocation2 + $0x48] sm:$0xff] }
 0x278   :  { %3629 = vrot.lane.b32.xlu1 %v8306_v49, %s6489_s22 }
 0x279   :  { %v1975_v32 = vpop.permute.xlu0 %1974  ;;  %v2380_v21 = vld [vmem:[#allocation3 + $0x230] sm:$0xff]  ;;  %v2857_v44 = vadd.f32 %v7848_v25, %v2632_v3 }
 0x27a   :  { %2046 = vst.msk [vmem:[#allocation3 + $0x248] sm:$0xff] %vm1379_vm5, %v1975_v32  ;;  %v1141_v49 = vpop.permute.xlu1 %1140  ;;  %2724 = vmatprep.mubr.f32.mxu1 %v2380_v21 }
 0x27b   :  { %1212 = vst.msk [vmem:[#allocation3 + $0x258] sm:$0xff] %vm1186_vm4, %v1141_v49  ;;  %4077 = vrot.lane.b32.xlu0 %v4011_v58, %s6490_s27  ;;  %2725 = vmatmul.mubr.f32.gmra.mrb[46].mxu1 %v2379_v9  ;;  %v3031_v43 = vmul.f32 0.2, %v2857_v44  ;;  %vm2999_vm11 = vcmp.ge.f32.partialorder %v2857_v44, 0.0 }
 0x27c   :  { %3821 = vrot.lane.b32.xlu1 %v8330_v31, %s6492_s23  ;;  %v2636_v11 = vpop.f32.mrb[10].mxu1 }
 0x27d   :  { %v2637_v57 = vadd.f32 %v8244_v10, %v2636_v11  ;;  %v2638_v36 = vpop.f32.mrb[11].mxu1  ;;  %v2167_v52 = vpop.permute.xlu0 %2166  ;;  %v8407_v3 = vsel %vm2999_vm11, %v2857_v44, %v3031_v43  ;;  %v8419_v44 = vld [vmem:[#allocation2 + $0x3a] sm:$0xff]  ;;  %v8427_v11 = vld [vmem:[#allocation2 + $0x50] sm:$0xff] }
 0x27e   :  { %2238 = vst.msk [vmem:[#allocation3 + $0x248] sm:$0xff] %vm1572_vm10, %v2167_v52  ;;  %v1334_v25 = vpop.permute.xlu1 %1333  ;;  %v8438_v52 = vld [vmem:[#allocation2 + $0xe1] sm:$0xff]  ;;  %v3323_v43 = vld [vmem:[#allocation2 + $0xd8] sm:$0xff] }
 0x27f   :  { %v2862_v8 = vadd.f32 %v7846_v24, %v2637_v57  ;;  %1405 = vst.msk [vmem:[#allocation3 + $0x258] sm:$0xff] %vm1379_vm5, %v1334_v25  ;;  %4269 = vrot.lane.b32.xlu0 %v8398_v61, %s6489_s22  ;;  %v8434_v57 = vld [vmem:[#allocation2 + $0xd9] sm:$0xff] }
 0x280   :  { %3439 = vrot.lane.b32.xlu1 %v7895_v42, %s6490_s27  ;;  %3993 = vst.msk [vmem:[#allocation3 + $0x188] sm:$0xff] %vm873_vm2, %v8434_v57  ;;  %3994 = vst.msk [vmem:[#allocation3 + $0x1a0] sm:$0xff] %vm873_vm2, %v8438_v52 }
 0x281   :  { %vm3000_vm12 = vcmp.ge.f32.partialorder %v2862_v8, 0.0  ;;  %v3032_v31 = vmul.f32 0.2, %v2862_v8  ;;  %v1784_v35 = vpop.permute.xlu0 %1783  ;;  %3355 = vst.msk [vmem:[#allocation3 + $0x1b0] sm:$0xff] %vm873_vm2, %v3323_v43 }
 0x282   :  { %1854 = vst.msk [vmem:[#allocation3 + $0x260] sm:$0xff] %vm1186_vm4, %v1784_v35  ;;  %v1527_v29 = vpop.permute.xlu1 %1526  ;;  %v4600_v35 = vld [vmem:[#allocation2 + $0xe2] sm:$0xff] }
 0x283   :  { %v8409_v14 = vsel %vm3000_vm12, %v2862_v8, %v3032_v31  ;;  %1598 = vst.msk [vmem:[#allocation3 + $0x258] sm:$0xff] %vm1572_vm10, %v1527_v29  ;;  %4461 = vrot.lane.b32.xlu0 %v7963_v33, %s6492_s23  ;;  %v3324_v8 = vld [vmem:[#allocation2 + $0xe0] sm:$0xff] }
 0x284   :  { %3631 = vrot.lane.b32.xlu1 %v8349_v6, %s6489_s22  ;;  %v2382_v6 = vld [vmem:[#allocation3 + $0x240] sm:$0xff]  ;;  %v4599_v31 = vld [vmem:[#allocation2 + $0xda] sm:$0xff]  ;;  %3356 = vst.msk [vmem:[#allocation3 + $0x1c8] sm:$0xff] %vm873_vm2, %v3324_v8  ;;  %4632 = vst.msk [vmem:[#allocation3 + $0x178] sm:$0xff] %vm873_vm2, %v4600_v35 }
 0x285   :  { %v1977_v42 = vpop.permute.xlu0 %1976  ;;  %v2383_v32 = vld [vmem:[#allocation3 + $0x248] sm:$0xff]  ;;  %4631 = vst.msk [vmem:[#allocation3 + $0x160] sm:$0xff] %vm873_vm2, %v4599_v31  ;;  %v8469_v35 = vld [vmem:[#allocation2 + $0x60] sm:$0xff] }
 0x286   :  { %2047 = vst.msk [vmem:[#allocation3 + $0x260] sm:$0xff] %vm1379_vm5, %v1977_v42  ;;  %v1143_v21 = vpop.permute.xlu1 %1142  ;;  %2729 = vmatprep.mubr.f32.mxu1 %v2383_v32 }
 0x287   :  { %1213 = vst.msk [vmem:[#allocation3 + $0x270] sm:$0xff] %vm1186_vm4, %v1143_v21  ;;  %4079 = vrot.lane.b32.xlu0 %v8419_v44, %s6490_s27  ;;  %2730 = vmatmul.mubr.f32.gmra.mrb[48].mxu1 %v2382_v6 }
 0x288   :  { %3823 = vrot.lane.b32.xlu1 %v8357_v60, %s6492_s23  ;;  %v8436_v60 = vld [vmem:[#allocation2 + $0x51] sm:$0xff] }
 0x289   :  { %v2169_v49 = vpop.permute.xlu0 %2168 }
 0x28a   :  { %2239 = vst.msk [vmem:[#allocation3 + $0x260] sm:$0xff] %vm1572_vm10, %v2169_v49  ;;  %v1336_v9 = vpop.permute.xlu1 %1335 }
 0x28b   :  { %1406 = vst.msk [vmem:[#allocation3 + $0x270] sm:$0xff] %vm1379_vm5, %v1336_v9  ;;  %4271 = vrot.lane.b32.xlu0 %v8427_v11, %s6489_s22 }
 0x28c   :  { %3441 = vrot.lane.b32.xlu1 %v7911_v51, %s6490_s27  ;;  %v8453_v32 = vpop.f32.mrb[92].mxu0 }
 0x28d   :  { %v1786_v36 = vpop.permute.xlu0 %1785  ;;  %v8456_v49 = vpop.f32.mrb[93].mxu0 }
 0x28e   :  { %1855 = vst.msk [vmem:[#allocation3 + $0x278] sm:$0xff] %vm1186_vm4, %v1786_v36  ;;  %v1529_v25 = vpop.permute.xlu1 %1528  ;;  %v2641_v51 = vpop.f32.mrb[12].mxu1  ;;  %v8460_v36 = vld [vmem:[#allocation2 + $0x4a] sm:$0xff] }
 0x28f   :  { %1599 = vst.msk [vmem:[#allocation3 + $0x270] sm:$0xff] %vm1572_vm10, %v1529_v25  ;;  %4463 = vrot.lane.b32.xlu0 %v8436_v60, %s6492_s23  ;;  %v2642_v29 = vadd.f32 %v8244_v10, %v2641_v51  ;;  %v2643_v42 = vpop.f32.mrb[13].mxu1  ;;  %v2385_v25 = vld [vmem:[#allocation3 + $0x258] sm:$0xff] }
 0x290   :  { %3633 = vrot.lane.b32.xlu1 %v4011_v58, %s6489_s22 }
 0x291   :  { %v1979_v21 = vpop.permute.xlu0 %1978  ;;  %v2386_v6 = vld [vmem:[#allocation3 + $0x260] sm:$0xff]  ;;  %v2867_v58 = vadd.f32 %v7858_v56, %v2642_v29 }
 0x292   :  { %2048 = vst.msk [vmem:[#allocation3 + $0x278] sm:$0xff] %vm1379_vm5, %v1979_v21  ;;  %v1145_v9 = vpop.permute.xlu1 %1144  ;;  %2734 = vmatprep.mubr.f32.mxu1 %v2386_v6 }
 0x293   :  { %1214 = vst.msk [vmem:[#allocation3 + $0x288] sm:$0xff] %vm1186_vm4, %v1145_v9  ;;  %4081 = vrot.lane.b32.xlu0 %v8460_v36, %s6490_s27  ;;  %2735 = vmatmul.mubr.f32.gmra.mrb[50].mxu1 %v2385_v25  ;;  %v3033_v29 = vmul.f32 0.2, %v2867_v58  ;;  %vm3001_vm13 = vcmp.ge.f32.partialorder %v2867_v58, 0.0  ;;  %v8478_v9 = vld [vmem:[#allocation2 + $0x61] sm:$0xff] }
 0x294   :  { %3825 = vrot.lane.b32.xlu1 %v8398_v61, %s6492_s23  ;;  %v2646_v43 = vpop.f32.mrb[14].mxu1 }
 0x295   :  { %v2647_v8 = vadd.f32 %v8244_v10, %v2646_v43  ;;  %v2648_v56 = vpop.f32.mrb[15].mxu1  ;;  %v2171_v31 = vpop.permute.xlu0 %2170  ;;  %v8480_v25 = vsel %vm3001_vm13, %v2867_v58, %v3033_v29  ;;  %v8492_v58 = vld [vmem:[#allocation2 + $0x52] sm:$0xff]  ;;  %v8500_v29 = vld [vmem:[#allocation2 + $0x68] sm:$0xff]  ;;  %vm8798_vm13 = vmpackc.low %vm873_vm2, %vm873_vm2 }
 0x296   :  { %2240 = vst.msk [vmem:[#allocation3 + $0x278] sm:$0xff] %vm1572_vm10, %v2171_v31  ;;  %v1338_v51 = vpop.permute.xlu1 %1337 }
 0x297   :  { %v2872_v42 = vadd.f32 %v7856_v46, %v2647_v8  ;;  %1407 = vst.msk [vmem:[#allocation3 + $0x288] sm:$0xff] %vm1379_vm5, %v1338_v51  ;;  %4273 = vrot.lane.b32.xlu0 %v8469_v35, %s6489_s22 }
 0x298   :  { %3443 = vrot.lane.b32.xlu1 %v7913_v2, %s6490_s27 }
 0x299   :  { %vm3002_vm14 = vcmp.ge.f32.partialorder %v2872_v42, 0.0  ;;  %v3034_v61 = vmul.f32 0.2, %v2872_v42  ;;  %v1788_v21 = vpop.permute.xlu0 %1787 }
 0x29a   :  { %1856 = vst.msk [vmem:[#allocation3 + $0x290] sm:$0xff] %vm1186_vm4, %v1788_v21  ;;  %v1531_v6 = vpop.permute.xlu1 %1530  ;;  %v8511_v21 = vld [vmem:[#allocation2 + $0x69] sm:$0xff] }
 0x29b   :  { %v8482_v46 = vsel %vm3002_vm14, %v2872_v42, %v3034_v61  ;;  %1600 = vst.msk [vmem:[#allocation3 + $0x288] sm:$0xff] %vm1572_vm10, %v1531_v6  ;;  %4465 = vrot.lane.b32.xlu0 %v8478_v9, %s6492_s23  ;;  %v8507_v42 = vld [vmem:[#allocation2 + $0xf0] sm:$0xff]  ;;  %v8513_v6 = vld [vmem:[#allocation2 + $0xf9] sm:$0xff] }
 0x29c   :  { %3635 = vrot.lane.b32.xlu1 %v8419_v44, %s6489_s22  ;;  %v2388_v44 = vld [vmem:[#allocation3 + $0x270] sm:$0xff]  ;;  %v8509_v61 = vld [vmem:[#allocation2 + $0xf1] sm:$0xff]  ;;  %3357 = vst.msk [vmem:[#allocation3 + $0x1e0] sm:$0xff] %vm873_vm2, %v8507_v42  ;;  %3996 = vst.msk [vmem:[#allocation3 + $0x1d0] sm:$0xff] %vm873_vm2, %v8513_v6 }
 0x29d   :  { %v1981_v43 = vpop.permute.xlu0 %1980  ;;  %v2389_v8 = vld [vmem:[#allocation3 + $0x278] sm:$0xff]  ;;  %3995 = vst.msk [vmem:[#allocation3 + $0x1b8] sm:$0xff] %vm873_vm2, %v8509_v61 }
 0x29e   :  { %2049 = vst.msk [vmem:[#allocation3 + $0x290] sm:$0xff] %vm1379_vm5, %v1981_v43  ;;  %v1147_v56 = vpop.permute.xlu1 %1146  ;;  %2739 = vmatprep.mubr.f32.mxu1 %v2389_v8  ;;  %v4601_v8 = vld [vmem:[#allocation2 + $0xf2] sm:$0xff] }
 0x29f   :  { %1215 = vst.msk [vmem:[#allocation3 + $0x2a0] sm:$0xff] %vm1186_vm4, %v1147_v56  ;;  %4083 = vrot.lane.b32.xlu0 %v8492_v58, %s6490_s27  ;;  %2740 = vmatmul.mubr.f32.gmra.mrb[52].mxu1 %v2388_v44  ;;  %v4602_v56 = vld [vmem:[#allocation2 + $0xfa] sm:$0xff] }
 0x2a0   :  { %3827 = vrot.lane.b32.xlu1 %v8427_v11, %s6492_s23  ;;  %4633 = vst.msk [vmem:[#allocation3 + $0x190] sm:$0xff] %vm873_vm2, %v4601_v8  ;;  %4634 = vst.msk [vmem:[#allocation3 + $0x1a8] sm:$0xff] %vm873_vm2, %v4602_v56 }
 0x2a1   :  { %v2173_v31 = vpop.permute.xlu0 %2172 }
 0x2a2   :  { %2241 = vst.msk [vmem:[#allocation3 + $0x290] sm:$0xff] %vm1572_vm10, %v2173_v31  ;;  %v1340_v51 = vpop.permute.xlu1 %1339 }
 0x2a3   :  { %1408 = vst.msk [vmem:[#allocation3 + $0x2a0] sm:$0xff] %vm1379_vm5, %v1340_v51  ;;  %4275 = vrot.lane.b32.xlu0 %v8500_v29, %s6489_s22 }
 0x2a4   :  { %3445 = vrot.lane.b32.xlu1 %v7963_v33, %s6490_s27  ;;  %v3326_v33 = vld [vmem:[#allocation2 + $0xf8] sm:$0xff] }
 0x2a5   :  { %v1790_v11 = vpop.permute.xlu0 %1789  ;;  %3358 = vst.msk [vmem:[#allocation3 + $0x1f8] sm:$0xff] %vm873_vm2, %v3326_v33 }
 0x2a6   :  { %1857 = vst.msk [vmem:[#allocation3 + $0x2a8] sm:$0xff] %vm1186_vm4, %v1790_v11  ;;  %v1533_v43 = vpop.permute.xlu1 %1532  ;;  %v2651_v44 = vpop.f32.mrb[16].mxu1 }
 0x2a7   :  { %1601 = vst.msk [vmem:[#allocation3 + $0x2a0] sm:$0xff] %vm1572_vm10, %v1533_v43  ;;  %4467 = vrot.lane.b32.xlu0 %v8511_v21, %s6492_s23  ;;  %v2652_v31 = vadd.f32 %v8244_v10, %v2651_v44  ;;  %v2653_v51 = vpop.f32.mrb[17].mxu1 }
 0x2a8   :  { %3637 = vrot.lane.b32.xlu1 %v8460_v36, %s6489_s22  ;;  %v2391_v36 = vld [vmem:[#allocation3 + $0x288] sm:$0xff] }
 0x2a9   :  { %v1983_v11 = vpop.permute.xlu0 %1982  ;;  %v2392_v2 = vld [vmem:[#allocation3 + $0x290] sm:$0xff]  ;;  %v2877_v43 = vadd.f32 %v7867_v39, %v2652_v31  ;;  %v4207_v31 = vld [vmem:[#allocation2 + $0x78] sm:$0xff] }
 0x2aa   :  { %2050 = vst.msk [vmem:[#allocation3 + $0x2a8] sm:$0xff] %vm1379_vm5, %v1983_v11  ;;  %v1149_v24 = vpop.permute.xlu1 %1148  ;;  %2744 = vmatprep.mubr.f32.mxu1 %v2392_v2 }
 0x2ab   :  { %1216 = vst.msk [vmem:[#allocation3 + $0x2b8] sm:$0xff] %vm1186_vm4, %v1149_v24  ;;  %4085 = vrot.lane.b32.xlu0 %v4015_v20, %s6490_s27  ;;  %v2656_v33 = vpop.f32.mrb[18].mxu1  ;;  %2745 = vmatmul.mubr.f32.gmra.mrb[54].mxu1 %v2391_v36  ;;  %v3035_v2 = vmul.f32 0.2, %v2877_v43  ;;  %vm3003_vm15 = vcmp.ge.f32.partialorder %v2877_v43, 0.0 }
 0x2ac   :  { %3829 = vrot.lane.b32.xlu1 %v8469_v35, %s6492_s23  ;;  %v2657_v8 = vadd.f32 %v8244_v10, %v2656_v33  ;;  %v2658_v56 = vpop.f32.mrb[19].mxu1 }
 0x2ad   :  { %v2175_v44 = vpop.permute.xlu0 %2174  ;;  %v8545_v36 = vsel %vm3003_vm15, %v2877_v43, %v3035_v2  ;;  %v8557_v43 = vld [vmem:[#allocation2 + $0x6a] sm:$0xff]  ;;  %v8565_v2 = vld [vmem:[#allocation2 + $0x80] sm:$0xff] }
 0x2ae   :  { %2242 = vst.msk [vmem:[#allocation3 + $0x2a8] sm:$0xff] %vm1572_vm10, %v2175_v44  ;;  %v1342_v39 = vpop.permute.xlu1 %1341  ;;  %v2882_v51 = vadd.f32 %v7865_v59, %v2657_v8  ;;  %v4025_v59 = vld [vmem:[#allocation2 + $0xda] sm:$0xff] }
 0x2af   :  { %1409 = vst.msk [vmem:[#allocation3 + $0x2b8] sm:$0xff] %vm1379_vm5, %v1342_v39  ;;  %4277 = vrot.lane.b32.xlu0 %v4207_v31, %s6489_s22 }
 0x2b0   :  { %3447 = vrot.lane.b32.xlu1 %v8436_v60, %s6490_s27  ;;  %vm3004_vm0 = vcmp.ge.f32.partialorder %v2882_v51, 0.0  ;;  %v3036_v24 = vmul.f32 0.2, %v2882_v51 }
 0x2b1   :  { %v1792_v35 = vpop.permute.xlu0 %1791 }
 0x2b2   :  { %1858 = vst.msk [vmem:[#allocation3 + $0x2c0] sm:$0xff] %vm1186_vm4, %v1792_v35  ;;  %v1535_v11 = vpop.permute.xlu1 %1534  ;;  %v8547_v33 = vsel %vm3004_vm0, %v2882_v51, %v3036_v24  ;;  %v8572_v51 = vld [vmem:[#allocation2 + $0x109] sm:$0xff] }
 0x2b3   :  { %1602 = vst.msk [vmem:[#allocation3 + $0x2b8] sm:$0xff] %vm1572_vm10, %v1535_v11  ;;  %4469 = vrot.lane.b32.xlu0 %v8071_v27, %s6492_s23  ;;  %v3327_v11 = vld [vmem:[#allocation2 + $0x108] sm:$0xff] }
 0x2b4   :  { %3639 = vrot.lane.b32.xlu1 %v8492_v58, %s6489_s22  ;;  %v2394_v58 = vld [vmem:[#allocation3 + $0x2a0] sm:$0xff]  ;;  %3997 = vst.msk [vmem:[#allocation3 + $0x1e8] sm:$0xff] %vm873_vm2, %v8572_v51  ;;  %3359 = vst.msk [vmem:[#allocation3 + $0x210] sm:$0xff] %vm873_vm2, %v3327_v11 }
 0x2b5   :  { %v1985_v60 = vpop.permute.xlu0 %1984  ;;  %v2395_v8 = vld [vmem:[#allocation3 + $0x2a8] sm:$0xff] }
 0x2b6   :  { %2051 = vst.msk [vmem:[#allocation3 + $0x2c0] sm:$0xff] %vm1379_vm5, %v1985_v60  ;;  %v1151_v56 = vpop.permute.xlu1 %1150  ;;  %2749 = vmatprep.mubr.f32.mxu1 %v2395_v8  ;;  %v3328_v60 = vld [vmem:[#allocation2 + $0x110] sm:$0xff] }
 0x2b7   :  { %1217 = vst.msk [vmem:[#allocation3 + $0x2d0] sm:$0xff] %vm1186_vm4, %v1151_v56  ;;  %4087 = vrot.lane.b32.xlu0 %v8557_v43, %s6490_s27  ;;  %2750 = vmatmul.mubr.f32.gmra.mrb[56].mxu1 %v2394_v58 }
 0x2b8   :  { %3831 = vrot.lane.b32.xlu1 %v8500_v29, %s6492_s23  ;;  %v8574_v29 = vld [vmem:[#allocation2 + $0x111] sm:$0xff]  ;;  %3360 = vst.msk [vmem:[#allocation3 + $0x228] sm:$0xff] %vm873_vm2, %v3328_v60 }
 0x2b9   :  { %v2177_v44 = vpop.permute.xlu0 %2176  ;;  %3998 = vst.msk [vmem:[#allocation3 + $0x200] sm:$0xff] %vm873_vm2, %v8574_v29 }
 0x2ba   :  { %2243 = vst.msk [vmem:[#allocation3 + $0x2c0] sm:$0xff] %vm1572_vm10, %v2177_v44  ;;  %v1344_v39 = vpop.permute.xlu1 %1343 }
 0x2bb   :  { %1410 = vst.msk [vmem:[#allocation3 + $0x2d0] sm:$0xff] %vm1379_vm5, %v1344_v39  ;;  %4279 = vrot.lane.b32.xlu0 %v8565_v2, %s6489_s22 }
 0x2bc   :  { %3449 = vrot.lane.b32.xlu1 %v8478_v9, %s6490_s27 }
 0x2bd   :  { %v1794_v24 = vpop.permute.xlu0 %1793 }
 0x2be   :  { %1859 = vst.msk [vmem:[#allocation3 + $0x2d8] sm:$0xff] %vm1186_vm4, %v1794_v24  ;;  %v1537_v35 = vpop.permute.xlu1 %1536  ;;  %v2661_v8 = vpop.f32.mrb[20].mxu1 }
 0x2bf   :  { %1603 = vst.msk [vmem:[#allocation3 + $0x2d0] sm:$0xff] %vm1572_vm10, %v1537_v35  ;;  %4471 = vrot.lane.b32.xlu0 %v8073_v23, %s6492_s23  ;;  %v2662_v9 = vadd.f32 %v8244_v10, %v2661_v8  ;;  %v2663_v56 = vpop.f32.mrb[21].mxu1  ;;  %v4017_v35 = vld [vmem:[#allocation2 + $0x7a] sm:$0xff] }
 0x2c0   :  { %3641 = vrot.lane.b32.xlu1 %v4015_v20, %s6489_s22  ;;  %v2397_v20 = vld [vmem:[#allocation3 + $0x2b8] sm:$0xff] }
 0x2c1   :  { %v1987_v58 = vpop.permute.xlu0 %1986  ;;  %v2398_v44 = vld [vmem:[#allocation3 + $0x2c0] sm:$0xff]  ;;  %v2887_v39 = vadd.f32 %v7877_v63, %v2662_v9 }
 0x2c2   :  { %2052 = vst.msk [vmem:[#allocation3 + $0x2d8] sm:$0xff] %vm1379_vm5, %v1987_v58  ;;  %v1153_v24 = vpop.permute.xlu1 %1152  ;;  %2754 = vmatprep.mubr.f32.mxu1 %v2398_v44  ;;  %v4209_v9 = vld [vmem:[#allocation2 + $0x90] sm:$0xff] }
 0x2c3   :  { %1218 = vst.msk [vmem:[#allocation3 + $0x2e8] sm:$0xff] %vm1186_vm4, %v1153_v24  ;;  %4089 = vrot.lane.b32.xlu0 %v4017_v35, %s6490_s27  ;;  %v2666_v11 = vpop.f32.mrb[22].mxu1  ;;  %2755 = vmatmul.mubr.f32.gmra.mrb[58].mxu1 %v2397_v20  ;;  %v3037_v58 = vmul.f32 0.2, %v2887_v39  ;;  %vm3005_vm1 = vcmp.ge.f32.partialorder %v2887_v39, 0.0 }
 0x2c4   :  { %3833 = vrot.lane.b32.xlu1 %v4207_v31, %s6492_s23  ;;  %v2667_v60 = vadd.f32 %v8244_v10, %v2666_v11  ;;  %v2668_v8 = vpop.f32.mrb[23].mxu1 }
 0x2c5   :  { %v2179_v56 = vpop.permute.xlu0 %2178  ;;  %v8601_v11 = vsel %vm3005_vm1, %v2887_v39, %v3037_v58  ;;  %v8613_v39 = vld [vmem:[#allocation2 + $0x82] sm:$0xff] }
 0x2c6   :  { %2244 = vst.msk [vmem:[#allocation3 + $0x2d8] sm:$0xff] %vm1572_vm10, %v2179_v56  ;;  %v1346_v63 = vpop.permute.xlu1 %1345  ;;  %v2892_v44 = vadd.f32 %v7875_v30, %v2667_v60  ;;  %v8646_v30 = vld [vmem:[#allocation2 + $0x92] sm:$0xff] }
 0x2c7   :  { %1411 = vst.msk [vmem:[#allocation3 + $0x2e8] sm:$0xff] %vm1379_vm5, %v1346_v63  ;;  %4281 = vrot.lane.b32.xlu0 %v4209_v9, %s6489_s22 }
 0x2c8   :  { %3451 = vrot.lane.b32.xlu1 %v8511_v21, %s6490_s27  ;;  %vm3006_vm3 = vcmp.ge.f32.partialorder %v2892_v44, 0.0  ;;  %v3038_v31 = vmul.f32 0.2, %v2892_v44 }
 0x2c9   :  { %v1796_v24 = vpop.permute.xlu0 %1795 }
 0x2ca   :  { %1860 = vst.msk [vmem:[#allocation3 + $0x2f0] sm:$0xff] %vm1186_vm4, %v1796_v24  ;;  %v1539_v20 = vpop.permute.xlu1 %1538  ;;  %v8603_v8 = vsel %vm3006_vm3, %v2892_v44, %v3038_v31  ;;  %v8621_v44 = vld [vmem:[#allocation2 + $0x98] sm:$0xff]  ;;  %v8628_v31 = vld [vmem:[#allocation2 + $0x121] sm:$0xff] }
 0x2cb   :  { %1604 = vst.msk [vmem:[#allocation3 + $0x2e8] sm:$0xff] %vm1572_vm10, %v1539_v20  ;;  %4473 = vrot.lane.b32.xlu0 %v8165_v1, %s6492_s23 }
 0x2cc   :  { %3643 = vrot.lane.b32.xlu1 %v8557_v43, %s6489_s22  ;;  %v2400_v43 = vld [vmem:[#allocation3 + $0x2d0] sm:$0xff]  ;;  %3999 = vst.msk [vmem:[#allocation3 + $0x218] sm:$0xff] %vm873_vm2, %v8628_v31 }
 0x2cd   :  { %v1989_v21 = vpop.permute.xlu0 %1988  ;;  %v2401_v60 = vld [vmem:[#allocation3 + $0x2d8] sm:$0xff] }
 0x2ce   :  { %2053 = vst.msk [vmem:[#allocation3 + $0x2f0] sm:$0xff] %vm1379_vm5, %v1989_v21  ;;  %v3434_v56 = vpop.permute.xlu1 %3433  ;;  %2759 = vmatprep.mubr.f32.mxu1 %v2401_v60  ;;  %v3329_v21 = vld [vmem:[#allocation2 + $0x120] sm:$0xff]  ;;  %v3330_v60 = vld [vmem:[#allocation2 + $0x128] sm:$0xff] }
 0x2cf   :  { %3529 = vst.msk [vmem:[#allocation3] sm:$0xff] %vm1186_vm4, %v3434_v56  ;;  %4091 = vrot.lane.b32.xlu0 %v8613_v39, %s6490_s27  ;;  %2760 = vmatmul.mubr.f32.gmra.mrb[60].mxu1 %v2400_v43 }
 0x2d0   :  { %3835 = vrot.lane.b32.xlu1 %v8565_v2, %s6492_s23  ;;  %v8630_v2 = vld [vmem:[#allocation2 + $0x129] sm:$0xff]  ;;  %3361 = vst.msk [vmem:[#allocation3 + $0x240] sm:$0xff] %vm873_vm2, %v3329_v21  ;;  %3362 = vst.msk [vmem:[#allocation3 + $0x258] sm:$0xff] %vm873_vm2, %v3330_v60 }
 0x2d1   :  { %v2181_v63 = vpop.permute.xlu0 %2180  ;;  %4000 = vst.msk [vmem:[#allocation3 + $0x230] sm:$0xff] %vm873_vm2, %v8630_v2 }
 0x2d2   :  { %2245 = vst.msk [vmem:[#allocation3 + $0x2f0] sm:$0xff] %vm1572_vm10, %v2181_v63  ;;  %v3626_v58 = vpop.permute.xlu1 %3625 }
 0x2d3   :  { %3721 = vst.msk [vmem:[#allocation3] sm:$0xff] %vm1379_vm5, %v3626_v58  ;;  %4283 = vrot.lane.b32.xlu0 %v8621_v44, %s6489_s22 }
 0x2d4   :  { %3453 = vrot.lane.b32.xlu1 %v8071_v27, %s6490_s27 }
 0x2d5   :  { %v4074_v24 = vpop.permute.xlu0 %4073 }
 0x2d6   :  { %4169 = vst.msk [vmem:[#allocation3 + $0x8] sm:$0xff] %vm1186_vm4, %v4074_v24  ;;  %v3818_v20 = vpop.permute.xlu1 %3817  ;;  %v2671_v56 = vpop.f32.mrb[24].mxu1 }
 0x2d7   :  { %3913 = vst.msk [vmem:[#allocation3] sm:$0xff] %vm1572_vm10, %v3818_v20  ;;  %4475 = vrot.lane.b32.xlu0 %v8167_v17, %s6492_s23  ;;  %v2672_v27 = vadd.f32 %v8244_v10, %v2671_v56  ;;  %v2673_v43 = vpop.f32.mrb[25].mxu1 }
 0x2d8   :  { %3645 = vrot.lane.b32.xlu1 %v4017_v35, %s6489_s22  ;;  %v2403_v35 = vld [vmem:[#allocation3 + $0x2e8] sm:$0xff]  ;;  %v8654_v43 = vld [vmem:[#allocation2 + $0xa8] sm:$0xff] }
 0x2d9   :  { %v4266_v63 = vpop.permute.xlu0 %4265  ;;  %v2404_v58 = vld [vmem:[#allocation3 + $0x2f0] sm:$0xff]  ;;  %v2897_v24 = vadd.f32 %v7889_v7, %v2672_v27 }
 0x2da   :  { %4361 = vst.msk [vmem:[#allocation3 + $0x8] sm:$0xff] %vm1379_vm5, %v4266_v63  ;;  %v3436_v20 = vpop.permute.xlu1 %3435  ;;  %2764 = vmatprep.mubr.f32.mxu1 %v2404_v58 }
 0x2db   :  { %3530 = vst.msk [vmem:[#allocation3 + $0x18] sm:$0xff] %vm1186_vm4, %v3436_v20  ;;  %4093 = vrot.lane.b32.xlu0 %v8646_v30, %s6490_s27  ;;  %v2676_v21 = vpop.f32.mrb[26].mxu1  ;;  %2765 = vmatmul.mubr.f32.gmra.mrb[62].mxu1 %v2403_v35  ;;  %v3039_v63 = vmul.f32 0.2, %v2897_v24  ;;  %vm3007_vm6 = vcmp.ge.f32.partialorder %v2897_v24, 0.0 }
 0x2dc   :  { %3837 = vrot.lane.b32.xlu1 %v4209_v9, %s6492_s23  ;;  %v2677_v60 = vadd.f32 %v8244_v10, %v2676_v21  ;;  %v2678_v56 = vpop.f32.mrb[27].mxu1 }
 0x2dd   :  { %v4458_v7 = vpop.permute.xlu0 %4457  ;;  %v8663_v35 = vsel %vm3007_vm6, %v2897_v24, %v3039_v63  ;;  %v8675_v24 = vld [vmem:[#allocation2 + $0x9a] sm:$0xff]  ;;  %v8683_v63 = vld [vmem:[#allocation2 + $0xb0] sm:$0xff] }
 0x2de   :  { %4553 = vst.msk [vmem:[#allocation3 + $0x8] sm:$0xff] %vm1572_vm10, %v4458_v7  ;;  %v3628_v27 = vpop.permute.xlu1 %3627  ;;  %v2902_v58 = vadd.f32 %v7885_v16, %v2677_v60  ;;  %v4649_v7 = vld [vmem:[#allocation3] sm:$0xff] }
 0x2df   :  { %3722 = vst.msk [vmem:[#allocation3 + $0x18] sm:$0xff] %vm1379_vm5, %v3628_v27  ;;  %4285 = vrot.lane.b32.xlu0 %v8654_v43, %s6489_s22 }
 0x2e0   :  { %3455 = vrot.lane.b32.xlu1 %v8073_v23, %s6490_s27  ;;  %vm3008_vm7 = vcmp.ge.f32.partialorder %v2902_v58, 0.0  ;;  %v3040_v10 = vmul.f32 0.2, %v2902_v58 }
 0x2e1   :  { %v4076_v9 = vpop.permute.xlu0 %4075 }
 0x2e2   :  { %4170 = vst.msk [vmem:[#allocation3 + $0x20] sm:$0xff] %vm1186_vm4, %v4076_v9  ;;  %v3820_v20 = vpop.permute.xlu1 %3819  ;;  %v8665_v21 = vsel %vm3008_vm7, %v2902_v58, %v3040_v10  ;;  %v8690_v58 = vld [vmem:[#allocation2 + $0x139] sm:$0xff]  ;;  %v8692_v9 = vld [vmem:[#allocation2 + $0x141] sm:$0xff] }
 0x2e3   :  { %3914 = vst.msk [vmem:[#allocation3 + $0x18] sm:$0xff] %vm1572_vm10, %v3820_v20  ;;  %4477 = vrot.lane.b32.xlu0 %v8271_v53, %s6492_s23  ;;  %v3331_v20 = vld [vmem:[#allocation2 + $0x138] sm:$0xff] }
 0x2e4   :  { %3647 = vrot.lane.b32.xlu1 %v8613_v39, %s6489_s22  ;;  %4001 = vst.msk [vmem:[#allocation3 + $0x248] sm:$0xff] %vm873_vm2, %v8690_v58  ;;  %4002 = vst.msk [vmem:[#allocation3 + $0x260] sm:$0xff] %vm873_vm2, %v8692_v9 }
 0x2e5   :  { %v4268_v23 = vpop.permute.xlu0 %4267  ;;  %v4650_v60 = vld [vmem:[#allocation3 + $0x8] sm:$0xff]  ;;  %3363 = vst.msk [vmem:[#allocation3 + $0x270] sm:$0xff] %vm873_vm2, %v3331_v20  ;;  %v4021_v20 = vld [vmem:[#allocation2 + $0xaa] sm:$0xff] }
 0x2e6   :  { %4362 = vst.msk [vmem:[#allocation3 + $0x20] sm:$0xff] %vm1379_vm5, %v4268_v23  ;;  %v3438_v56 = vpop.permute.xlu1 %3437  ;;  %4948 = vmatprep.mubr.f32.mxu0 %v4650_v60  ;;  %v3332_v23 = vld [vmem:[#allocation2 + $0x140] sm:$0xff] }
 0x2e7   :  { %3531 = vst.msk [vmem:[#allocation3 + $0x30] sm:$0xff] %vm1186_vm4, %v3438_v56  ;;  %4095 = vrot.lane.b32.xlu0 %v8675_v24, %s6490_s27  ;;  %4949 = vmatmul.mubr.f32.vlgmr.msra.gmra.mrb[96].mxu0 %v4649_v7 }
 0x2e8   :  { %3839 = vrot.lane.b32.xlu1 %v8621_v44, %s6492_s23  ;;  %3364 = vst.msk [vmem:[#allocation3 + $0x288] sm:$0xff] %vm873_vm2, %v3332_v23 }
 0x2e9   :  { %v4460_v39 = vpop.permute.xlu0 %4459 }
 0x2ea   :  { %4554 = vst.msk [vmem:[#allocation3 + $0x20] sm:$0xff] %vm1572_vm10, %v4460_v39  ;;  %v3630_v27 = vpop.permute.xlu1 %3629  ;;  %v4652_v23 = vld [vmem:[#allocation3 + $0x18] sm:$0xff] }
 0x2eb   :  { %3723 = vst.msk [vmem:[#allocation3 + $0x30] sm:$0xff] %vm1379_vm5, %v3630_v27  ;;  %4287 = vrot.lane.b32.xlu0 %v8683_v63, %s6489_s22 }
 0x2ec   :  { %3457 = vrot.lane.b32.xlu1 %v8165_v1, %s6490_s27  ;;  %v8707_v1 = vld [vmem:[%s9551_s4] ss:$0 sm:$0xff] }
 0x2ed   :  { %v4078_v10 = vpop.permute.xlu0 %4077 }
 0x2ee   :  { %4171 = vst.msk [vmem:[#allocation3 + $0x38] sm:$0xff] %vm1186_vm4, %v4078_v10  ;;  %v3822_v44 = vpop.permute.xlu1 %3821  ;;  %v2681_v60 = vpop.f32.mrb[28].mxu1 }
 0x2ef   :  { %3915 = vst.msk [vmem:[#allocation3 + $0x30] sm:$0xff] %vm1572_vm10, %v3822_v44  ;;  %4479 = vrot.lane.b32.xlu0 %v8274_v5, %s6492_s23  ;;  %v2682_v56 = vadd.f32 %v8707_v1, %v2681_v60  ;;  %v2683_v7 = vpop.f32.mrb[29].mxu1 }
 0x2f0   :  { %3649 = vrot.lane.b32.xlu1 %v8646_v30, %s6489_s22 }
 0x2f1   :  { %v4270_v39 = vpop.permute.xlu0 %4269  ;;  %v4653_v27 = vld [vmem:[#allocation3 + $0x20] sm:$0xff]  ;;  %v2907_v10 = vadd.f32 %v7938_v12, %v2682_v56 }
 0x2f2   :  { %4363 = vst.msk [vmem:[#allocation3 + $0x38] sm:$0xff] %vm1379_vm5, %v4270_v39  ;;  %v3440_v44 = vpop.permute.xlu1 %3439  ;;  %4953 = vmatprep.mubr.f32.mxu0 %v4653_v27 }
 0x2f3   :  { %3532 = vst.msk [vmem:[#allocation3 + $0x48] sm:$0xff] %vm1186_vm4, %v3440_v44  ;;  %4097 = vrot.lane.b32.xlu0 %v4021_v20, %s6490_s27  ;;  %4954 = vmatmul.mubr.f32.gmra.mrb[98].mxu0 %v4652_v23  ;;  %v2686_v30 = vpop.f32.mrb[30].mxu1  ;;  %v3041_v56 = vmul.f32 0.2, %v2907_v10  ;;  %vm3009_vm8 = vcmp.ge.f32.partialorder %v2907_v10, 0.0 }
 0x2f4   :  { %3841 = vrot.lane.b32.xlu1 %v8654_v43, %s6492_s23  ;;  %v2687_v60 = vadd.f32 %v8707_v1, %v2686_v30  ;;  %v2688_v7 = vpop.f32.mrb[31].mxu1 }
 0x2f5   :  { %v4462_v16 = vpop.permute.xlu0 %4461 }
 0x2f6   :  { %4555 = vst.msk [vmem:[#allocation3 + $0x38] sm:$0xff] %vm1572_vm10, %v4462_v16  ;;  %v3632_v12 = vpop.permute.xlu1 %3631  ;;  %v2912_v39 = vadd.f32 %v7936_v18, %v2687_v60  ;;  %v8727_v16 = vsel %vm3009_vm8, %v2907_v10, %v3041_v56  ;;  %v8739_v10 = vld [vmem:[#allocation2 + $0xb2] sm:$0xff]  ;;  %v4655_v7 = vld [vmem:[#allocation3 + $0x30] sm:$0xff]  ;;  %v8747_v56 = vld [vmem:[#allocation2 + $0xc8] sm:$0xff] }
 0x2f7   :  { %3724 = vst.msk [vmem:[#allocation3 + $0x48] sm:$0xff] %vm1379_vm5, %v3632_v12  ;;  %4289 = vrot.lane.b32.xlu0 %v8364_v4, %s6489_s22 }
 0x2f8   :  { %3459 = vrot.lane.b32.xlu1 %v8167_v17, %s6490_s27  ;;  %vm3010_vm9 = vcmp.ge.f32.partialorder %v2912_v39, 0.0  ;;  %v3042_v43 = vmul.f32 0.2, %v2912_v39 }
 0x2f9   :  { %v4080_v27 = vpop.permute.xlu0 %4079 }
 0x2fa   :  { %4172 = vst.msk [vmem:[#allocation3 + $0x50] sm:$0xff] %vm1186_vm4, %v4080_v27  ;;  %v3824_v44 = vpop.permute.xlu1 %3823  ;;  %v8729_v23 = vsel %vm3010_vm9, %v2912_v39, %v3042_v43  ;;  %v8754_v39 = vld [vmem:[#allocation2 + $0x151] sm:$0xff] }
 0x2fb   :  { %3916 = vst.msk [vmem:[#allocation3 + $0x48] sm:$0xff] %vm1572_vm10, %v3824_v44  ;;  %4481 = vrot.lane.b32.xlu0 %v8366_v54, %s6492_s23  ;;  %v8756_v43 = vld [vmem:[#allocation2 + $0x158] sm:$0xff] }
 0x2fc   :  { %3651 = vrot.lane.b32.xlu1 %v8675_v24, %s6489_s22  ;;  %4003 = vst.msk [vmem:[#allocation3 + $0x278] sm:$0xff] %vm873_vm2, %v8754_v39  ;;  %3366 = vst.msk [vmem:[#allocation3 + $0x2b8] sm:$0xff] %vm873_vm2, %v8756_v43 }
 0x2fd   :  { %v4272_v17 = vpop.permute.xlu0 %4271  ;;  %v4656_v30 = vld [vmem:[#allocation3 + $0x38] sm:$0xff] }
 0x2fe   :  { %4364 = vst.msk [vmem:[#allocation3 + $0x50] sm:$0xff] %vm1379_vm5, %v4272_v17  ;;  %v3442_v60 = vpop.permute.xlu1 %3441  ;;  %4958 = vmatprep.mubr.f32.mxu0 %v4656_v30 }
 0x2ff   :  { %3533 = vst.msk [vmem:[#allocation3 + $0x60] sm:$0xff] %vm1186_vm4, %v3442_v60  ;;  %4099 = vrot.lane.b32.xlu0 %v8739_v10, %s6490_s27  ;;  %4959 = vmatmul.mubr.f32.gmra.mrb[100].mxu0 %v4655_v7 }
 0x300   :  { %3843 = vrot.lane.b32.xlu1 %v8683_v63, %s6492_s23  ;;  %v8758_v63 = vld [vmem:[#allocation2 + $0x159] sm:$0xff] }
 0x301   :  { %v4464_v12 = vpop.permute.xlu0 %4463  ;;  %4004 = vst.msk [vmem:[#allocation3 + $0x290] sm:$0xff] %vm873_vm2, %v8758_v63 }
 0x302   :  { %4556 = vst.msk [vmem:[#allocation3 + $0x50] sm:$0xff] %vm1572_vm10, %v4464_v12  ;;  %v3634_v24 = vpop.permute.xlu1 %3633  ;;  %v4658_v18 = vld [vmem:[#allocation3 + $0x48] sm:$0xff] }
 0x303   :  { %3725 = vst.msk [vmem:[#allocation3 + $0x60] sm:$0xff] %vm1379_vm5, %v3634_v24  ;;  %4291 = vrot.lane.b32.xlu0 %v8747_v56, %s6489_s22 }
 0x304   :  { %3461 = vrot.lane.b32.xlu1 %v8271_v53, %s6490_s27  ;;  %v3333_v53 = vld [vmem:[#allocation2 + $0x150] sm:$0xff] }
 0x305   :  { %v4082_v27 = vpop.permute.xlu0 %4081  ;;  %3365 = vst.msk [vmem:[#allocation3 + $0x2a0] sm:$0xff] %vm873_vm2, %v3333_v53 }
 0x306   :  { %4173 = vst.msk [vmem:[#allocation3 + $0x68] sm:$0xff] %vm1186_vm4, %v4082_v27  ;;  %v3826_v44 = vpop.permute.xlu1 %3825  ;;  %v2691_v17 = vpop.f32.mrb[32].mxu1 }
 0x307   :  { %3917 = vst.msk [vmem:[#allocation3 + $0x60] sm:$0xff] %vm1572_vm10, %v3826_v44  ;;  %4483 = vrot.lane.b32.xlu0 %v8368_v45, %s6492_s23  ;;  %v2692_v30 = vadd.f32 %v8707_v1, %v2691_v17  ;;  %v2693_v60 = vpop.f32.mrb[33].mxu1  ;;  %v8775_v44 = vld [vmem:[#allocation2 + $0xc2] sm:$0xff] }
 0x308   :  { %3653 = vrot.lane.b32.xlu1 %v4021_v20, %s6489_s22  ;;  %v8784_v60 = vld [vmem:[#allocation2 + $0xd8] sm:$0xff] }
 0x309   :  { %v4274_v7 = vpop.permute.xlu0 %4273  ;;  %v4659_v12 = vld [vmem:[#allocation3 + $0x50] sm:$0xff]  ;;  %v2917_v24 = vadd.f32 %v7987_v40, %v2692_v30 }
 0x30a   :  { %4365 = vst.msk [vmem:[#allocation3 + $0x68] sm:$0xff] %vm1379_vm5, %v4274_v7  ;;  %v3444_v27 = vpop.permute.xlu1 %3443  ;;  %4963 = vmatprep.mubr.f32.mxu0 %v4659_v12 }
 0x30b   :  { %3534 = vst.msk [vmem:[#allocation3 + $0x78] sm:$0xff] %vm1186_vm4, %v3444_v27  ;;  %4101 = vrot.lane.b32.xlu0 %v8775_v44, %s6490_s27  ;;  %4964 = vmatmul.mubr.f32.gmra.mrb[102].mxu0 %v4658_v18  ;;  %v2696_v20 = vpop.f32.mrb[34].mxu1  ;;  %v3043_v7 = vmul.f32 0.2, %v2917_v24  ;;  %vm3011_vm11 = vcmp.ge.f32.partialorder %v2917_v24, 0.0 }
 0x30c   :  { %3845 = vrot.lane.b32.xlu1 %v8364_v4, %s6492_s23  ;;  %v2697_v53 = vadd.f32 %v8707_v1, %v2696_v20  ;;  %v2698_v40 = vpop.f32.mrb[35].mxu1 }
 0x30d   :  { %v4466_v17 = vpop.permute.xlu0 %4465  ;;  %v3075_v20 = vsel %vm3011_vm11, %v2917_v24, %v3043_v7 }
 0x30e   :  { %4557 = vst.msk [vmem:[#allocation3 + $0x68] sm:$0xff] %vm1572_vm10, %v4466_v17  ;;  %v3636_v30 = vpop.permute.xlu1 %3635  ;;  %v2922_v12 = vadd.f32 %v7985_v0, %v2697_v53  ;;  %v4661_v7 = vld [vmem:[#allocation3 + $0x60] sm:$0xff] }
 0x30f   :  { %3726 = vst.msk [vmem:[#allocation3 + $0x78] sm:$0xff] %vm1379_vm5, %v3636_v30  ;;  %4293 = vrot.lane.b32.xlu0 %v8784_v60, %s6489_s22  ;;  %v8807_v30 = vld [vmem:[#allocation2 + $0xca] sm:$0xff] }
 0x310   :  { %3463 = vrot.lane.b32.xlu1 %v8274_v5, %s6490_s27  ;;  %vm3012_vm12 = vcmp.ge.f32.partialorder %v2922_v12, 0.0  ;;  %v3044_v4 = vmul.f32 0.2, %v2922_v12 }
 0x311   :  { %v4084_v18 = vpop.permute.xlu0 %4083 }
 0x312   :  { %4174 = vst.msk [vmem:[#allocation3 + $0x80] sm:$0xff] %vm1186_vm4, %v4084_v18  ;;  %v3828_v27 = vpop.permute.xlu1 %3827  ;;  %v3076_v40 = vsel %vm3012_vm12, %v2922_v12, %v3044_v4  ;;  %v8819_v12 = vld [vmem:[#allocation2 + $0x169] sm:$0xff]  ;;  %v8825_v18 = vld [vmem:[#allocation2 + $0x171] sm:$0xff] }
 0x313   :  { %3918 = vst.msk [vmem:[#allocation3 + $0x78] sm:$0xff] %vm1572_vm10, %v3828_v27  ;;  %4485 = vrot.lane.b32.xlu0 %v8434_v57, %s6492_s23  ;;  %v6298_v5 = vpack.c.bf16 %v3076_v40, %v3075_v20  ;;  %v8821_v4 = vld [vmem:[#allocation2 + $0x170] sm:$0xff]  ;;  %v8847_v20 = vld [vmem:[#allocation2 + $0x182] sm:$0xff] }
 0x314   :  { %3655 = vrot.lane.b32.xlu1 %v8739_v10, %s6489_s22  ;;  %v8817_v10 = vld [vmem:[#allocation2 + $0x168] sm:$0xff]  ;;  %4005 = vst.msk [vmem:[#allocation3 + $0x2a8] sm:$0xff] %vm873_vm2, %v8819_v12  ;;  %3368 = vst.msk [vmem:[#allocation3 + $0x2e8] sm:$0xff] %vm873_vm2, %v8821_v4 }
 0x315   :  { %v4276_v53 = vpop.permute.xlu0 %4275  ;;  %v4662_v17 = vld [vmem:[#allocation3 + $0x68] sm:$0xff]  ;;  %6300 = vmatprep.subr.msk.bf16.mxu1 %vm8798_vm13, %v6298_v5  ;;  %3367 = vst.msk [vmem:[#allocation3 + $0x2d0] sm:$0xff] %vm873_vm2, %v8817_v10  ;;  %4006 = vst.msk [vmem:[#allocation3 + $0x2c0] sm:$0xff] %vm873_vm2, %v8825_v18  ;;  %v8845_v27 = vld [vmem:[#allocation2 + $0x189] sm:$0xff] }
 0x316   :  { %4366 = vst.msk [vmem:[#allocation3 + $0x80] sm:$0xff] %vm1379_vm5, %v4276_v53  ;;  %v3446_v24 = vpop.permute.xlu1 %3445  ;;  %4968 = vmatprep.mubr.f32.mxu0 %v4662_v17  ;;  %6303 = vmatpush3.bf16.xpose.msk.msra.mxu1 %vm8798_vm13, %v6301_v48  ;;  %v8836_v48 = vld [vmem:[#allocation2 + $0xe0] sm:$0xff]  ;;  %v8849_v40 = vld [vmem:[#allocation2 + $0x18a] sm:$0xff] }
 0x317   :  { %3535 = vst.msk [vmem:[#allocation3 + $0x90] sm:$0xff] %vm1186_vm4, %v3446_v24  ;;  %4103 = vrot.lane.b32.xlu0 %v8807_v30, %s6490_s27  ;;  %4969 = vmatmul.mubr.f32.gmra.mrb[104].mxu0 %v4661_v7  ;;  %9558 = vst [vmem:[#allocation7_spill] sm:$0xff] %v8849_v40 }
 0x318   :  { %3847 = vrot.lane.b32.xlu1 %v8747_v56, %s6492_s23  ;;  %v8841_v56 = vld [vmem:[#allocation2 + $0x181] sm:$0xff]  ;;  %4645 = vst.msk [vmem:[#allocation3 + $0x2b0] sm:$0xff] %vm873_vm2, %v8847_v20  ;;  %4646 = vst.msk [vmem:[#allocation3 + $0x2c8] sm:$0xff] %vm873_vm2, %v8849_v40 }
 0x319   :  { %v4468_v26 = vpop.permute.xlu0 %4467  ;;  %4007 = vst.msk [vmem:[#allocation3 + $0x2d8] sm:$0xff] %vm873_vm2, %v8841_v56  ;;  %4008 = vst.msk [vmem:[#allocation3 + $0x2f0] sm:$0xff] %vm873_vm2, %v8845_v27 }
 0x31a   :  { %4558 = vst.msk [vmem:[#allocation3 + $0x80] sm:$0xff] %vm1572_vm10, %v4468_v26  ;;  %v3638_v62 = vpop.permute.xlu1 %3637 }
 0x31b   :  { %3727 = vst.msk [vmem:[#allocation3 + $0x90] sm:$0xff] %vm1379_vm5, %v3638_v62  ;;  %4295 = vrot.lane.b32.xlu0 %v8836_v48, %s6489_s22 }
 0x31c   :  { %3465 = vrot.lane.b32.xlu1 %v8366_v54, %s6490_s27 }
 0x31d   :  { %v4086_v5 = vpop.permute.xlu0 %4085 }
 0x31e   :  { %4175 = vst.msk [vmem:[#allocation3 + $0x98] sm:$0xff] %vm1186_vm4, %v4086_v5  ;;  %v3830_v54 = vpop.permute.xlu1 %3829  ;;  %v2701_v53 = vpop.f32.mrb[36].mxu1 }
 0x31f   :  { %3919 = vst.msk [vmem:[#allocation3 + $0x90] sm:$0xff] %vm1572_vm10, %v3830_v54  ;;  %4487 = vrot.lane.b32.xlu0 %v8438_v52, %s6492_s23  ;;  %v2702_v17 = vadd.f32 %v8707_v1, %v2701_v53  ;;  %v2703_v24 = vpop.f32.mrb[37].mxu1  ;;  %v4664_v54 = vld [vmem:[#allocation3 + $0x78] sm:$0xff] }
 0x320   :  { %3657 = vrot.lane.b32.xlu1 %v8775_v44, %s6489_s22 }
 0x321   :  { %v4278_v7 = vpop.permute.xlu0 %4277  ;;  %v4665_v26 = vld [vmem:[#allocation3 + $0x80] sm:$0xff]  ;;  %v2927_v62 = vadd.f32 %v8033_v13, %v2702_v17  ;;  %v8872_v53 = vpop.f32.mrb[94].mxu0 }
 0x322   :  { %4367 = vst.msk [vmem:[#allocation3 + $0x98] sm:$0xff] %vm1379_vm5, %v4278_v7  ;;  %v3448_v5 = vpop.permute.xlu1 %3447  ;;  %4973 = vmatprep.mubr.f32.mxu0 %v4665_v26  ;;  %v8876_v26 = vpop.f32.mrb[95].mxu0 }
 0x323   :  { %3536 = vst.msk [vmem:[#allocation3 + $0xa8] sm:$0xff] %vm1186_vm4, %v3448_v5  ;;  %4105 = vrot.lane.b32.xlu0 %v4025_v59, %s6490_s27  ;;  %4974 = vmatmul.mubr.f32.gmra.mrb[106].mxu0 %v4664_v54  ;;  %v2706_v44 = vpop.f32.mrb[38].mxu1  ;;  %v3045_v40 = vmul.f32 0.2, %v2927_v62  ;;  %vm3013_vm14 = vcmp.ge.f32.partialorder %v2927_v62, 0.0 }
 0x324   :  { %3849 = vrot.lane.b32.xlu1 %v8784_v60, %s6492_s23  ;;  %v2707_v24 = vadd.f32 %v8707_v1, %v2706_v44  ;;  %v2708_v13 = vpop.f32.mrb[39].mxu1 }
 0x325   :  { %v4470_v17 = vpop.permute.xlu0 %4469  ;;  %v3077_v13 = vsel %vm3013_vm14, %v2927_v62, %v3045_v40  ;;  %v4026_v40 = vld [vmem:[#allocation2 + $0xe2] sm:$0xff]  ;;  %v9559_v62 = vpack.c.bf16 %v8340_v34, %v8338_v55 }
 0x326   :  { %4559 = vst.msk [vmem:[#allocation3 + $0x98] sm:$0xff] %vm1572_vm10, %v4470_v17  ;;  %v3640_v7 = vpop.permute.xlu1 %3639  ;;  %v2932_v5 = vadd.f32 %v8031_v50, %v2707_v24 }
 0x327   :  { %3728 = vst.msk [vmem:[#allocation3 + $0xa8] sm:$0xff] %vm1379_vm5, %v3640_v7  ;;  %4297 = vrot.lane.b32.xlu0 %v8507_v42, %s6489_s22 }
 0x328   :  { %3467 = vrot.lane.b32.xlu1 %v8368_v45, %s6490_s27  ;;  %vm3014_vm15 = vcmp.ge.f32.partialorder %v2932_v5, 0.0  ;;  %v3046_v60 = vmul.f32 0.2, %v2932_v5 }
 0x329   :  { %v4088_v54 = vpop.permute.xlu0 %4087 }
 0x32a   :  { %4176 = vst.msk [vmem:[#allocation3 + $0xb0] sm:$0xff] %vm1186_vm4, %v4088_v54  ;;  %v3832_v44 = vpop.permute.xlu1 %3831  ;;  %v3078_v17 = vsel %vm3014_vm15, %v2932_v5, %v3046_v60  ;;  %v8903_v54 = vld [vmem:[#allocation2 + $0xf8] sm:$0xff] }
 0x32b   :  { %3920 = vst.msk [vmem:[#allocation3 + $0xa8] sm:$0xff] %vm1572_vm10, %v3832_v44  ;;  %4489 = vrot.lane.b32.xlu0 %v8509_v61, %s6492_s23  ;;  %v6304_v50 = vpack.c.bf16 %v3078_v17, %v3077_v13 }
 0x32c   :  { %3659 = vrot.lane.b32.xlu1 %v8807_v30, %s6489_s22  ;;  %v4667_v30 = vld [vmem:[#allocation3 + $0x90] sm:$0xff] }
 0x32d   :  { %v4280_v24 = vpop.permute.xlu0 %4279  ;;  %v4668_v7 = vld [vmem:[#allocation3 + $0x98] sm:$0xff]  ;;  %6306 = vmatprep.subr.msk.bf16.mxu1 %vm8798_vm13, %v6304_v50 }
 0x32e   :  { %4368 = vst.msk [vmem:[#allocation3 + $0xb0] sm:$0xff] %vm1379_vm5, %v4280_v24  ;;  %v3450_v45 = vpop.permute.xlu1 %3449  ;;  %4978 = vmatprep.mubr.f32.mxu0 %v4668_v7  ;;  %6309 = vmatpush3.bf16.xpose.msk.msra.mxu1 %vm8798_vm13, %v9559_v62  ;;  %v8918_v7 = vld [vmem:[#allocation2 + $0xf2] sm:$0xff] }
 0x32f   :  { %3537 = vst.msk [vmem:[#allocation3 + $0xc0] sm:$0xff] %vm1186_vm4, %v3450_v45  ;;  %4107 = vrot.lane.b32.xlu0 %v4026_v40, %s6490_s27  ;;  %4979 = vmatmul.mubr.f32.gmra.mrb[108].mxu0 %v4667_v30 }
 0x330   :  { %3851 = vrot.lane.b32.xlu1 %v8836_v48, %s6492_s23 }
 0x331   :  { %v4472_v5 = vpop.permute.xlu0 %4471 }
 0x332   :  { %4560 = vst.msk [vmem:[#allocation3 + $0xb0] sm:$0xff] %vm1572_vm10, %v4472_v5  ;;  %v3642_v60 = vpop.permute.xlu1 %3641  ;;  %v4670_v45 = vld [vmem:[#allocation3 + $0xa8] sm:$0xff] }
 0x333   :  { %3729 = vst.msk [vmem:[#allocation3 + $0xc0] sm:$0xff] %vm1379_vm5, %v3642_v60  ;;  %4299 = vrot.lane.b32.xlu0 %v8903_v54, %s6489_s22  ;;  %v8927_v60 = vld [vmem:[#allocation2 + $0x108] sm:$0xff] }
 0x334   :  { %3469 = vrot.lane.b32.xlu1 %v8434_v57, %s6490_s27 }
 0x335   :  { %v4090_v55 = vpop.permute.xlu0 %4089 }
 0x336   :  { %4177 = vst.msk [vmem:[#allocation3 + $0xc8] sm:$0xff] %vm1186_vm4, %v4090_v55  ;;  %v3834_v34 = vpop.permute.xlu1 %3833  ;;  %v2711_v48 = vpop.f32.mrb[40].mxu1 }
 0x337   :  { %3921 = vst.msk [vmem:[#allocation3 + $0xc0] sm:$0xff] %vm1572_vm10, %v3834_v34  ;;  %4491 = vrot.lane.b32.xlu0 %v8513_v6, %s6492_s23  ;;  %v2712_v44 = vadd.f32 %v8707_v1, %v2711_v48  ;;  %v2713_v13 = vpop.f32.mrb[41].mxu1 }
 0x338   :  { %3661 = vrot.lane.b32.xlu1 %v4025_v59, %s6489_s22 }
 0x339   :  { %v4282_v17 = vpop.permute.xlu0 %4281  ;;  %v4671_v50 = vld [vmem:[#allocation3 + $0xb0] sm:$0xff]  ;;  %v2937_v24 = vadd.f32 %v8112_v37, %v2712_v44 }
 0x33a   :  { %4369 = vst.msk [vmem:[#allocation3 + $0xc8] sm:$0xff] %vm1379_vm5, %v4282_v17  ;;  %v3452_v57 = vpop.permute.xlu1 %3451  ;;  %4983 = vmatprep.mubr.f32.mxu0 %v4671_v50 }
 0x33b   :  { %3538 = vst.msk [vmem:[#allocation3 + $0xd8] sm:$0xff] %vm1186_vm4, %v3452_v57  ;;  %4109 = vrot.lane.b32.xlu0 %v8918_v7, %s6490_s27  ;;  %4984 = vmatmul.mubr.f32.gmra.mrb[110].mxu0 %v4670_v45  ;;  %v2716_v59 = vpop.f32.mrb[42].mxu1  ;;  %v3047_v55 = vmul.f32 0.2, %v2937_v24  ;;  %vm3015_vm0 = vcmp.ge.f32.partialorder %v2937_v24, 0.0 }
 0x33c   :  { %3853 = vrot.lane.b32.xlu1 %v8507_v42, %s6492_s23  ;;  %v2717_v62 = vadd.f32 %v8707_v1, %v2716_v59  ;;  %v2718_v37 = vpop.f32.mrb[43].mxu1  ;;  %v8936_v42 = vld [vmem:[%s9552_s5] sm:$0xf] }
 0x33d   :  { %v4474_v30 = vpop.permute.xlu0 %4473  ;;  %5960 = vmatprep.mubr.msk.f32.mxu1 %vm873_vm2, %v8936_v42  ;;  %v3079_v13 = vsel %vm3015_vm0, %v2937_v24, %v3047_v55  ;;  %v4028_v59 = vld [vmem:[#allocation2 + $0xfa] sm:$0xff] }
 0x33e   :  { %4561 = vst.msk [vmem:[#allocation3 + $0xc8] sm:$0xff] %vm1572_vm10, %v4474_v30  ;;  %v3644_v5 = vpop.permute.xlu1 %3643  ;;  %v2942_v34 = vadd.f32 %v8110_v22, %v2717_v62  ;;  %v9560_v62 = vpack.c.bf16 %v8409_v14, %v8407_v3  ;;  %v4220_v3 = vld [vmem:[#allocation2 + $0x110] sm:$0xff] }
 0x33f   :  { %3730 = vst.msk [vmem:[#allocation3 + $0xd8] sm:$0xff] %vm1379_vm5, %v3644_v5  ;;  %4301 = vrot.lane.b32.xlu0 %v8927_v60, %s6489_s22 }
 0x340   :  { %3471 = vrot.lane.b32.xlu1 %v8438_v52, %s6490_s27  ;;  %vm3016_vm1 = vcmp.ge.f32.partialorder %v2942_v34, 0.0  ;;  %v3048_v48 = vmul.f32 0.2, %v2942_v34 }
 0x341   :  { %v4092_v22 = vpop.permute.xlu0 %4091 }
 0x342   :  { %4178 = vst.msk [vmem:[#allocation3 + $0xe0] sm:$0xff] %vm1186_vm4, %v4092_v22  ;;  %v3836_v44 = vpop.permute.xlu1 %3835  ;;  %v3080_v17 = vsel %vm3016_vm1, %v2942_v34, %v3048_v48 }
 0x343   :  { %3922 = vst.msk [vmem:[#allocation3 + $0xd8] sm:$0xff] %vm1572_vm10, %v3836_v44  ;;  %4493 = vrot.lane.b32.xlu0 %v8572_v51, %s6492_s23  ;;  %v6310_v50 = vpack.c.bf16 %v3080_v17, %v3079_v13 }
 0x344   :  { %3663 = vrot.lane.b32.xlu1 %v4026_v40, %s6489_s22  ;;  %v4673_v40 = vld [vmem:[#allocation3 + $0xc0] sm:$0xff] }
 0x345   :  { %v4284_v52 = vpop.permute.xlu0 %4283  ;;  %v4674_v57 = vld [vmem:[#allocation3 + $0xc8] sm:$0xff]  ;;  %6312 = vmatprep.subr.msk.bf16.mxu1 %vm8798_vm13, %v6310_v50 }
 0x346   :  { %4370 = vst.msk [vmem:[#allocation3 + $0xe0] sm:$0xff] %vm1379_vm5, %v4284_v52  ;;  %v3454_v45 = vpop.permute.xlu1 %3453  ;;  %4988 = vmatprep.mubr.f32.mxu0 %v4674_v57  ;;  %v2721_v24 = vpop.f32.mrb[44].mxu1  ;;  %6315 = vmatpush3.bf16.xpose.msk.msra.mxu1 %vm8798_vm13, %v9560_v62  ;;  %v4029_v52 = vld [vmem:[#allocation2 + $0x10a] sm:$0xff] }
 0x347   :  { %3539 = vst.msk [vmem:[#allocation3 + $0xf0] sm:$0xff] %vm1186_vm4, %v3454_v45  ;;  %4111 = vrot.lane.b32.xlu0 %v4028_v59, %s6490_s27  ;;  %v2722_v37 = vadd.f32 %v8707_v1, %v2721_v24  ;;  %v2723_v30 = vpop.f32.mrb[45].mxu1  ;;  %4989 = vmatmul.mubr.f32.gmra.mrb[112].mxu0 %v4673_v40  ;;  %v4221_v40 = vld [vmem:[#allocation2 + $0x120] sm:$0xff] }
 0x348   :  { %3855 = vrot.lane.b32.xlu1 %v8903_v54, %s6492_s23 }
 0x349   :  { %v4476_v5 = vpop.permute.xlu0 %4475  ;;  %v2947_v55 = vadd.f32 %v8210_v38, %v2722_v37 }
 0x34a   :  { %4562 = vst.msk [vmem:[#allocation3 + $0xe0] sm:$0xff] %vm1572_vm10, %v4476_v5  ;;  %v3646_v34 = vpop.permute.xlu1 %3645  ;;  %v4676_v57 = vld [vmem:[#allocation3 + $0xd8] sm:$0xff]  ;;  %v9561_v5 = vpack.c.bf16 %v8482_v46, %v8480_v25  ;;  %v4030_v46 = vld [vmem:[#allocation2 + $0x112] sm:$0xff] }
 0x34b   :  { %3731 = vst.msk [vmem:[#allocation3 + $0xf0] sm:$0xff] %vm1379_vm5, %v3646_v34  ;;  %4303 = vrot.lane.b32.xlu0 %v4220_v3, %s6489_s22  ;;  %v3049_v17 = vmul.f32 0.2, %v2947_v55  ;;  %vm3017_vm3 = vcmp.ge.f32.partialorder %v2947_v55, 0.0 }
 0x34c   :  { %3473 = vrot.lane.b32.xlu1 %v8509_v61, %s6490_s27 }
 0x34d   :  { %v4094_v14 = vpop.permute.xlu0 %4093  ;;  %v3081_v24 = vsel %vm3017_vm3, %v2947_v55, %v3049_v17 }
 0x34e   :  { %4179 = vst.msk [vmem:[#allocation3 + $0xf8] sm:$0xff] %vm1186_vm4, %v4094_v14  ;;  %v3838_v54 = vpop.permute.xlu1 %3837  ;;  %v2726_v48 = vpop.f32.mrb[46].mxu1 }
 0x34f   :  { %3923 = vst.msk [vmem:[#allocation3 + $0xf0] sm:$0xff] %vm1572_vm10, %v3838_v54  ;;  %4495 = vrot.lane.b32.xlu0 %v8574_v29, %s6492_s23  ;;  %v2727_v38 = vadd.f32 %v8707_v1, %v2726_v48  ;;  %v2728_v22 = vpop.f32.mrb[47].mxu1 }
 0x350   :  { %3665 = vrot.lane.b32.xlu1 %v8918_v7, %s6489_s22 }
 0x351   :  { %v4286_v44 = vpop.permute.xlu0 %4285  ;;  %v4677_v13 = vld [vmem:[#allocation3 + $0xe0] sm:$0xff]  ;;  %v2952_v61 = vadd.f32 %v8206_v47, %v2727_v38 }
 0x352   :  { %4371 = vst.msk [vmem:[#allocation3 + $0xf8] sm:$0xff] %vm1379_vm5, %v4286_v44  ;;  %v3456_v50 = vpop.permute.xlu1 %3455  ;;  %4993 = vmatprep.mubr.f32.mxu0 %v4677_v13  ;;  %v4222_v44 = vld [vmem:[#allocation2 + $0x128] sm:$0xff] }
 0x353   :  { %3540 = vst.msk [vmem:[#allocation3 + $0x108] sm:$0xff] %vm1186_vm4, %v3456_v50  ;;  %4113 = vrot.lane.b32.xlu0 %v4029_v52, %s6490_s27  ;;  %4994 = vmatmul.mubr.f32.gmra.mrb[114].mxu0 %v4676_v57  ;;  %vm3018_vm6 = vcmp.ge.f32.partialorder %v2952_v61, 0.0  ;;  %v3050_v7 = vmul.f32 0.2, %v2952_v61 }
 0x354   :  { %3857 = vrot.lane.b32.xlu1 %v8927_v60, %s6492_s23 }
 0x355   :  { %v4478_v45 = vpop.permute.xlu0 %4477  ;;  %v3082_v47 = vsel %vm3018_vm6, %v2952_v61, %v3050_v7 }
 0x356   :  { %4563 = vst.msk [vmem:[#allocation3 + $0xf8] sm:$0xff] %vm1572_vm10, %v4478_v45  ;;  %v3648_v62 = vpop.permute.xlu1 %3647  ;;  %v6316_v37 = vpack.c.bf16 %v3082_v47, %v3081_v24  ;;  %v4679_v38 = vld [vmem:[#allocation3 + $0xf0] sm:$0xff] }
 0x357   :  { %3732 = vst.msk [vmem:[#allocation3 + $0x108] sm:$0xff] %vm1379_vm5, %v3648_v62  ;;  %4305 = vrot.lane.b32.xlu0 %v4221_v40, %s6489_s22  ;;  %v4031_v24 = vld [vmem:[#allocation2 + $0x122] sm:$0xff] }
 0x358   :  { %3475 = vrot.lane.b32.xlu1 %v8513_v6, %s6490_s27  ;;  %6318 = vmatprep.subr.msk.bf16.mxu1 %vm8798_vm13, %v6316_v37 }
 0x359   :  { %v4096_v30 = vpop.permute.xlu0 %4095  ;;  %6321 = vmatpush3.bf16.xpose.msk.msra.mxu1 %vm8798_vm13, %v9561_v5 }
 0x35a   :  { %4180 = vst.msk [vmem:[#allocation3 + $0x110] sm:$0xff] %vm1186_vm4, %v4096_v30  ;;  %v3840_v60 = vpop.permute.xlu1 %3839  ;;  %v2731_v55 = vpop.f32.mrb[48].mxu1 }
 0x35b   :  { %3924 = vst.msk [vmem:[#allocation3 + $0x108] sm:$0xff] %vm1572_vm10, %v3840_v60  ;;  %4497 = vrot.lane.b32.xlu0 %v8628_v31, %s6492_s23  ;;  %v2732_v6 = vadd.f32 %v8707_v1, %v2731_v55  ;;  %v2733_v34 = vpop.f32.mrb[49].mxu1  ;;  %v4223_v60 = vld [vmem:[#allocation2 + $0x138] sm:$0xff] }
 0x35c   :  { %3667 = vrot.lane.b32.xlu1 %v4028_v59, %s6489_s22 }
 0x35d   :  { %v4288_v14 = vpop.permute.xlu0 %4287  ;;  %v4680_v54 = vld [vmem:[#allocation3 + $0xf8] sm:$0xff]  ;;  %v2957_v48 = vadd.f32 %v8308_v28, %v2732_v6  ;;  %v9562_v6 = vpack.c.bf16 %v8547_v33, %v8545_v36 }
 0x35e   :  { %4372 = vst.msk [vmem:[#allocation3 + $0x110] sm:$0xff] %vm1379_vm5, %v4288_v14  ;;  %v3458_v25 = vpop.permute.xlu1 %3457  ;;  %4998 = vmatprep.mubr.f32.mxu0 %v4680_v54  ;;  %v4032_v33 = vld [vmem:[#allocation2 + $0x12a] sm:$0xff] }
 0x35f   :  { %3541 = vst.msk [vmem:[#allocation3 + $0x120] sm:$0xff] %vm1186_vm4, %v3458_v25  ;;  %4115 = vrot.lane.b32.xlu0 %v4030_v46, %s6490_s27  ;;  %4999 = vmatmul.mubr.f32.gmra.mrb[116].mxu0 %v4679_v38  ;;  %v3051_v7 = vmul.f32 0.2, %v2957_v48  ;;  %vm3019_vm7 = vcmp.ge.f32.partialorder %v2957_v48, 0.0 }
 0x360   :  { %3859 = vrot.lane.b32.xlu1 %v4220_v3, %s6492_s23 }
 0x361   :  { %v4480_v22 = vpop.permute.xlu0 %4479  ;;  %v3083_v37 = vsel %vm3019_vm7, %v2957_v48, %v3051_v7  ;;  %v4033_v7 = vld [vmem:[#allocation2 + $0x13a] sm:$0xff] }
 0x362   :  { %4564 = vst.msk [vmem:[#allocation3 + $0x110] sm:$0xff] %vm1572_vm10, %v4480_v22  ;;  %v3650_v59 = vpop.permute.xlu1 %3649  ;;  %v4682_v47 = vld [vmem:[#allocation3 + $0x108] sm:$0xff] }
 0x363   :  { %3733 = vst.msk [vmem:[#allocation3 + $0x120] sm:$0xff] %vm1379_vm5, %v3650_v59  ;;  %4307 = vrot.lane.b32.xlu0 %v4222_v44, %s6489_s22  ;;  %v4224_v59 = vld [vmem:[#allocation2 + $0x140] sm:$0xff] }
 0x364   :  { %3477 = vrot.lane.b32.xlu1 %v8572_v51, %s6490_s27 }
 0x365   :  { %v4098_v28 = vpop.permute.xlu0 %4097 }
 0x366   :  { %4181 = vst.msk [vmem:[#allocation3 + $0x128] sm:$0xff] %vm1186_vm4, %v4098_v28  ;;  %v3842_v13 = vpop.permute.xlu1 %3841  ;;  %v2736_v17 = vpop.f32.mrb[50].mxu1 }
 0x367   :  { %3925 = vst.msk [vmem:[#allocation3 + $0x120] sm:$0xff] %vm1572_vm10, %v3842_v13  ;;  %4499 = vrot.lane.b32.xlu0 %v8630_v2, %s6492_s23  ;;  %v2737_v3 = vadd.f32 %v8707_v1, %v2736_v17  ;;  %v2738_v61 = vpop.f32.mrb[51].mxu1 }
 0x368   :  { %3669 = vrot.lane.b32.xlu1 %v4029_v52, %s6489_s22 }
 0x369   :  { %v4290_v50 = vpop.permute.xlu0 %4289  ;;  %v4683_v57 = vld [vmem:[#allocation3 + $0x110] sm:$0xff]  ;;  %v2962_v51 = vadd.f32 %v8294_v19, %v2737_v3 }
 0x36a   :  { %4373 = vst.msk [vmem:[#allocation3 + $0x128] sm:$0xff] %vm1379_vm5, %v4290_v50  ;;  %v3460_v45 = vpop.permute.xlu1 %3459  ;;  %5003 = vmatprep.mubr.f32.mxu0 %v4683_v57 }
 0x36b   :  { %3542 = vst.msk [vmem:[#allocation3 + $0x138] sm:$0xff] %vm1186_vm4, %v3460_v45  ;;  %4117 = vrot.lane.b32.xlu0 %v4031_v24, %s6490_s27  ;;  %5004 = vmatmul.mubr.f32.gmra.mrb[118].mxu0 %v4682_v47  ;;  %vm3020_vm8 = vcmp.ge.f32.partialorder %v2962_v51, 0.0  ;;  %v3052_v52 = vmul.f32 0.2, %v2962_v51 }
 0x36c   :  { %3861 = vrot.lane.b32.xlu1 %v4221_v40, %s6492_s23 }
 0x36d   :  { %v4482_v62 = vpop.permute.xlu0 %4481  ;;  %v3084_v30 = vsel %vm3020_vm8, %v2962_v51, %v3052_v52 }
 0x36e   :  { %4565 = vst.msk [vmem:[#allocation3 + $0x128] sm:$0xff] %vm1572_vm10, %v4482_v62  ;;  %v3652_v19 = vpop.permute.xlu1 %3651  ;;  %v6322_v5 = vpack.c.bf16 %v3084_v30, %v3083_v37  ;;  %v4685_v38 = vld [vmem:[#allocation3 + $0x120] sm:$0xff] }
 0x36f   :  { %3734 = vst.msk [vmem:[#allocation3 + $0x138] sm:$0xff] %vm1379_vm5, %v3652_v19  ;;  %4309 = vrot.lane.b32.xlu0 %v4223_v60, %s6489_s22  ;;  %v4225_v62 = vld [vmem:[#allocation2 + $0x150] sm:$0xff] }
 0x370   :  { %3479 = vrot.lane.b32.xlu1 %v8574_v29, %s6490_s27  ;;  %6324 = vmatprep.subr.msk.bf16.mxu1 %vm8798_vm13, %v6322_v5 }
 0x371   :  { %v4100_v55 = vpop.permute.xlu0 %4099  ;;  %6327 = vmatpush3.bf16.xpose.msk.msra.mxu1 %vm8798_vm13, %v9562_v6 }
 0x372   :  { %4182 = vst.msk [vmem:[#allocation3 + $0x140] sm:$0xff] %vm1186_vm4, %v4100_v55  ;;  %v3844_v40 = vpop.permute.xlu1 %3843  ;;  %v2741_v34 = vpop.f32.mrb[52].mxu1 }
 0x373   :  { %3926 = vst.msk [vmem:[#allocation3 + $0x138] sm:$0xff] %vm1572_vm10, %v3844_v40  ;;  %4501 = vrot.lane.b32.xlu0 %v8690_v58, %s6492_s23  ;;  %v2742_v29 = vadd.f32 %v8707_v1, %v2741_v34  ;;  %v2743_v14 = vpop.f32.mrb[53].mxu1 }
 0x374   :  { %3671 = vrot.lane.b32.xlu1 %v4030_v46, %s6489_s22 }
 0x375   :  { %v4292_v54 = vpop.permute.xlu0 %4291  ;;  %v4686_v48 = vld [vmem:[#allocation3 + $0x128] sm:$0xff]  ;;  %v2967_v25 = vadd.f32 %v8388_v15, %v2742_v29 }
 0x376   :  { %4374 = vst.msk [vmem:[#allocation3 + $0x140] sm:$0xff] %vm1379_vm5, %v4292_v54  ;;  %v3462_v36 = vpop.permute.xlu1 %3461  ;;  %5008 = vmatprep.mubr.f32.mxu0 %v4686_v48 }
 0x377   :  { %3543 = vst.msk [vmem:[#allocation3 + $0x150] sm:$0xff] %vm1186_vm4, %v3462_v36  ;;  %4119 = vrot.lane.b32.xlu0 %v4032_v33, %s6490_s27  ;;  %5009 = vmatmul.mubr.f32.gmra.mrb[120].mxu0 %v4685_v38  ;;  %v3053_v50 = vmul.f32 0.2, %v2967_v25  ;;  %vm3021_vm9 = vcmp.ge.f32.partialorder %v2967_v25, 0.0 }
 0x378   :  { %3863 = vrot.lane.b32.xlu1 %v4222_v44, %s6492_s23 }
 0x379   :  { %v4484_v22 = vpop.permute.xlu0 %4483  ;;  %v3085_v47 = vsel %vm3021_vm9, %v2967_v25, %v3053_v50 }
 0x37a   :  { %4566 = vst.msk [vmem:[#allocation3 + $0x140] sm:$0xff] %vm1572_vm10, %v4484_v22  ;;  %v3654_v46 = vpop.permute.xlu1 %3653  ;;  %v4688_v51 = vld [vmem:[#allocation3 + $0x138] sm:$0xff] }
 0x37b   :  { %3735 = vst.msk [vmem:[#allocation3 + $0x150] sm:$0xff] %vm1379_vm5, %v3654_v46  ;;  %4311 = vrot.lane.b32.xlu0 %v4224_v59, %s6489_s22 }
 0x37c   :  { %3481 = vrot.lane.b32.xlu1 %v8628_v31, %s6490_s27 }
 0x37d   :  { %v4102_v15 = vpop.permute.xlu0 %4101 }
 0x37e   :  { %4183 = vst.msk [vmem:[#allocation3 + $0x158] sm:$0xff] %vm1186_vm4, %v4102_v15  ;;  %v3846_v28 = vpop.permute.xlu1 %3845  ;;  %v2746_v13 = vpop.f32.mrb[54].mxu1  ;;  %v4035_v15 = vld [vmem:[#allocation2 + $0x152] sm:$0xff] }
 0x37f   :  { %3927 = vst.msk [vmem:[#allocation3 + $0x150] sm:$0xff] %vm1572_vm10, %v3846_v28  ;;  %4503 = vrot.lane.b32.xlu0 %v8692_v9, %s6492_s23  ;;  %v2747_v44 = vadd.f32 %v8707_v1, %v2746_v13  ;;  %v2748_v17 = vpop.f32.mrb[55].mxu1 }
 0x380   :  { %3673 = vrot.lane.b32.xlu1 %v4031_v24, %s6489_s22 }
 0x381   :  { %v4294_v3 = vpop.permute.xlu0 %4293  ;;  %v4689_v61 = vld [vmem:[#allocation3 + $0x140] sm:$0xff]  ;;  %v2972_v31 = vadd.f32 %v8386_v41, %v2747_v44 }
 0x382   :  { %4375 = vst.msk [vmem:[#allocation3 + $0x158] sm:$0xff] %vm1379_vm5, %v4294_v3  ;;  %v3464_v57 = vpop.permute.xlu1 %3463  ;;  %5013 = vmatprep.mubr.f32.mxu0 %v4689_v61 }
 0x383   :  { %3544 = vst.msk [vmem:[#allocation3 + $0x168] sm:$0xff] %vm1186_vm4, %v3464_v57  ;;  %4121 = vrot.lane.b32.xlu0 %v4033_v7, %s6490_s27  ;;  %5014 = vmatmul.mubr.f32.gmra.mrb[122].mxu0 %v4688_v51  ;;  %vm3022_vm11 = vcmp.ge.f32.partialorder %v2972_v31, 0.0  ;;  %v3054_v45 = vmul.f32 0.2, %v2972_v31 }
 0x384   :  { %3865 = vrot.lane.b32.xlu1 %v4223_v60, %s6492_s23  ;;  %v9563_v60 = vpack.c.bf16 %v8603_v8, %v8601_v11  ;;  %v4034_v8 = vld [vmem:[#allocation2 + $0x142] sm:$0xff] }
 0x385   :  { %v4486_v24 = vpop.permute.xlu0 %4485  ;;  %v3086_v52 = vsel %vm3022_vm11, %v2972_v31, %v3054_v45  ;;  %v9564_v31 = vpack.c.bf16 %v8665_v21, %v8663_v35 }
 0x386   :  { %4567 = vst.msk [vmem:[#allocation3 + $0x158] sm:$0xff] %vm1572_vm10, %v4486_v24  ;;  %v3656_v41 = vpop.permute.xlu1 %3655  ;;  %v6328_v37 = vpack.c.bf16 %v3086_v52, %v3085_v47  ;;  %v4691_v29 = vld [vmem:[#allocation3 + $0x150] sm:$0xff] }
 0x387   :  { %3736 = vst.msk [vmem:[#allocation3 + $0x168] sm:$0xff] %vm1379_vm5, %v3656_v41  ;;  %4313 = vrot.lane.b32.xlu0 %v4225_v62, %s6489_s22  ;;  %v4036_v47 = vld [vmem:[#allocation2 + $0x15a] sm:$0xff] }
 0x388   :  { %3483 = vrot.lane.b32.xlu1 %v8630_v2, %s6490_s27  ;;  %6330 = vmatprep.subr.msk.bf16.mxu1 %vm8798_vm13, %v6328_v37 }
 0x389   :  { %v4104_v30 = vpop.permute.xlu0 %4103  ;;  %6333 = vmatpush3.bf16.xpose.msk.msra.mxu1 %vm8798_vm13, %v9563_v60 }
 0x38a   :  { %4184 = vst.msk [vmem:[#allocation3 + $0x170] sm:$0xff] %vm1186_vm4, %v4104_v30  ;;  %v3848_v19 = vpop.permute.xlu1 %3847  ;;  %v2751_v5 = vpop.f32.mrb[56].mxu1 }
 0x38b   :  { %3928 = vst.msk [vmem:[#allocation3 + $0x168] sm:$0xff] %vm1572_vm10, %v3848_v19  ;;  %4505 = vrot.lane.b32.xlu0 %v8754_v39, %s6492_s23  ;;  %v2752_v2 = vadd.f32 %v8707_v1, %v2751_v5  ;;  %v2753_v55 = vpop.f32.mrb[57].mxu1 }
 0x38c   :  { %3675 = vrot.lane.b32.xlu1 %v4032_v33, %s6489_s22 }
 0x38d   :  { %v4296_v40 = vpop.permute.xlu0 %4295  ;;  %v4692_v6 = vld [vmem:[#allocation3 + $0x158] sm:$0xff]  ;;  %v2977_v34 = vadd.f32 %v8456_v49, %v2752_v2 }
 0x38e   :  { %4376 = vst.msk [vmem:[#allocation3 + $0x170] sm:$0xff] %vm1379_vm5, %v4296_v40  ;;  %v3466_v11 = vpop.permute.xlu1 %3465  ;;  %5018 = vmatprep.mubr.f32.mxu0 %v4692_v6  ;;  %v9137_v40 = vld [vmem:[#allocation2 + $0x16a] sm:$0xff] }
 0x38f   :  { %3545 = vst.msk [vmem:[#allocation3 + $0x180] sm:$0xff] %vm1186_vm4, %v3466_v11  ;;  %4123 = vrot.lane.b32.xlu0 %v4034_v8, %s6490_s27  ;;  %5019 = vmatmul.mubr.f32.gmra.mrb[124].mxu0 %v4691_v29  ;;  %v3055_v46 = vmul.f32 0.2, %v2977_v34  ;;  %vm3023_vm12 = vcmp.ge.f32.partialorder %v2977_v34, 0.0  ;;  %v4778_v11 = vld [vmem:[%s9550_s3 + $0x108] sm:$0xff] }
 0x390   :  { %3867 = vrot.lane.b32.xlu1 %v4224_v59, %s6492_s23 }
 0x391   :  { %v4488_v14 = vpop.permute.xlu0 %4487  ;;  %v3087_v44 = vsel %vm3023_vm12, %v2977_v34, %v3055_v46 }
 0x392   :  { %4568 = vst.msk [vmem:[#allocation3 + $0x170] sm:$0xff] %vm1572_vm10, %v4488_v14  ;;  %v3658_v54 = vpop.permute.xlu1 %3657  ;;  %v4694_v28 = vld [vmem:[#allocation3 + $0x168] sm:$0xff] }
 0x393   :  { %3737 = vst.msk [vmem:[#allocation3 + $0x180] sm:$0xff] %vm1379_vm5, %v3658_v54  ;;  %4315 = vrot.lane.b32.xlu0 %v8756_v43, %s6489_s22 }
 0x394   :  { %3485 = vrot.lane.b32.xlu1 %v8690_v58, %s6490_s27 }
 0x395   :  { %v4106_v49 = vpop.permute.xlu0 %4105 }
 0x396   :  { %4185 = vst.msk [vmem:[#allocation3 + $0x188] sm:$0xff] %vm1186_vm4, %v4106_v49  ;;  %v3850_v48 = vpop.permute.xlu1 %3849  ;;  %v2756_v25 = vpop.f32.mrb[58].mxu1  ;;  %v9151_v49 = vld [vmem:[#allocation2 + $0x180] sm:$0xff] }
 0x397   :  { %3929 = vst.msk [vmem:[#allocation3 + $0x180] sm:$0xff] %vm1572_vm10, %v3850_v48  ;;  %4507 = vrot.lane.b32.xlu0 %v8758_v63, %s6492_s23  ;;  %v2757_v36 = vadd.f32 %v8707_v1, %v2756_v25  ;;  %v2758_v33 = vpop.f32.mrb[59].mxu1 }
 0x398   :  { %3677 = vrot.lane.b32.xlu1 %v4033_v7, %s6489_s22  ;;  %v9565_v33 = vpack.c.bf16 %v8729_v23, %v8727_v16  ;;  %v4780_v16 = vld [vmem:[%s9550_s3 + $0x118] sm:$0xff] }
 0x399   :  { %v4298_v38 = vpop.permute.xlu0 %4297  ;;  %v4695_v22 = vld [vmem:[#allocation3 + $0x170] sm:$0xff]  ;;  %v2982_v58 = vadd.f32 %v8453_v32, %v2757_v36 }
 0x39a   :  { %4377 = vst.msk [vmem:[#allocation3 + $0x188] sm:$0xff] %vm1379_vm5, %v4298_v38  ;;  %v3468_v59 = vpop.permute.xlu1 %3467  ;;  %5023 = vmatprep.mubr.f32.mxu0 %v4695_v22  ;;  %v4779_v22 = vld [vmem:[%s9550_s3 + $0x110] sm:$0xff] }
 0x39b   :  { %3546 = vst.msk [vmem:[#allocation3 + $0x198] sm:$0xff] %vm1186_vm4, %v3468_v59  ;;  %4125 = vrot.lane.b32.xlu0 %v4035_v15, %s6490_s27  ;;  %5024 = vmatmul.mubr.f32.gmra.mrb[126].mxu0 %v4694_v28  ;;  %vm3024_vm14 = vcmp.ge.f32.partialorder %v2982_v58, 0.0  ;;  %v3056_v1 = vmul.f32 0.2, %v2982_v58  ;;  %v9179_v59 = vld [vmem:[#allocation2 + $0x172] sm:$0xff] }
 0x39c   :  { %3869 = vrot.lane.b32.xlu1 %v4225_v62, %s6492_s23 }
 0x39d   :  { %v4490_v13 = vpop.permute.xlu0 %4489  ;;  %v3088_v17 = vsel %vm3024_vm14, %v2982_v58, %v3056_v1  ;;  %v4651_v1 = vld [vmem:[#allocation3 + $0x10] sm:$0xff] }
 0x39e   :  { %4569 = vst.msk [vmem:[#allocation3 + $0x188] sm:$0xff] %vm1572_vm10, %v4490_v13  ;;  %v3660_v32 = vpop.permute.xlu1 %3659  ;;  %v6334_v3 = vpack.c.bf16 %v3088_v17, %v3087_v44  ;;  %v4697_v52 = vld [vmem:[#allocation3 + $0x180] sm:$0xff]  ;;  %v9190_v44 = vld [vmem:[#allocation2 + $0x188] sm:$0xff] }
 0x39f   :  { %3738 = vst.msk [vmem:[#allocation3 + $0x198] sm:$0xff] %vm1379_vm5, %v3660_v32  ;;  %4317 = vrot.lane.b32.xlu0 %v8817_v10, %s6489_s22 }
 0x3a0   :  { %3487 = vrot.lane.b32.xlu1 %v8692_v9, %s6490_s27  ;;  %6336 = vmatprep.subr.msk.bf16.mxu1 %vm8798_vm13, %v6334_v3  ;;  %v6463_v9 = vld [vmem:[%s9551_s4] ss:$0 sm:$0xff]  ;;  %v4654_v3 = vld [vmem:[#allocation3 + $0x28] sm:$0xff] }
 0x3a1   :  { %v4108_v61 = vpop.permute.xlu0 %4107  ;;  %6339 = vmatpush3.bf16.xpose.msk.msra.mxu1 %vm8798_vm13, %v9564_v31 }
 0x3a2   :  { %4186 = vst.msk [vmem:[#allocation3 + $0x1a0] sm:$0xff] %vm1186_vm4, %v4108_v61  ;;  %v3852_v50 = vpop.permute.xlu1 %3851  ;;  %v2761_v57 = vpop.f32.mrb[60].mxu1  ;;  %v4657_v61 = vld [vmem:[#allocation3 + $0x40] sm:$0xff] }
 0x3a3   :  { %3930 = vst.msk [vmem:[#allocation3 + $0x198] sm:$0xff] %vm1572_vm10, %v3852_v50  ;;  %4509 = vrot.lane.b32.xlu0 %v8819_v12, %s6492_s23  ;;  %v2762_v7 = vadd.f32 %v6463_v9, %v2761_v57  ;;  %v2763_v51 = vpop.f32.mrb[61].mxu1 }
 0x3a4   :  { %3679 = vrot.lane.b32.xlu1 %v4034_v8, %s6489_s22  ;;  %v4663_v51 = vld [vmem:[#allocation3 + $0x70] sm:$0xff] }
 0x3a5   :  { %v4300_v45 = vpop.permute.xlu0 %4299  ;;  %v4698_v24 = vld [vmem:[#allocation3 + $0x188] sm:$0xff]  ;;  %v2987_v35 = vadd.f32 %v8876_v26, %v2762_v7 }
 0x3a6   :  { %4378 = vst.msk [vmem:[#allocation3 + $0x1a0] sm:$0xff] %vm1379_vm5, %v4300_v45  ;;  %v3470_v21 = vpop.permute.xlu1 %3469  ;;  %5028 = vmatprep.mubr.f32.mxu0 %v4698_v24  ;;  %v4423_v24 = vld [vmem:[#allocation2 + $0x199] sm:$0xff] }
 0x3a7   :  { %3547 = vst.msk [vmem:[#allocation3 + $0x1b0] sm:$0xff] %vm1186_vm4, %v3470_v21  ;;  %4127 = vrot.lane.b32.xlu0 %v4036_v47, %s6490_s27  ;;  %5029 = vmatmul.mubr.f32.gmra.mrb[128].mxu0 %v4697_v52  ;;  %v3057_v2 = vmul.f32 0.2, %v2987_v35  ;;  %vm3025_vm15 = vcmp.ge.f32.partialorder %v2987_v35, 0.0 }
 0x3a8   :  { %3871 = vrot.lane.b32.xlu1 %v8756_v43, %s6492_s23 }
 0x3a9   :  { %v4492_v41 = vpop.permute.xlu0 %4491  ;;  %v3089_v29 = vsel %vm3025_vm15, %v2987_v35, %v3057_v2  ;;  %v6493_v35 = vmov 0   ;;  %v4232_v2 = vld [vmem:[#allocation2 + $0x1a0] sm:$0xff] }
 0x3aa   :  { %4570 = vst.msk [vmem:[#allocation3 + $0x1a0] sm:$0xff] %vm1572_vm10, %v4492_v41  ;;  %v3662_v62 = vpop.permute.xlu1 %3661  ;;  %v4700_v6 = vld [vmem:[#allocation3 + $0x198] sm:$0xff]  ;;  %6459 = vset.pattern.permute.xlu0 %v6493_v35  ;;  %6460 = vset.pattern.permute.xlu1 %v6493_v35 }
 0x3ab   :  { %3739 = vst.msk [vmem:[#allocation3 + $0x1b0] sm:$0xff] %vm1379_vm5, %v3662_v62  ;;  %4319 = vrot.lane.b32.xlu0 %v8821_v4, %s6489_s22  ;;  %v4672_v62 = vld [vmem:[#allocation3 + $0xb8] sm:$0xff] }
 0x3ac   :  { %3489 = vrot.lane.b32.xlu1 %v8754_v39, %s6490_s27 }
 0x3ad   :  { %v4110_v26 = vpop.permute.xlu0 %4109 }
 0x3ae   :  { %4187 = vst.msk [vmem:[#allocation3 + $0x1b8] sm:$0xff] %vm1186_vm4, %v4110_v26  ;;  %v3854_v37 = vpop.permute.xlu1 %3853  ;;  %v2766_v30 = vpop.f32.mrb[62].mxu1 }
 0x3af   :  { %3931 = vst.msk [vmem:[#allocation3 + $0x1b0] sm:$0xff] %vm1572_vm10, %v3854_v37  ;;  %4511 = vrot.lane.b32.xlu0 %v8825_v18, %s6492_s23  ;;  %v2767_v43 = vadd.f32 %v6463_v9, %v2766_v30  ;;  %v2768_v19 = vpop.f32.mrb[63].mxu1  ;;  %v4231_v9 = vld [vmem:[#allocation2 + $0x198] sm:$0xff]  ;;  %v4675_v37 = vld [vmem:[#allocation3 + $0xd0] sm:$0xff] }
 0x3b0   :  { %3681 = vrot.lane.b32.xlu1 %v4035_v15, %s6489_s22  ;;  %v6398_v15 = vpack.c.bf16 %v4780_v16, %v4779_v22  ;;  %v4699_v16 = vld [vmem:[#allocation3 + $0x190] sm:$0xff] }
 0x3b1   :  { %v4302_v60 = vpop.permute.xlu0 %4301  ;;  %v4701_v5 = vld [vmem:[#allocation3 + $0x1a0] sm:$0xff]  ;;  %v2992_v55 = vadd.f32 %v8872_v53, %v2767_v43  ;;  %v4777_v53 = vld [vmem:[%s9550_s3 + $0x100] sm:$0xff] }
 0x3b2   :  { %4379 = vst.msk [vmem:[#allocation3 + $0x1b8] sm:$0xff] %vm1379_vm5, %v4302_v60  ;;  %v3472_v39 = vpop.permute.xlu1 %3471  ;;  %5033 = vmatprep.mubr.f32.mxu0 %v4701_v5  ;;  %v6394_v48 = vpack.c.bf16 %v4778_v11, %v4777_v53  ;;  %v9566_v60 = vld [vmem:[#allocation7_spill] sm:$0xff]  ;;  %v4678_v5 = vld [vmem:[#allocation3 + $0xe8] sm:$0xff] }
 0x3b3   :  { %3548 = vst.msk [vmem:[#allocation3 + $0x1c8] sm:$0xff] %vm1186_vm4, %v3472_v39  ;;  %4129 = vrot.lane.b32.xlu0 %v9137_v40, %s6490_s27  ;;  %5034 = vmatmul.mubr.f32.gmra.mrb[130].mxu0 %v4700_v6  ;;  %vm3026_vm0 = vcmp.ge.f32.partialorder %v2992_v55, 0.0  ;;  %v3058_v34 = vmul.f32 0.2, %v2992_v55  ;;  %v4681_v39 = vld [vmem:[#allocation3 + $0x100] sm:$0xff]  ;;  %v4684_v6 = vld [vmem:[#allocation3 + $0x118] sm:$0xff] }
 0x3b4   :  { %3873 = vrot.lane.b32.xlu1 %v8817_v10, %s6492_s23  ;;  %v4687_v11 = vld [vmem:[#allocation3 + $0x130] sm:$0xff] }
 0x3b5   :  { %v4494_v8 = vpop.permute.xlu0 %4493  ;;  %v3090_v14 = vsel %vm3026_vm0, %v2992_v55, %v3058_v34  ;;  %v4424_v34 = vld [vmem:[#allocation2 + $0x1a1] sm:$0xff] }
 0x3b6   :  { %4571 = vst.msk [vmem:[#allocation3 + $0x1b8] sm:$0xff] %vm1572_vm10, %v4494_v8  ;;  %v3664_v54 = vpop.permute.xlu1 %3663  ;;  %v6340_v10 = vpack.c.bf16 %v3090_v14, %v3089_v29 }
 0x3b7   :  { %3740 = vst.msk [vmem:[#allocation3 + $0x1c8] sm:$0xff] %vm1379_vm5, %v3664_v54  ;;  %4321 = vrot.lane.b32.xlu0 %v9151_v49, %s6489_s22  ;;  %v4690_v54 = vld [vmem:[#allocation3 + $0x148] sm:$0xff] }
 0x3b8   :  { %3491 = vrot.lane.b32.xlu1 %v8758_v63, %s6490_s27  ;;  %6342 = vmatprep.subr.msk.bf16.mxu1 %vm8798_vm13, %v6340_v10 }
 0x3b9   :  { %v4112_v25 = vpop.permute.xlu0 %4111  ;;  %6345 = vmatpush3.bf16.xpose.msk.msra.mxu1 %vm8798_vm13, %v9565_v33 }
 0x3ba   :  { %4188 = vst.msk [vmem:[#allocation3 + $0x1d0] sm:$0xff] %vm1186_vm4, %v4112_v25  ;;  %v3856_v36 = vpop.permute.xlu1 %3855  ;;  %v9166_v38 = vpop.f32.mrb[96].mxu0  ;;  %6395 = vmatprep.subr.bf16.mxu1 %v6394_v48 }
 0x3bb   :  { %3932 = vst.msk [vmem:[#allocation3 + $0x1c8] sm:$0xff] %vm1572_vm10, %v3856_v36  ;;  %4513 = vrot.lane.b32.xlu0 %v8841_v56, %s6492_s23  ;;  %v4952_v63 = vpop.f32.mrb[97].mxu0  ;;  %v4703_v56 = vld [vmem:[#allocation3 + $0x1b0] sm:$0xff] }
 0x3bc   :  { %3683 = vrot.lane.b32.xlu1 %v4036_v47, %s6489_s22  ;;  %v4669_v47 = vld [vmem:[#allocation3 + $0xa0] sm:$0xff]  ;;  %v4696_v63 = vld [vmem:[#allocation3 + $0x178] sm:$0xff] }
 0x3bd   :  { %v4304_v23 = vpop.permute.xlu0 %4303  ;;  %v4704_v46 = vld [vmem:[#allocation3 + $0x1b8] sm:$0xff] }
 0x3be   :  { %4380 = vst.msk [vmem:[#allocation3 + $0x1d0] sm:$0xff] %vm1379_vm5, %v4304_v23  ;;  %v3474_v58 = vpop.permute.xlu1 %3473  ;;  %5038 = vmatprep.mubr.f32.mxu0 %v4704_v46  ;;  %v4702_v46 = vld [vmem:[#allocation3 + $0x1a8] sm:$0xff] }
 0x3bf   :  { %3549 = vst.msk [vmem:[#allocation3 + $0x1e0] sm:$0xff] %vm1186_vm4, %v3474_v58  ;;  %4131 = vrot.lane.b32.xlu0 %v9179_v59, %s6490_s27  ;;  %5039 = vmatmul.mubr.f32.gmra.mrb[132].mxu0 %v4703_v56 }
 0x3c0   :  { %3875 = vrot.lane.b32.xlu1 %v8821_v4, %s6492_s23  ;;  %5961 = vmatmul.mubr.msk.f32.vlgmr.msra.gmra.mrb[64].mxu1 %vm873_vm2, %v8936_v42 }
 0x3c1   :  { %v4496_v28 = vpop.permute.xlu0 %4495  ;;  %6397 = vmatpush3.bf16.msra.mxu1 %v6394_v48  ;;  %6194 = vmatprep.mubr.msk.f32.mxu1 %vm873_vm2, %v4651_v1  ;;  %v4693_v48 = vld [vmem:[#allocation3 + $0x160] sm:$0xff]  ;;  %v4708_v1 = vld [vmem:[#allocation3 + $0x1d8] sm:$0xff] }
 0x3c2   :  { %4572 = vst.msk [vmem:[#allocation3 + $0x1d0] sm:$0xff] %vm1572_vm10, %v4496_v28  ;;  %v3666_v13 = vpop.permute.xlu1 %3665  ;;  %6399 = vmatprep.subr.bf16.mxu1 %v6398_v15  ;;  %v4706_v57 = vld [vmem:[#allocation3 + $0x1c8] sm:$0xff] }
 0x3c3   :  { %3741 = vst.msk [vmem:[#allocation3 + $0x1e0] sm:$0xff] %vm1379_vm5, %v3666_v13  ;;  %4323 = vrot.lane.b32.xlu0 %v9190_v44, %s6489_s22 }
 0x3c4   :  { %3493 = vrot.lane.b32.xlu1 %v8819_v12, %s6490_s27 }
 0x3c5   :  { %v4114_v4 = vpop.permute.xlu0 %4113  ;;  %6401 = vmatpush3.bf16.msra.mxu1 %v6398_v15 }
 0x3c6   :  { %4189 = vst.msk [vmem:[#allocation3 + $0x1e8] sm:$0xff] %vm1186_vm4, %v4114_v4  ;;  %v3858_v42 = vpop.permute.xlu1 %3857  ;;  %v9198_v17 = vpop.f32.mrb[98].mxu0 }
 0x3c7   :  { %3933 = vst.msk [vmem:[#allocation3 + $0x1e0] sm:$0xff] %vm1572_vm10, %v3858_v42  ;;  %4515 = vrot.lane.b32.xlu0 %v8845_v27, %s6492_s23  ;;  %v4957_v32 = vpop.f32.mrb[99].mxu0  ;;  %v4660_v27 = vld [vmem:[#allocation3 + $0x58] sm:$0xff] }
 0x3c8   :  { %3685 = vrot.lane.b32.xlu1 %v9137_v40, %s6489_s22  ;;  %6195 = vmatmul.mubr.msk.f32.vlgmr.msra.gmra.mrb[66].mxu1 %vm873_vm2, %v4654_v3  ;;  %v4714_v3 = vld [vmem:[#allocation3 + $0x208] sm:$0xff] }
 0x3c9   :  { %v4306_v12 = vpop.permute.xlu0 %4305  ;;  %v4707_v50 = vld [vmem:[#allocation3 + $0x1d0] sm:$0xff]  ;;  %6197 = vmatprep.mubr.msk.f32.mxu1 %vm873_vm2, %v4657_v61  ;;  %v4717_v61 = vld [vmem:[#allocation3 + $0x220] sm:$0xff] }
 0x3ca   :  { %4381 = vst.msk [vmem:[#allocation3 + $0x1e8] sm:$0xff] %vm1379_vm5, %v4306_v12  ;;  %v3476_v31 = vpop.permute.xlu1 %3475  ;;  %5043 = vmatprep.mubr.f32.mxu0 %v4707_v50 }
 0x3cb   :  { %3550 = vst.msk [vmem:[#allocation3 + $0x1f8] sm:$0xff] %vm1186_vm4, %v3476_v31  ;;  %4133 = vrot.lane.b32.xlu0 %v8847_v20, %s6490_s27  ;;  %5044 = vmatmul.mubr.f32.gmra.mrb[134].mxu0 %v4706_v57  ;;  %v4666_v20 = vld [vmem:[#allocation3 + $0x88] sm:$0xff]  ;;  %v4720_v31 = vld [vmem:[#allocation3 + $0x238] sm:$0xff] }
 0x3cc   :  { %3877 = vrot.lane.b32.xlu1 %v9151_v49, %s6492_s23  ;;  %6198 = vmatmul.mubr.msk.f32.gmra.mrb[68].mxu1 %vm873_vm2, %v4660_v27  ;;  %v3092_v49 = vld [vmem:[%s9553_s6] sm:$0xf] }
 0x3cd   :  { %v4498_v7 = vpop.permute.xlu0 %4497  ;;  %6200 = vmatprep.mubr.msk.f32.mxu1 %vm873_vm2, %v4663_v51  ;;  %v4723_v27 = vld [vmem:[#allocation3 + $0x250] sm:$0xff] }
 0x3ce   :  { %4573 = vst.msk [vmem:[#allocation3 + $0x1e8] sm:$0xff] %vm1572_vm10, %v4498_v7  ;;  %v3668_v45 = vpop.permute.xlu1 %3667  ;;  %v4709_v19 = vld [vmem:[#allocation3 + $0x1e0] sm:$0xff] }
 0x3cf   :  { %3742 = vst.msk [vmem:[#allocation3 + $0x1f8] sm:$0xff] %vm1379_vm5, %v3668_v45  ;;  %4325 = vrot.lane.b32.xlu0 %v4231_v9, %s6489_s22  ;;  %v4726_v45 = vld [vmem:[#allocation3 + $0x268] sm:$0xff] }
 0x3d0   :  { %3495 = vrot.lane.b32.xlu1 %v8825_v18, %s6490_s27  ;;  %6201 = vmatmul.mubr.msk.f32.gmra.mrb[70].mxu1 %vm873_vm2, %v4666_v20 }
 0x3d1   :  { %v4116_v21 = vpop.permute.xlu0 %4115  ;;  %6203 = vmatprep.mubr.msk.f32.mxu1 %vm873_vm2, %v4669_v47 }
 0x3d2   :  { %4190 = vst.msk [vmem:[#allocation3 + $0x200] sm:$0xff] %vm1186_vm4, %v4116_v21  ;;  %v3860_v52 = vpop.permute.xlu1 %3859  ;;  %v9223_v41 = vpop.f32.mrb[100].mxu0 }
 0x3d3   :  { %3934 = vst.msk [vmem:[#allocation3 + $0x1f8] sm:$0xff] %vm1572_vm10, %v3860_v52  ;;  %4517 = vrot.lane.b32.xlu0 %v4423_v24, %s6492_s23  ;;  %v4962_v18 = vpop.f32.mrb[101].mxu0  ;;  %v4729_v24 = vld [vmem:[#allocation3 + $0x280] sm:$0xff]  ;;  %v4732_v52 = vld [vmem:[#allocation3 + $0x298] sm:$0xff] }
 0x3d4   :  { %3687 = vrot.lane.b32.xlu1 %v9179_v59, %s6489_s22  ;;  %6204 = vmatmul.mubr.msk.f32.gmra.mrb[72].mxu1 %vm873_vm2, %v4672_v62  ;;  %v4705_v59 = vld [vmem:[#allocation3 + $0x1c0] sm:$0xff]  ;;  %v4735_v62 = vld [vmem:[#allocation3 + $0x2b0] sm:$0xff] }
 0x3d5   :  { %v4308_v26 = vpop.permute.xlu0 %4307  ;;  %v4710_v30 = vld [vmem:[#allocation3 + $0x1e8] sm:$0xff]  ;;  %6206 = vmatprep.mubr.msk.f32.mxu1 %vm873_vm2, %v4675_v37  ;;  %v4741_v37 = vld [vmem:[#allocation3 + $0x2e0] sm:$0xff] }
 0x3d6   :  { %4382 = vst.msk [vmem:[#allocation3 + $0x200] sm:$0xff] %vm1379_vm5, %v4308_v26  ;;  %v3478_v43 = vpop.permute.xlu1 %3477  ;;  %5048 = vmatprep.mubr.f32.mxu0 %v4710_v30  ;;  %v4738_v30 = vld [vmem:[#allocation3 + $0x2c8] sm:$0xff] }
 0x3d7   :  { %3551 = vst.msk [vmem:[#allocation3 + $0x210] sm:$0xff] %vm1186_vm4, %v3478_v43  ;;  %4135 = vrot.lane.b32.xlu0 %v9566_v60, %s6490_s27  ;;  %5049 = vmatmul.mubr.f32.gmra.mrb[136].mxu0 %v4709_v19  ;;  %v4744_v60 = vld [vmem:[#allocation3 + $0x2f8] sm:$0xff] }
 0x3d8   :  { %3879 = vrot.lane.b32.xlu1 %v9190_v44, %s6492_s23  ;;  %6207 = vmatmul.mubr.msk.f32.gmra.mrb[74].mxu1 %vm873_vm2, %v4678_v5  ;;  %v4711_v44 = vld [vmem:[#allocation3 + $0x1f0] sm:$0xff] }
 0x3d9   :  { %v4500_v55 = vpop.permute.xlu0 %4499  ;;  %6209 = vmatprep.mubr.msk.f32.mxu1 %vm873_vm2, %v4681_v39 }
 0x3da   :  { %4574 = vst.msk [vmem:[#allocation3 + $0x200] sm:$0xff] %vm1572_vm10, %v4500_v55  ;;  %v3670_v40 = vpop.permute.xlu1 %3669  ;;  %v4712_v33 = vld [vmem:[#allocation3 + $0x1f8] sm:$0xff] }
 0x3db   :  { %3743 = vst.msk [vmem:[#allocation3 + $0x210] sm:$0xff] %vm1379_vm5, %v3670_v40  ;;  %4327 = vrot.lane.b32.xlu0 %v4232_v2, %s6489_s22 }
 0x3dc   :  { %6210 = vmatmul.mubr.msk.f32.gmra.mrb[76].mxu1 %vm873_vm2, %v4684_v6 }
 0x3dd   :  { %v4118_v53 = vpop.permute.xlu0 %4117  ;;  %6212 = vmatprep.mubr.msk.f32.mxu1 %vm873_vm2, %v4687_v11 }
 0x3de   :  { %4191 = vst.msk [vmem:[#allocation3 + $0x218] sm:$0xff] %vm1186_vm4, %v4118_v53  ;;  %v3862_v8 = vpop.permute.xlu1 %3861  ;;  %v9245_v29 = vpop.f32.mrb[102].mxu0 }
 0x3df   :  { %3935 = vst.msk [vmem:[#allocation3 + $0x210] sm:$0xff] %vm1572_vm10, %v3862_v8  ;;  %4519 = vrot.lane.b32.xlu0 %v4424_v34, %s6492_s23  ;;  %v4967_v14 = vpop.f32.mrb[103].mxu0 }
 0x3e0   :  { %6213 = vmatmul.mubr.msk.f32.gmra.mrb[78].mxu1 %vm873_vm2, %v4690_v54 }
 0x3e1   :  { %v4310_v10 = vpop.permute.xlu0 %4309  ;;  %v4713_v25 = vld [vmem:[#allocation3 + $0x200] sm:$0xff]  ;;  %6215 = vmatprep.mubr.msk.f32.mxu1 %vm873_vm2, %v4693_v48 }
 0x3e2   :  { %4383 = vst.msk [vmem:[#allocation3 + $0x218] sm:$0xff] %vm1379_vm5, %v4310_v10  ;;  %v3480_v36 = vpop.permute.xlu1 %3479  ;;  %5053 = vmatprep.mubr.f32.mxu0 %v4713_v25 }
 0x3e3   :  { %3552 = vst.msk [vmem:[#allocation3 + $0x228] sm:$0xff] %vm1186_vm4, %v3480_v36  ;;  %5054 = vmatmul.mubr.f32.gmra.mrb[138].mxu0 %v4712_v33  ;;  %3095 = vperm.xlu0 %6459, %v3092_v49  }
 0x3e4   :  { %6216 = vmatmul.mubr.msk.f32.gmra.mrb[80].mxu1 %vm873_vm2, %v4696_v63 }
 0x3e5   :  { %v4502_v22 = vpop.permute.xlu0 %4501  ;;  %6218 = vmatprep.mubr.msk.f32.mxu1 %vm873_vm2, %v4699_v16 }
 0x3e6   :  { %4575 = vst.msk [vmem:[#allocation3 + $0x218] sm:$0xff] %vm1572_vm10, %v4502_v22  ;;  %v3672_v23 = vpop.permute.xlu1 %3671  ;;  %v4715_v32 = vld [vmem:[#allocation3 + $0x210] sm:$0xff] }
 0x3e7   :  { %3744 = vst.msk [vmem:[#allocation3 + $0x228] sm:$0xff] %vm1379_vm5, %v3672_v23 }
 0x3e8   :  { %6219 = vmatmul.mubr.msk.f32.gmra.mrb[82].mxu1 %vm873_vm2, %v4702_v46 }
 0x3e9   :  { %v4120_v58 = vpop.permute.xlu0 %4119  ;;  %6221 = vmatprep.mubr.msk.f32.mxu1 %vm873_vm2, %v4705_v59 }
 0x3ea   :  { %4192 = vst.msk [vmem:[#allocation3 + $0x230] sm:$0xff] %vm1186_vm4, %v4120_v58  ;;  %v3864_v56 = vpop.permute.xlu1 %3863  ;;  %v9264_v15 = vpop.f32.mrb[104].mxu0 }
 0x3eb   :  { %3936 = vst.msk [vmem:[#allocation3 + $0x228] sm:$0xff] %vm1572_vm10, %v3864_v56  ;;  %v4972_v28 = vpop.f32.mrb[105].mxu0 }
 0x3ec   :  { %6222 = vmatmul.mubr.msk.f32.gmra.mrb[84].mxu1 %vm873_vm2, %v4708_v1 }
 0x3ed   :  { %v4312_v13 = vpop.permute.xlu0 %4311  ;;  %v4716_v4 = vld [vmem:[#allocation3 + $0x218] sm:$0xff]  ;;  %6224 = vmatprep.mubr.msk.f32.mxu1 %vm873_vm2, %v4711_v44 }
 0x3ee   :  { %4384 = vst.msk [vmem:[#allocation3 + $0x230] sm:$0xff] %vm1379_vm5, %v4312_v13  ;;  %v3482_v42 = vpop.permute.xlu1 %3481  ;;  %5058 = vmatprep.mubr.f32.mxu0 %v4716_v4 }
 0x3ef   :  { %3553 = vst.msk [vmem:[#allocation3 + $0x240] sm:$0xff] %vm1186_vm4, %v3482_v42  ;;  %5059 = vmatmul.mubr.f32.gmra.mrb[140].mxu0 %v4715_v32 }
 0x3f0   :  { %6225 = vmatmul.mubr.msk.f32.gmra.mrb[86].mxu1 %vm873_vm2, %v4714_v3 }
 0x3f1   :  { %v4504_v12 = vpop.permute.xlu0 %4503  ;;  %6227 = vmatprep.mubr.msk.f32.mxu1 %vm873_vm2, %v4717_v61 }
 0x3f2   :  { %4576 = vst.msk [vmem:[#allocation3 + $0x230] sm:$0xff] %vm1572_vm10, %v4504_v12  ;;  %v3674_v50 = vpop.permute.xlu1 %3673  ;;  %v4718_v47 = vld [vmem:[#allocation3 + $0x228] sm:$0xff] }
 0x3f3   :  { %3745 = vst.msk [vmem:[#allocation3 + $0x240] sm:$0xff] %vm1379_vm5, %v3674_v50 }
 0x3f4   :  { %6228 = vmatmul.mubr.msk.f32.gmra.mrb[88].mxu1 %vm873_vm2, %v4720_v31 }
 0x3f5   :  { %v4122_v57 = vpop.permute.xlu0 %4121  ;;  %6230 = vmatprep.mubr.msk.f32.mxu1 %vm873_vm2, %v4723_v27 }
 0x3f6   :  { %4193 = vst.msk [vmem:[#allocation3 + $0x248] sm:$0xff] %vm1186_vm4, %v4122_v57  ;;  %v3866_v9 = vpop.permute.xlu1 %3865  ;;  %v9277_v7 = vpop.f32.mrb[106].mxu0 }
 0x3f7   :  { %3937 = vst.msk [vmem:[#allocation3 + $0x240] sm:$0xff] %vm1572_vm10, %v3866_v9  ;;  %v4977_v51 = vpop.f32.mrb[107].mxu0 }
 0x3f8   :  { %6231 = vmatmul.mubr.msk.f32.gmra.mrb[90].mxu1 %vm873_vm2, %v4726_v45 }
 0x3f9   :  { %v4314_v20 = vpop.permute.xlu0 %4313  ;;  %v4719_v35 = vld [vmem:[#allocation3 + $0x230] sm:$0xff]  ;;  %6233 = vmatprep.mubr.msk.f32.mxu1 %vm873_vm2, %v4729_v24 }
 0x3fa   :  { %4385 = vst.msk [vmem:[#allocation3 + $0x248] sm:$0xff] %vm1379_vm5, %v4314_v20  ;;  %v3484_v21 = vpop.permute.xlu1 %3483  ;;  %5063 = vmatprep.mubr.f32.mxu0 %v4719_v35 }
 0x3fb   :  { %3554 = vst.msk [vmem:[#allocation3 + $0x258] sm:$0xff] %vm1186_vm4, %v3484_v21  ;;  %5064 = vmatmul.mubr.f32.gmra.mrb[142].mxu0 %v4718_v47 }
 0x3fc   :  { %6234 = vmatmul.mubr.msk.f32.gmra.mrb[92].mxu1 %vm873_vm2, %v4732_v52 }
 0x3fd   :  { %v4506_v18 = vpop.permute.xlu0 %4505  ;;  %6236 = vmatprep.mubr.msk.f32.mxu1 %vm873_vm2, %v4735_v62 }
 0x3fe   :  { %4577 = vst.msk [vmem:[#allocation3 + $0x248] sm:$0xff] %vm1572_vm10, %v4506_v18  ;;  %v3676_v26 = vpop.permute.xlu1 %3675  ;;  %v4721_v6 = vld [vmem:[#allocation3 + $0x240] sm:$0xff] }
 0x3ff   :  { %3746 = vst.msk [vmem:[#allocation3 + $0x258] sm:$0xff] %vm1379_vm5, %v3676_v26 }
 0x400   :  { %6237 = vmatmul.mubr.msk.f32.gmra.mrb[94].mxu1 %vm873_vm2, %v4738_v30 }
 0x401   :  { %v4124_v43 = vpop.permute.xlu0 %4123  ;;  %6239 = vmatprep.mubr.msk.f32.mxu1 %vm873_vm2, %v4741_v37 }
 0x402   :  { %4194 = vst.msk [vmem:[#allocation3 + $0x260] sm:$0xff] %vm1186_vm4, %v4124_v43  ;;  %v3868_v19 = vpop.permute.xlu1 %3867  ;;  %v9292_v5 = vpop.f32.mrb[108].mxu0 }
 0x403   :  { %3938 = vst.msk [vmem:[#allocation3 + $0x258] sm:$0xff] %vm1572_vm10, %v3868_v19  ;;  %v4982_v2 = vpop.f32.mrb[109].mxu0 }
 0x404   :  { %6240 = vmatmul.mubr.msk.f32.gmra.mrb[96].mxu1 %vm873_vm2, %v4744_v60 }
 0x405   :  { %v4316_v55 = vpop.permute.xlu0 %4315  ;;  %v4722_v39 = vld [vmem:[#allocation3 + $0x248] sm:$0xff] }
 0x406   :  { %4386 = vst.msk [vmem:[#allocation3 + $0x260] sm:$0xff] %vm1379_vm5, %v4316_v55  ;;  %v3486_v40 = vpop.permute.xlu1 %3485  ;;  %5068 = vmatprep.mubr.f32.mxu0 %v4722_v39 }
 0x407   :  { %3555 = vst.msk [vmem:[#allocation3 + $0x270] sm:$0xff] %vm1186_vm4, %v3486_v40  ;;  %5069 = vmatmul.mubr.f32.gmra.mrb[144].mxu0 %v4721_v6 }
 0x409   :  { %v4508_v34 = vpop.permute.xlu0 %4507 }
 0x40a   :  { %4578 = vst.msk [vmem:[#allocation3 + $0x260] sm:$0xff] %vm1572_vm10, %v4508_v34  ;;  %v3678_v53 = vpop.permute.xlu1 %3677  ;;  %v4724_v25 = vld [vmem:[#allocation3 + $0x258] sm:$0xff] }
 0x40b   :  { %3747 = vst.msk [vmem:[#allocation3 + $0x270] sm:$0xff] %vm1379_vm5, %v3678_v53 }
 0x40d   :  { %v4126_v11 = vpop.permute.xlu0 %4125 }
 0x40e   :  { %4195 = vst.msk [vmem:[#allocation3 + $0x278] sm:$0xff] %vm1186_vm4, %v4126_v11  ;;  %v3870_v8 = vpop.permute.xlu1 %3869  ;;  %v9300_v14 = vpop.f32.mrb[110].mxu0 }
 0x40f   :  { %3939 = vst.msk [vmem:[#allocation3 + $0x270] sm:$0xff] %vm1572_vm10, %v3870_v8  ;;  %v4987_v54 = vpop.f32.mrb[111].mxu0 }
 0x411   :  { %v4318_v49 = vpop.permute.xlu0 %4317  ;;  %v4725_v10 = vld [vmem:[#allocation3 + $0x260] sm:$0xff] }
 0x412   :  { %4387 = vst.msk [vmem:[#allocation3 + $0x278] sm:$0xff] %vm1379_vm5, %v4318_v49  ;;  %v3488_v48 = vpop.permute.xlu1 %3487  ;;  %5073 = vmatprep.mubr.f32.mxu0 %v4725_v10 }
 0x413   :  { %3556 = vst.msk [vmem:[#allocation3 + $0x288] sm:$0xff] %vm1186_vm4, %v3488_v48  ;;  %5074 = vmatmul.mubr.f32.gmra.mrb[146].mxu0 %v4724_v25 }
 0x415   :  { %v4510_v36 = vpop.permute.xlu0 %4509 }
 0x416   :  { %4579 = vst.msk [vmem:[#allocation3 + $0x278] sm:$0xff] %vm1572_vm10, %v4510_v36  ;;  %v3680_v33 = vpop.permute.xlu1 %3679  ;;  %v4727_v56 = vld [vmem:[#allocation3 + $0x270] sm:$0xff] }
 0x417   :  { %3748 = vst.msk [vmem:[#allocation3 + $0x288] sm:$0xff] %vm1379_vm5, %v3680_v33 }
 0x419   :  { %v4128_v63 = vpop.permute.xlu0 %4127 }
 0x41a   :  { %4196 = vst.msk [vmem:[#allocation3 + $0x290] sm:$0xff] %vm1186_vm4, %v4128_v63  ;;  %v3872_v22 = vpop.permute.xlu1 %3871  ;;  %v9309_v16 = vpop.f32.mrb[112].mxu0 }
 0x41b   :  { %3940 = vst.msk [vmem:[#allocation3 + $0x288] sm:$0xff] %vm1572_vm10, %v3872_v22  ;;  %v4992_v23 = vpop.f32.mrb[113].mxu0 }
 0x41d   :  { %v4320_v46 = vpop.permute.xlu0 %4319  ;;  %v4728_v58 = vld [vmem:[#allocation3 + $0x278] sm:$0xff] }
 0x41e   :  { %4388 = vst.msk [vmem:[#allocation3 + $0x290] sm:$0xff] %vm1379_vm5, %v4320_v46  ;;  %v3490_v59 = vpop.permute.xlu1 %3489  ;;  %5078 = vmatprep.mubr.f32.mxu0 %v4728_v58 }
 0x41f   :  { %3557 = vst.msk [vmem:[#allocation3 + $0x2a0] sm:$0xff] %vm1186_vm4, %v3490_v59  ;;  %5079 = vmatmul.mubr.f32.gmra.mrb[148].mxu0 %v4727_v56 }
 0x421   :  { %v4512_v28 = vpop.permute.xlu0 %4511 }
 0x422   :  { %4580 = vst.msk [vmem:[#allocation3 + $0x290] sm:$0xff] %vm1572_vm10, %v4512_v28  ;;  %v3682_v1 = vpop.permute.xlu1 %3681  ;;  %v4730_v61 = vld [vmem:[#allocation3 + $0x288] sm:$0xff] }
 0x423   :  { %3749 = vst.msk [vmem:[#allocation3 + $0x2a0] sm:$0xff] %vm1379_vm5, %v3682_v1 }
 0x425   :  { %v4130_v13 = vpop.permute.xlu0 %4129 }
 0x426   :  { %4197 = vst.msk [vmem:[#allocation3 + $0x2a8] sm:$0xff] %vm1186_vm4, %v4130_v13  ;;  %v3874_v44 = vpop.permute.xlu1 %3873  ;;  %v9316_v4 = vpop.f32.mrb[114].mxu0 }
 0x427   :  { %3941 = vst.msk [vmem:[#allocation3 + $0x2a0] sm:$0xff] %vm1572_vm10, %v3874_v44  ;;  %v4997_v42 = vpop.f32.mrb[115].mxu0 }
 0x429   :  { %v4322_v32 = vpop.permute.xlu0 %4321  ;;  %v4731_v3 = vld [vmem:[#allocation3 + $0x290] sm:$0xff] }
 0x42a   :  { %4389 = vst.msk [vmem:[#allocation3 + $0x2a8] sm:$0xff] %vm1379_vm5, %v4322_v32  ;;  %v3492_v12 = vpop.permute.xlu1 %3491  ;;  %5083 = vmatprep.mubr.f32.mxu0 %v4731_v3  ;;  %v9360_v3 = vld [vmem:[%s9551_s4] ss:$0 sm:$0xff] }
 0x42b   :  { %3558 = vst.msk [vmem:[#allocation3 + $0x2b8] sm:$0xff] %vm1186_vm4, %v3492_v12  ;;  %5084 = vmatmul.mubr.f32.gmra.mrb[150].mxu0 %v4730_v61  ;;  %v4956_v12 = vadd.f32 %v9360_v3, %v9198_v17  ;;  %v4951_v61 = vadd.f32 %v9360_v3, %v9166_v38 }
 0x42d   :  { %v4514_v50 = vpop.permute.xlu0 %4513 }
 0x42e   :  { %4581 = vst.msk [vmem:[#allocation3 + $0x2a8] sm:$0xff] %vm1572_vm10, %v4514_v50  ;;  %v3684_v31 = vpop.permute.xlu1 %3683  ;;  %v4733_v35 = vld [vmem:[#allocation3 + $0x2a0] sm:$0xff] }
 0x42f   :  { %3750 = vst.msk [vmem:[#allocation3 + $0x2b8] sm:$0xff] %vm1379_vm5, %v3684_v31 }
 0x431   :  { %v4132_v57 = vpop.permute.xlu0 %4131 }
 0x432   :  { %4198 = vst.msk [vmem:[#allocation3 + $0x2c0] sm:$0xff] %vm1186_vm4, %v4132_v57  ;;  %v3876_v27 = vpop.permute.xlu1 %3875  ;;  %v9324_v9 = vpop.f32.mrb[116].mxu0 }
 0x433   :  { %3942 = vst.msk [vmem:[#allocation3 + $0x2b8] sm:$0xff] %vm1572_vm10, %v3876_v27  ;;  %v5002_v51 = vpop.f32.mrb[117].mxu0 }
 0x435   :  { %v4324_v45 = vpop.permute.xlu0 %4323  ;;  %v4734_v20 = vld [vmem:[#allocation3 + $0x2a8] sm:$0xff] }
 0x436   :  { %4390 = vst.msk [vmem:[#allocation3 + $0x2c0] sm:$0xff] %vm1379_vm5, %v4324_v45  ;;  %v3494_v24 = vpop.permute.xlu1 %3493  ;;  %5088 = vmatprep.mubr.f32.mxu0 %v4734_v20  ;;  %v4966_v45 = vadd.f32 %v9360_v3, %v9245_v29 }
 0x437   :  { %3559 = vst.msk [vmem:[#allocation3 + $0x2d0] sm:$0xff] %vm1186_vm4, %v3494_v24  ;;  %5089 = vmatmul.mubr.f32.gmra.mrb[152].mxu0 %v4733_v35  ;;  %v4961_v35 = vadd.f32 %v9360_v3, %v9223_v41  ;;  %v4971_v41 = vadd.f32 %v9360_v3, %v9264_v15  ;;  %v4981_v15 = vadd.f32 %v9360_v3, %v9292_v5 }
 0x439   :  { %v4516_v21 = vpop.permute.xlu0 %4515 }
 0x43a   :  { %4582 = vst.msk [vmem:[#allocation3 + $0x2c0] sm:$0xff] %vm1572_vm10, %v4516_v21  ;;  %v3686_v47 = vpop.permute.xlu1 %3685  ;;  %v4736_v19 = vld [vmem:[#allocation3 + $0x2b8] sm:$0xff] }
 0x43b   :  { %3751 = vst.msk [vmem:[#allocation3 + $0x2d0] sm:$0xff] %vm1379_vm5, %v3686_v47 }
 0x43d   :  { %v4134_v52 = vpop.permute.xlu0 %4133 }
 0x43e   :  { %4199 = vst.msk [vmem:[#allocation3 + $0x2d8] sm:$0xff] %vm1186_vm4, %v4134_v52  ;;  %v3878_v18 = vpop.permute.xlu1 %3877  ;;  %v9332_v62 = vpop.f32.mrb[118].mxu0 }
 0x43f   :  { %3943 = vst.msk [vmem:[#allocation3 + $0x2d0] sm:$0xff] %vm1572_vm10, %v3878_v18  ;;  %v5007_v26 = vpop.f32.mrb[119].mxu0 }
 0x441   :  { %v4326_v37 = vpop.permute.xlu0 %4325  ;;  %v4737_v30 = vld [vmem:[#allocation3 + $0x2c0] sm:$0xff] }
 0x442   :  { %4391 = vst.msk [vmem:[#allocation3 + $0x2d8] sm:$0xff] %vm1379_vm5, %v4326_v37  ;;  %v3496_v43 = vpop.permute.xlu1 %3495  ;;  %5093 = vmatprep.mubr.f32.mxu0 %v4737_v30  ;;  %v4976_v37 = vadd.f32 %v9360_v3, %v9277_v7  ;;  %v4986_v7 = vadd.f32 %v9360_v3, %v9300_v14  ;;  %v4996_v14 = vadd.f32 %v9360_v3, %v9316_v4 }
 0x443   :  { %3560 = vst.msk [vmem:[#allocation3 + $0x2e8] sm:$0xff] %vm1186_vm4, %v3496_v43  ;;  %5094 = vmatmul.mubr.f32.gmra.mrb[154].mxu0 %v4736_v19  ;;  %v5006_v4 = vadd.f32 %v9360_v3, %v9332_v62 }
 0x445   :  { %v4518_v60 = vpop.permute.xlu0 %4517 }
 0x446   :  { %4583 = vst.msk [vmem:[#allocation3 + $0x2d8] sm:$0xff] %vm1572_vm10, %v4518_v60  ;;  %v3688_v2 = vpop.permute.xlu1 %3687  ;;  %v4739_v11 = vld [vmem:[#allocation3 + $0x2d0] sm:$0xff] }
 0x447   :  { %3752 = vst.msk [vmem:[#allocation3 + $0x2e8] sm:$0xff] %vm1379_vm5, %v3688_v2 }
 0x449   :  { %v4136_v55 = vpop.permute.xlu0 %4135 }
 0x44a   :  { %4200 = vst.msk [vmem:[#allocation3 + $0x2f0] sm:$0xff] %vm1186_vm4, %v4136_v55  ;;  %v3880_v39 = vpop.permute.xlu1 %3879  ;;  %v9340_v40 = vpop.f32.mrb[120].mxu0 }
 0x44b   :  { %3944 = vst.msk [vmem:[#allocation3 + $0x2e8] sm:$0xff] %vm1572_vm10, %v3880_v39  ;;  %v5012_v6 = vpop.f32.mrb[121].mxu0 }
 0x44d   :  { %v4328_v34 = vpop.permute.xlu0 %4327  ;;  %v4740_v53 = vld [vmem:[#allocation3 + $0x2d8] sm:$0xff] }
 0x44e   :  { %4392 = vst.msk [vmem:[#allocation3 + $0x2f0] sm:$0xff] %vm1379_vm5, %v4328_v34  ;;  %5098 = vmatprep.mubr.f32.mxu0 %v4740_v53 }
 0x44f   :  { %5099 = vmatmul.mubr.f32.gmra.mrb[156].mxu0 %v4739_v11 }
 0x451   :  { %v4520_v8 = vpop.permute.xlu0 %4519 }
 0x452   :  { %4584 = vst.msk [vmem:[#allocation3 + $0x2f0] sm:$0xff] %vm1572_vm10, %v4520_v8  ;;  %v4742_v48 = vld [vmem:[#allocation3 + $0x2e8] sm:$0xff] }
 0x456   :  { %v9345_v54 = vpop.f32.mrb[122].mxu0 }
 0x457   :  { %v5017_v49 = vpop.f32.mrb[123].mxu0  ;;  %v5016_v62 = vadd.f32 %v9360_v3, %v9345_v54 }
 0x459   :  { %v4743_v10 = vld [vmem:[#allocation3 + $0x2f0] sm:$0xff] }
 0x45a   :  { %5103 = vmatprep.mubr.f32.mxu0 %v4743_v10 }
 0x45b   :  { %5104 = vmatmul.mubr.f32.gmra.mrb[158].mxu0 %v4742_v48 }
 0x462   :  { %v9347_v25 = vpop.f32.mrb[124].mxu0  ;;  %v3096_v56 = vpop.permute.xlu0 %3095 }
 0x463   :  { %v5022_v36 = vpop.f32.mrb[125].mxu0 }
 0x46e   :  { %v9349_v33 = vpop.f32.mrb[126].mxu0 }
 0x46f   :  { %v5027_v63 = vpop.f32.mrb[127].mxu0  ;;  %v5026_v54 = vadd.f32 %v9360_v3, %v9349_v33  ;;  %v9439_v33 = vld [vmem:[%s9552_s5] sm:$0xf] }
 0x470   :  { %6030 = vmatprep.mubr.msk.f32.mxu1 %vm873_vm2, %v9439_v33 }
 0x47a   :  { %v9351_v22 = vpop.f32.mrb[128].mxu0 }
 0x47b   :  { %v5032_v23 = vpop.f32.mrb[129].mxu0 }
 0x486   :  { %v9353_v46 = vpop.f32.mrb[130].mxu0 }
 0x487   :  { %v5037_v58 = vpop.f32.mrb[131].mxu0 }
 0x492   :  { %v9355_v59 = vpop.f32.mrb[132].mxu0 }
 0x493   :  { %v5042_v28 = vpop.f32.mrb[133].mxu0  ;;  %v3263_v1 = vpop.f32.mrb[64].mxu1 }
 0x494   :  { %v3265_v13 = vpop.f32.mrb[65].mxu1  ;;  %v3264_v44 = vadd.f32 %v3263_v1, %v3096_v56  ;;  %v4991_v28 = vadd.f32 %v9360_v3, %v9309_v16  ;;  %v5001_v16 = vadd.f32 %v9360_v3, %v9324_v9  ;;  %v5011_v9 = vadd.f32 %v9360_v3, %v9340_v40 }
 0x495   :  { %v3266_v42 = vadd.f32 %v3265_v13, %v3096_v56 }
 0x497   :  { %v3270_v32 = vcombine.low %v3264_v44, %v3266_v42 }
 0x499   :  { %3272 = vst [vmem:[#allocation4] sm:$0xff] %v3270_v32 }
 0x49b   :  { %v6196_v50 = vpop.f32.mrb[66].mxu1 }
 0x49c   :  { %v5181_v31 = vadd.f32 %v6196_v50, %v4956_v12  ;;  %v5175_v57 = vpop.f32.mrb[67].mxu1 }
 0x49d   :  { %v5176_v27 = vadd.f32 %v5175_v57, %v4951_v61 }
 0x49e   :  { %v9366_v51 = vpop.f32.mrb[134].mxu0  ;;  %vm5335_vm4 = vcmp.ge.f32.partialorder %v5181_v31, 0.0  ;;  %v5367_v20 = vmul.f32 0.2, %v5181_v31 }
 0x49f   :  { %v5047_v24 = vpop.f32.mrb[135].mxu0  ;;  %vm5334_vm5 = vcmp.ge.f32.partialorder %v5176_v27, 0.0  ;;  %v5366_v17 = vmul.f32 0.2, %v5176_v27  ;;  %v6199_v21 = vpop.f32.mrb[68].mxu1 }
 0x4a0   :  { %v9372_v47 = vsel %vm5335_vm4, %v5181_v31, %v5367_v20  ;;  %v5191_v38 = vadd.f32 %v6199_v21, %v4966_v45  ;;  %v5185_v52 = vpop.f32.mrb[69].mxu1 }
 0x4a1   :  { %v9374_v18 = vsel %vm5334_vm5, %v5176_v27, %v5366_v17  ;;  %v5186_v26 = vadd.f32 %v5185_v52, %v4961_v35 }
 0x4a2   :  { %v6405_v29 = vpack.c.bf16 %v9372_v47, %v9374_v18  ;;  %vm5337_vm10 = vcmp.ge.f32.partialorder %v5191_v38, 0.0  ;;  %v5369_v30 = vmul.f32 0.2, %v5191_v38 }
 0x4a3   :  { %vm5336_vm1 = vcmp.ge.f32.partialorder %v5186_v26, 0.0  ;;  %v5368_v43 = vmul.f32 0.2, %v5186_v26  ;;  %v6202_v19 = vpop.f32.mrb[70].mxu1 }
 0x4a4   :  { %v9382_v60 = vsel %vm5337_vm10, %v5191_v38, %v5369_v30  ;;  %v5201_v2 = vadd.f32 %v6202_v19, %v4976_v37  ;;  %v5195_v55 = vpop.f32.mrb[71].mxu1 }
 0x4a5   :  { %v9384_v39 = vsel %vm5336_vm1, %v5186_v26, %v5368_v43  ;;  %v5196_v6 = vadd.f32 %v5195_v55, %v4971_v41 }
 0x4a6   :  { %v6411_v34 = vpack.c.bf16 %v9382_v60, %v9384_v39  ;;  %vm5339_vm3 = vcmp.ge.f32.partialorder %v5201_v2, 0.0  ;;  %v5371_v53 = vmul.f32 0.2, %v5201_v2 }
 0x4a7   :  { %vm5338_vm6 = vcmp.ge.f32.partialorder %v5196_v6, 0.0  ;;  %v5370_v11 = vmul.f32 0.2, %v5196_v6  ;;  %v6205_v8 = vpop.f32.mrb[72].mxu1 }
 0x4a8   :  { %v9392_v49 = vsel %vm5339_vm3, %v5201_v2, %v5371_v53  ;;  %v5211_v10 = vadd.f32 %v6205_v8, %v4986_v7  ;;  %v5205_v48 = vpop.f32.mrb[73].mxu1  ;;  %v5021_v7 = vadd.f32 %v9360_v3, %v9347_v25  ;;  %v5036_v25 = vadd.f32 %v9360_v3, %v9353_v46 }
 0x4a9   :  { %v9394_v36 = vsel %vm5338_vm6, %v5196_v6, %v5370_v11  ;;  %v5206_v63 = vadd.f32 %v5205_v48, %v4981_v15  ;;  %v5046_v46 = vadd.f32 %v9360_v3, %v9366_v51 }
 0x4aa   :  { %v9396_v23 = vpop.f32.mrb[136].mxu0  ;;  %v6417_v58 = vpack.c.bf16 %v9392_v49, %v9394_v36  ;;  %vm5341_vm7 = vcmp.ge.f32.partialorder %v5211_v10, 0.0  ;;  %v5373_v5 = vmul.f32 0.2, %v5211_v10 }
 0x4ab   :  { %v5052_v56 = vpop.f32.mrb[137].mxu0  ;;  %vm5340_vm8 = vcmp.ge.f32.partialorder %v5206_v63, 0.0  ;;  %v5372_v1 = vmul.f32 0.2, %v5206_v63  ;;  %v6208_v13 = vpop.f32.mrb[74].mxu1 }
 0x4ac   :  { %v9404_v44 = vsel %vm5341_vm7, %v5211_v10, %v5373_v5  ;;  %v5221_v42 = vadd.f32 %v6208_v13, %v4996_v14  ;;  %v5215_v32 = vpop.f32.mrb[75].mxu1  ;;  %v5031_v56 = vadd.f32 %v9360_v3, %v9351_v22  ;;  %v5041_v22 = vadd.f32 %v9360_v3, %v9355_v59 }
 0x4ad   :  { %v9406_v12 = vsel %vm5340_vm8, %v5206_v63, %v5372_v1  ;;  %v5216_v61 = vadd.f32 %v5215_v32, %v4991_v28 }
 0x4ae   :  { %v6423_v50 = vpack.c.bf16 %v9404_v44, %v9406_v12  ;;  %vm5343_vm9 = vcmp.ge.f32.partialorder %v5221_v42, 0.0  ;;  %v5375_v31 = vmul.f32 0.2, %v5221_v42 }
 0x4af   :  { %vm5342_vm11 = vcmp.ge.f32.partialorder %v5216_v61, 0.0  ;;  %v5374_v57 = vmul.f32 0.2, %v5216_v61  ;;  %v6211_v27 = vpop.f32.mrb[76].mxu1 }
 0x4b0   :  { %v9414_v45 = vsel %vm5343_vm9, %v5221_v42, %v5375_v31  ;;  %v5231_v20 = vadd.f32 %v6211_v27, %v5006_v4  ;;  %v5225_v24 = vpop.f32.mrb[77].mxu1 }
 0x4b1   :  { %v9416_v35 = vsel %vm5342_vm11, %v5216_v61, %v5374_v57  ;;  %v5226_v17 = vadd.f32 %v5225_v24, %v5001_v16 }
 0x4b2   :  { %v6429_v21 = vpack.c.bf16 %v9414_v45, %v9416_v35  ;;  %vm5345_vm12 = vcmp.ge.f32.partialorder %v5231_v20, 0.0  ;;  %v5377_v38 = vmul.f32 0.2, %v5231_v20 }
 0x4b3   :  { %vm5344_vm14 = vcmp.ge.f32.partialorder %v5226_v17, 0.0  ;;  %v5376_v52 = vmul.f32 0.2, %v5226_v17  ;;  %v6214_v26 = vpop.f32.mrb[78].mxu1 }
 0x4b4   :  { %v9424_v37 = vsel %vm5345_vm12, %v5231_v20, %v5377_v38  ;;  %v5241_v30 = vadd.f32 %v6214_v26, %v5016_v62  ;;  %v5235_v41 = vpop.f32.mrb[79].mxu1  ;;  %v5431_v20 = vld [vmem:[%s9553_s6] sm:$0xf]  ;;  %s6494_s6 = smov [#allocation4]  }
 0x4b5   :  { %v9426_v43 = vsel %vm5344_vm14, %v5226_v17, %v5376_v52  ;;  %v5236_v19 = vadd.f32 %v5235_v41, %v5011_v9  ;;  %5434 = vperm.xlu1 %6460, %v5431_v20   ;;  %v5051_v41 = vadd.f32 %v9360_v3, %v9396_v23  ;;  %s5618_s12 = sshll.u32 %s6494_s6, 4  ;;  %s5619_s12 = int_to_ptr.vmem [resolvable:$true] %s5618_s12 }
 0x4b6   :  { %v5055_v2 = vpop.f32.mrb[138].mxu0  ;;  %v6435_v55 = vpack.c.bf16 %v9424_v37, %v9426_v43  ;;  %vm5347_vm15 = vcmp.ge.f32.partialorder %v5241_v30, 0.0  ;;  %v5379_v6 = vmul.f32 0.2, %v5241_v30  ;;  %s6464_s13 = scalar_lea.vmem %s5619_s12, 256  ;;  %p6469_p1 = scmp.lt.s32.totalorder %s5619_s12, %s5619_s12 }
 0x4b7   :  { %v5057_v40 = vpop.f32.mrb[139].mxu0  ;;  %vm5346_vm0 = vcmp.ge.f32.partialorder %v5236_v19, 0.0  ;;  %v5378_v53 = vmul.f32 0.2, %v5236_v19  ;;  %v6217_v15 = vpop.f32.mrb[80].mxu1  ;;  %v5056_v52 = vadd.f32 %v9360_v3, %v5055_v2  ;;  %p6465_p0 = scmp.ne.s32.totalorder %s5619_s12, %s6464_s13  ;;  %p6470_p2 = scmp.lt.s32.totalorder %s6464_s13, %s6464_s13 }
 0x4b8   :  { %v9434_v11 = vsel %vm5347_vm15, %v5241_v30, %v5379_v6  ;;  %v5251_v8 = vadd.f32 %v6217_v15, %v5026_v54  ;;  %v5245_v10 = vpop.f32.mrb[81].mxu1 }
 0x4b9   :  { %v9441_v48 = vsel %vm5346_vm0, %v5236_v19, %v5378_v53  ;;  %v5246_v63 = vadd.f32 %v5245_v10, %v5021_v7  ;;  %p6471_p3 = por %p6470_p2, %p6469_p1 }
 0x4ba   :  { %v6441_v14 = vpack.c.bf16 %v9434_v11, %v9441_v48  ;;  %vm5349_vm4 = vcmp.ge.f32.partialorder %v5251_v8, 0.0  ;;  %v5381_v5 = vmul.f32 0.2, %v5251_v8 }
 0x4bb   :  { %vm5348_vm5 = vcmp.ge.f32.partialorder %v5246_v63, 0.0  ;;  %v5380_v28 = vmul.f32 0.2, %v5246_v63  ;;  %v6220_v1 = vpop.f32.mrb[82].mxu1  ;;  %p6472_p4 = pnand %p6471_p3, %p6465_p0 }
 0x4bc   :  { %v9451_v13 = vsel %vm5349_vm4, %v5251_v8, %v5381_v5  ;;  %v5261_v42 = vadd.f32 %v6220_v1, %v5036_v25  ;;  %v5255_v32 = vpop.f32.mrb[83].mxu1 }
 0x4bd   :  { %v9453_v61 = vsel %vm5348_vm5, %v5246_v63, %v5380_v28  ;;  %v5256_v4 = vadd.f32 %v5255_v32, %v5031_v56 }
 0x4be   :  { %v6447_v31 = vpack.c.bf16 %v9451_v13, %v9453_v61  ;;  %vm5351_vm10 = vcmp.ge.f32.partialorder %v5261_v42, 0.0  ;;  %v5383_v16 = vmul.f32 0.2, %v5261_v42 }
 0x4bf   :  { %vm5350_vm1 = vcmp.ge.f32.partialorder %v5256_v4, 0.0  ;;  %v5382_v57 = vmul.f32 0.2, %v5256_v4  ;;  %v6223_v27 = vpop.f32.mrb[84].mxu1 }
 0x4c0   :  { %v5415_v24 = vsel %vm5351_vm10, %v5261_v42, %v5383_v16  ;;  %v5271_v17 = vadd.f32 %v6223_v27, %v5046_v46  ;;  %v5265_v62 = vpop.f32.mrb[85].mxu1 }
 0x4c1   :  { %v5414_v51 = vsel %vm5350_vm1, %v5256_v4, %v5382_v57  ;;  %v5266_v38 = vadd.f32 %v5265_v62, %v5041_v22 }
 0x4c2   :  { %v5060_v9 = vpop.f32.mrb[140].mxu0  ;;  %v6402_v26 = vpack.c.bf16 %v5415_v24, %v5414_v51  ;;  %vm5353_vm3 = vcmp.ge.f32.partialorder %v5271_v17, 0.0  ;;  %v5385_v30 = vmul.f32 0.2, %v5271_v17 }
 0x4c3   :  { %v5062_v59 = vpop.f32.mrb[141].mxu0  ;;  %vm5352_vm6 = vcmp.ge.f32.partialorder %v5266_v38, 0.0  ;;  %v5384_v19 = vmul.f32 0.2, %v5266_v38  ;;  %v6226_v54 = vpop.f32.mrb[86].mxu1  ;;  %v5061_v8 = vadd.f32 %v9360_v3, %v5060_v9 }
 0x4c4   :  { %v5417_v6 = vsel %vm5353_vm3, %v5271_v17, %v5385_v30  ;;  %v5281_v40 = vadd.f32 %v6226_v54, %v5056_v52  ;;  %v5275_v7 = vpop.f32.mrb[87].mxu1  ;;  %6404 = vmatprep.subr.msk.bf16.mxu1 %vm8798_vm13, %v6402_v26 }
 0x4c5   :  { %v5416_v53 = vsel %vm5352_vm6, %v5266_v38, %v5384_v19  ;;  %v5276_v15 = vadd.f32 %v5275_v7, %v5051_v41  ;;  %6407 = vmatpush3.bf16.xpose.msk.msra.mxu1 %vm8798_vm13, %v6405_v29 }
 0x4c6   :  { %v6408_v2 = vpack.c.bf16 %v5417_v6, %v5416_v53  ;;  %vm5355_vm7 = vcmp.ge.f32.partialorder %v5281_v40, 0.0  ;;  %v5387_v23 = vmul.f32 0.2, %v5281_v40 }
 0x4c7   :  { %vm5354_vm8 = vcmp.ge.f32.partialorder %v5276_v15, 0.0  ;;  %v5386_v10 = vmul.f32 0.2, %v5276_v15  ;;  %v6229_v63 = vpop.f32.mrb[88].mxu1 }
 0x4c8   :  { %v5419_v25 = vsel %vm5355_vm7, %v5281_v40, %v5387_v23  ;;  %v5285_v5 = vpop.f32.mrb[89].mxu1  ;;  %6410 = vmatprep.subr.msk.bf16.mxu1 %vm8798_vm13, %v6408_v2 }
 0x4c9   :  { %v5418_v56 = vsel %vm5354_vm8, %v5276_v15, %v5386_v10  ;;  %v5286_v28 = vadd.f32 %v5285_v5, %v5061_v8 }
 0x4ca   :  { %v6414_v1 = vpack.c.bf16 %v5419_v25, %v5418_v56 }
 0x4cb   :  { %v6232_v47 = vpop.f32.mrb[90].mxu1  ;;  %v5388_v46 = vmul.f32 0.2, %v5286_v28  ;;  %vm5356_vm9 = vcmp.ge.f32.partialorder %v5286_v28, 0.0 }
 0x4cc   :  { %v5295_v18 = vpop.f32.mrb[91].mxu1 }
 0x4cd   :  { %6413 = vmatpush3.bf16.xpose.msk.msra.mxu1 %vm8798_vm13, %v6411_v34  ;;  %v5420_v20 = vsel %vm5356_vm9, %v5286_v28, %v5388_v46 }
 0x4ce   :  { %v5065_v29 = vpop.f32.mrb[142].mxu0  ;;  %6416 = vmatprep.subr.msk.bf16.mxu1 %vm8798_vm13, %v6414_v1 }
 0x4cf   :  { %v5066_v42 = vadd.f32 %v9360_v3, %v5065_v29  ;;  %v5067_v32 = vpop.f32.mrb[143].mxu0  ;;  %v6235_v4 = vpop.f32.mrb[92].mxu1 }
 0x4d0   :  { %v5305_v22 = vpop.f32.mrb[93].mxu1 }
 0x4d1   :  { %v5291_v16 = vadd.f32 %v6229_v63, %v5066_v42 }
 0x4d3   :  { %vm5357_vm11 = vcmp.ge.f32.partialorder %v5291_v16, 0.0  ;;  %v5389_v57 = vmul.f32 0.2, %v5291_v16  ;;  %v6238_v27 = vpop.f32.mrb[94].mxu1 }
 0x4d4   :  { %v5315_v39 = vpop.f32.mrb[95].mxu1 }
 0x4d5   :  { %v5421_v60 = vsel %vm5357_vm11, %v5291_v16, %v5389_v57  ;;  %6419 = vmatpush3.bf16.xpose.msk.msra.mxu1 %vm8798_vm13, %v6417_v58 }
 0x4d6   :  { %v6420_v34 = vpack.c.bf16 %v5421_v60, %v5420_v20 }
 0x4d7   :  { %v6241_v24 = vpop.f32.mrb[96].mxu1 }
 0x4d8   :  { %6422 = vmatprep.subr.msk.bf16.mxu1 %vm8798_vm13, %v6420_v34  ;;  %v5325_v17 = vpop.f32.mrb[97].mxu1 }
 0x4da   :  { %v5070_v62 = vpop.f32.mrb[144].mxu0 }
 0x4db   :  { %v5071_v51 = vadd.f32 %v9360_v3, %v5070_v62  ;;  %v5072_v38 = vpop.f32.mrb[145].mxu0 }
 0x4dd   :  { %v5296_v9 = vadd.f32 %v5295_v18, %v5071_v51  ;;  %6425 = vmatpush3.bf16.xpose.msk.msra.mxu1 %vm8798_vm13, %v6423_v50 }
 0x4df   :  { %v5390_v52 = vmul.f32 0.2, %v5296_v9  ;;  %vm5358_vm12 = vcmp.ge.f32.partialorder %v5296_v9, 0.0 }
 0x4e1   :  { %v5422_v59 = vsel %vm5358_vm12, %v5296_v9, %v5390_v52 }
 0x4e6   :  { %v5075_v49 = vpop.f32.mrb[146].mxu0 }
 0x4e7   :  { %v5076_v36 = vadd.f32 %v9360_v3, %v5075_v49  ;;  %v5077_v58 = vpop.f32.mrb[147].mxu0 }
 0x4e9   :  { %v5301_v26 = vadd.f32 %v6232_v47, %v5076_v36 }
 0x4eb   :  { %vm5359_vm14 = vcmp.ge.f32.partialorder %v5301_v26, 0.0  ;;  %v5391_v30 = vmul.f32 0.2, %v5301_v26 }
 0x4ed   :  { %v5423_v41 = vsel %vm5359_vm14, %v5301_v26, %v5391_v30 }
 0x4ee   :  { %v6426_v19 = vpack.c.bf16 %v5423_v41, %v5422_v59 }
 0x4f0   :  { %6428 = vmatprep.subr.msk.bf16.mxu1 %vm8798_vm13, %v6426_v19 }
 0x4f1   :  { %6431 = vmatpush3.bf16.xpose.msk.msra.mxu1 %vm8798_vm13, %v6429_v21 }
 0x4f2   :  { %v5080_v44 = vpop.f32.mrb[148].mxu0 }
 0x4f3   :  { %v5081_v12 = vadd.f32 %v9360_v3, %v5080_v44  ;;  %v5082_v50 = vpop.f32.mrb[149].mxu0 }
 0x4f5   :  { %v5306_v54 = vadd.f32 %v5305_v22, %v5081_v12 }
 0x4f7   :  { %v5392_v53 = vmul.f32 0.2, %v5306_v54  ;;  %vm5360_vm15 = vcmp.ge.f32.partialorder %v5306_v54, 0.0 }
 0x4f9   :  { %v5424_v23 = vsel %vm5360_vm15, %v5306_v54, %v5392_v53 }
 0x4fe   :  { %v5085_v6 = vpop.f32.mrb[150].mxu0 }
 0x4ff   :  { %v5086_v40 = vadd.f32 %v9360_v3, %v5085_v6  ;;  %v5087_v7 = vpop.f32.mrb[151].mxu0 }
 0x501   :  { %v5311_v15 = vadd.f32 %v6235_v4, %v5086_v40 }
 0x503   :  { %vm5361_vm0 = vcmp.ge.f32.partialorder %v5311_v15, 0.0  ;;  %v5393_v2 = vmul.f32 0.2, %v5311_v15 }
 0x505   :  { %v5425_v8 = vsel %vm5361_vm0, %v5311_v15, %v5393_v2 }
 0x506   :  { %v6432_v45 = vpack.c.bf16 %v5425_v8, %v5424_v23 }
 0x508   :  { %6434 = vmatprep.subr.msk.bf16.mxu1 %vm8798_vm13, %v6432_v45 }
 0x509   :  { %6437 = vmatpush3.bf16.xpose.msk.msra.mxu1 %vm8798_vm13, %v6435_v55 }
 0x50a   :  { %v5090_v35 = vpop.f32.mrb[152].mxu0 }
 0x50b   :  { %v5091_v21 = vadd.f32 %v9360_v3, %v5090_v35  ;;  %v5092_v10 = vpop.f32.mrb[153].mxu0 }
 0x50d   :  { %v5316_v63 = vadd.f32 %v5315_v39, %v5091_v21 }
 0x50f   :  { %v5394_v28 = vmul.f32 0.2, %v5316_v63  ;;  %vm5362_vm4 = vcmp.ge.f32.partialorder %v5316_v63, 0.0 }
 0x511   :  { %v5426_v18 = vsel %vm5362_vm4, %v5316_v63, %v5394_v28 }
 0x516   :  { %v5095_v25 = vpop.f32.mrb[154].mxu0 }
 0x517   :  { %v5096_v5 = vadd.f32 %v9360_v3, %v5095_v25  ;;  %v5097_v56 = vpop.f32.mrb[155].mxu0 }
 0x519   :  { %v5321_v1 = vadd.f32 %v6238_v27, %v5096_v5 }
 0x51b   :  { %vm5363_vm5 = vcmp.ge.f32.partialorder %v5321_v1, 0.0  ;;  %v5395_v47 = vmul.f32 0.2, %v5321_v1 }
 0x51d   :  { %v5427_v29 = vsel %vm5363_vm5, %v5321_v1, %v5395_v47 }
 0x51e   :  { %v6438_v37 = vpack.c.bf16 %v5427_v29, %v5426_v18 }
 0x520   :  { %6440 = vmatprep.subr.msk.bf16.mxu1 %vm8798_vm13, %v6438_v37 }
 0x521   :  { %6443 = vmatpush3.bf16.xpose.msk.msra.mxu1 %vm8798_vm13, %v6441_v14 }
 0x522   :  { %v5100_v43 = vpop.f32.mrb[156].mxu0 }
 0x523   :  { %v5101_v55 = vadd.f32 %v9360_v3, %v5100_v43  ;;  %v5102_v42 = vpop.f32.mrb[157].mxu0 }
 0x525   :  { %v5326_v32 = vadd.f32 %v5325_v17, %v5101_v55 }
 0x527   :  { %v5396_v22 = vmul.f32 0.2, %v5326_v32  ;;  %vm5364_vm10 = vcmp.ge.f32.partialorder %v5326_v32, 0.0 }
 0x529   :  { %v5428_v20 = vsel %vm5364_vm10, %v5326_v32, %v5396_v22 }
 0x52e   :  { %v5105_v4 = vpop.f32.mrb[158].mxu0 }
 0x52f   :  { %v5106_v46 = vadd.f32 %v9360_v3, %v5105_v4  ;;  %v5107_v16 = vpop.f32.mrb[159].mxu0 }
 0x531   :  { %v5331_v57 = vadd.f32 %v6241_v24, %v5106_v46 }
 0x533   :  { %vm5365_vm1 = vcmp.ge.f32.partialorder %v5331_v57, 0.0  ;;  %v5397_v27 = vmul.f32 0.2, %v5331_v57 }
 0x534   :  { %v5435_v3 = vpop.permute.xlu1 %5434 }
 0x535   :  { %v5429_v60 = vsel %vm5365_vm1, %v5331_v57, %v5397_v27 }
 0x536   :  { %v6444_v11 = vpack.c.bf16 %v5429_v60, %v5428_v20 }
 0x538   :  { %6446 = vmatprep.subr.msk.bf16.mxu1 %vm8798_vm13, %v6444_v11 }
 0x539   :  { %6449 = vmatpush3.bf16.xpose.msk.msra.mxu1 %vm8798_vm13, %v6447_v31 }
 0x540   :  { %6031 = vmatmul.mubr.msk.f32.vlgmr.msra.gmra.mrb[98].mxu1 %vm873_vm2, %v9439_v33 }
 0x613   :  { %v5602_v48 = vpop.f32.mrb[98].mxu1 }
 0x614   :  { %v5603_v14 = vadd.f32 %v5602_v48, %v5435_v3  ;;  %v5604_v39 = vpop.f32.mrb[99].mxu1 }
 0x615   :  { %v5605_v34 = vadd.f32 %v5604_v39, %v5435_v3 }
 0x617   :  { %v5609_v24 = vcombine.low %v5603_v14, %v5605_v34 }
 0x619   :  { %5612 = vst [vmem:[#allocation4 + $0x8] sm:$0xff] %v5609_v24 }
 0x61a   :  { %6475 = shalt.err (!%p6472_p4)
}
 0x61b   :  { %s6476_s16 = scalar_lea.hbm %s9554_s7, 256 }
 0x61c   :  { %p6477_p5 = scmp.ne.s32.totalorder %s9554_s7, %s6476_s16  ;;  %p6480_p6 = scmp.lt.u32.totalorder %s6476_s16, %s9554_s7 }
 0x61e   :  { %p6482_p7 = pnand %p6480_p6, %p6477_p5 }
 0x620   :  { %6485 = shalt.err (!%p6482_p7)
}
 0x621   :  { %s6495_s21 = smov 128   ;;  %s6496_s2 = smov 8  }
 0x622   :  { %5624 = dma.vmem_to_hbm [thread:$0]  %s5619_s12, 256, %s9554_s7, [#allocation5], %s6495_s21, %s6495_s21, %s6496_s2  }
 0x623   :  { %6486 = dma.done.wait [#allocation5], 256  }
 0x624   :  { %6487 = vsyncadd [#allocation5], 4294967040 }
 0x625   :  { %5628 = vsyncpa [#allocation5], 1 }

</bundles_post_ra>
